<compile_context>
chip_gen: v7x
topology: tpu7x:2x2x1
jax: 0.10.0
libtpu: 0.0.40
codegen_flags: <defaults>
</compile_context>

<pallas_src>
import functools

import jax
import jax.numpy as jnp
import numpy as np
from jax.experimental import pallas as pl
from jax.experimental.pallas import tpu as pltpu


def _layer_norm(x, gamma, beta, eps=1e-5):
    mean = jnp.mean(x, axis=-1, keepdims=True)
    var = jnp.mean((x - mean) ** 2, axis=-1, keepdims=True)
    return (x - mean) * jax.lax.rsqrt(var + eps) * gamma + beta


def _transformer_kernel(
    x_ref,                                   # (TB, S, D)
    wqkv_ref, bqkv_ref,                      # (D, 3D) cols=[q|k|v], q pre-scaled; (1, 3D)
    wo_ref, bo_ref,                          # (D, D), (1, D)
    w1_ref, b1_ref,                          # (D, F), (1, F)
    w2_ref, b2_ref,                          # (F, D), (1, D)
    g1_ref, be1_ref, g2_ref, be2_ref,        # (1, D) each
    o_ref,                                   # (TB, S, D)
    ctx_scr,                                 # VMEM scratch (TB*S, D) f32
    *, num_heads, compute_dtype, approx_recip,
):
    TB, S, D = x_ref.shape
    H = num_heads
    hd = D // H
    rows = TB * S

    x = x_ref[...].astype(jnp.float32)            # residual path in f32
    x2d = x.reshape(rows, D)                      # leading-dim merge (cheap)
    xc = x2d.astype(compute_dtype)                # MXU input dtype

    # --- Fused QKV projection: one lane-dense matmul (N = 3D) ------------------
    qkv = (jnp.dot(xc, wqkv_ref[...], preferred_element_type=jnp.float32)
           + bqkv_ref[...]).astype(compute_dtype)                     # (rows, 3D)
    q = qkv[:, 0 * D:1 * D]
    k = qkv[:, 1 * D:2 * D]
    v = qkv[:, 2 * D:3 * D]

    # --- Per-head softmax attention; contexts go straight into the scratch slab ---
    for h in range(H):
        lo, hi = h * hd, (h + 1) * hd
        qh = q[:, lo:hi].reshape(TB, S, hd)       # leading-dim split only
        kh = k[:, lo:hi].reshape(TB, S, hd)
        vh = v[:, lo:hi].reshape(TB, S, hd)

        # attention restricted to each batch element: 3-D, one batch dim
        s_ = jnp.einsum("bqd,bkd->bqk", qh, kh,
                        preferred_element_type=jnp.float32)           # (TB, S, S) f32
        s_ = s_ - jnp.max(s_, axis=-1, keepdims=True)
        p = jnp.exp(s_)
        denom = jnp.sum(p, axis=-1, keepdims=True)
        p = p * pl.reciprocal(denom, approx=approx_recip)             # EUP on bf16 path
        ctx = jnp.einsum("bqk,bkd->bqd", p.astype(compute_dtype), vh,
                         preferred_element_type=jnp.float32)          # (TB, S, hd)
        ctx_scr[:, lo:hi] = ctx.reshape(rows, hd)                     # lane slice store

    # --- Single K = D output projection (== concat-then-project) ---------------
    attn = jnp.dot(ctx_scr[...].astype(compute_dtype), wo_ref[...],
                   preferred_element_type=jnp.float32) + bo_ref[...]

    # residual + norm1 (f32)
    x1 = _layer_norm(x2d + attn, g1_ref[...], be1_ref[...])

    # --- Feed-forward: hidden materialized once (bias + ReLU + cast fused) -----
    h1 = jnp.maximum(
        jnp.dot(x1.astype(compute_dtype), w1_ref[...],
                preferred_element_type=jnp.float32) + b1_ref[...],
        0.0).astype(compute_dtype)
    ff = jnp.dot(h1, w2_ref[...], preferred_element_type=jnp.float32) + b2_ref[...]

    # residual + norm2 (f32)
    out = _layer_norm(x1 + ff, g2_ref[...], be2_ref[...])
    o_ref[...] = out.reshape(TB, S, D).astype(o_ref.dtype)


def _hw_info():
    """Return (physical VMEM bytes per TensorCore, likely multi-TC-per-chip)."""
    vmem_bytes = 128 * 1024 * 1024
    try:
        info = pltpu.get_tpu_info()
        for attr in ("vmem_capacity_bytes", "vmem_size_bytes", "vmem_bytes"):
            val = getattr(info, attr, None)
            if val:
                vmem_bytes = int(val)
                break
    except Exception:
        pass
    kind = ""
    try:
        kind = jax.devices()[0].device_kind.lower()
    except Exception:
        pass
    looks_v7 = any(t in kind for t in ("v7", "7x"))
    if looks_v7:
        vmem_bytes = min(vmem_bytes, 64 * 1024 * 1024)
    multi_tc = looks_v7 or vmem_bytes <= 64 * 1024 * 1024
    return vmem_bytes, multi_tc


def _weight_bytes(D, F, cd_bytes):
    mats = (3 * D * D + D * D + D * F + F * D) * cd_bytes
    vecs = (3 * D + D + F + D + 4 * D) * 4
    return mats + vecs


def _vmem_step_bytes(tb, S, D, F, cd_bytes):
    """Rough per-grid-step activation footprint for a (tb, S, D) slab."""
    rows = tb * S
    io = 2 * (2 * rows * D * 4)                     # double-buffered x / out slabs (f32)
    act = rows * (2 * D * 4 + D * cd_bytes          # x2d, x1 (f32) + xc
                  + 3 * D * (4 + cd_bytes)          # fused qkv f32 acc + compute copy
                  + D * (4 + cd_bytes)              # attn (f32) + ctx cast
                  + D * 4                           # ctx scratch (f32)
                  + D * 4                           # out (f32)
                  + F * (4 + cd_bytes))             # FFN hidden f32 acc + fused cast
    scores = 3 * tb * S * S * 4                     # live (S, S) f32 score/prob tiles
    return io + act + scores


def _choose_batch_block(B, S, D, F, cd_bytes, act_budget, multi_tc):
    """Largest batch block whose activations fit the VMEM budget.

    Single-TC parts (v5e/v6e): the grid is a serial loop -> take the largest fitting
    tile (no demotion just to get extra grid steps). Multi-TC parts (v7x): prefer an
    even grid count >= 2 so both TensorCores get equal work.
    """
    divisors = [d for d in range(1, B + 1) if B % d == 0]
    fitting = [d for d in divisors
               if _vmem_step_bytes(d, S, D, F, cd_bytes) <= act_budget]
    if not fitting:
        fitting = [1]
    if multi_tc:
        even = [d for d in fitting if (B // d) >= 2 and (B // d) % 2 == 0]
        if even:
            return max(even)
        multi = [d for d in fitting if (B // d) >= 2]
        if multi:
            return max(multi)
    return max(fitting)


def _prep_kernel_params(params, num_heads, compute_dtype):
    """Host-side (one-time) weight re-layout: fused QKV with q pre-scaled by 1/sqrt(hd)."""
    D = params["w_qkv"].shape[0]
    F = params["w1"].shape[1]
    hd = D // num_heads
    scale = 1.0 / float(np.sqrt(hd))
    cd = compute_dtype

    # Fold 1/sqrt(hd) into the q-columns (zero in-kernel cost). Scaling happens in f32
    # before the compute-dtype cast; only a bf16-rounding-level difference vs. the
    # reference (which scales scores post-matmul).
    col_scale = jnp.concatenate([jnp.full((D,), scale, jnp.float32),
                                 jnp.ones((2 * D,), jnp.float32)])
    w_qkv = params["w_qkv"].astype(jnp.float32) * col_scale[None, :]
    b_qkv = params["b_qkv"].astype(jnp.float32) * col_scale

    return {
        "wqkv": w_qkv.astype(cd),
        "bqkv": b_qkv.reshape(1, 3 * D),
        "wo": params["w_out"].astype(cd),
        "bo": params["b_out"].reshape(1, D).astype(jnp.float32),
        "w1": params["w1"].astype(cd),
        "b1": params["b1"].reshape(1, F).astype(jnp.float32),
        "w2": params["w2"].astype(cd),
        "b2": params["b2"].reshape(1, D).astype(jnp.float32),
        "g1": params["g1"].reshape(1, D).astype(jnp.float32),
        "be1": params["be1"].reshape(1, D).astype(jnp.float32),
        "g2": params["g2"].reshape(1, D).astype(jnp.float32),
        "be2": params["be2"].reshape(1, D).astype(jnp.float32),
    }


def temporal_transformer_layer(x, params, num_heads, *,
                               compute_dtype=jnp.bfloat16, batch_block=None):
    """x: (B, S, D) float32. params: raw (PyTorch-like) layout, preprocessed on host."""
    B, S, D = x.shape
    F = params["w1"].shape[1]
    assert D % num_heads == 0, "d_model must be divisible by num_heads"
    kp = _prep_kernel_params(params, num_heads, compute_dtype)
    cd_bytes = jnp.dtype(compute_dtype).itemsize

    vmem_phys, multi_tc = _hw_info()
    vmem_limit = max(32 * 1024 * 1024,
                     min(int(vmem_phys * 0.7), vmem_phys - 8 * 1024 * 1024))
    wbytes = _weight_bytes(D, F, cd_bytes)
    act_budget = max(4 * 1024 * 1024, int(vmem_limit * 0.6) - wbytes)

    TB = (batch_block if batch_block is not None
          else _choose_batch_block(B, S, D, F, cd_bytes, act_budget, multi_tc))
    assert B % TB == 0, "batch block must divide batch"
    grid = (B // TB,)
    rows = TB * S

    kernel = functools.partial(
        _transformer_kernel, num_heads=num_heads, compute_dtype=compute_dtype,
        approx_recip=(compute_dtype != jnp.float32))

    cost = pl.CostEstimate(
        flops=int(2 * B * S * D * (3 * D)          # fused QKV projection
                  + 4 * B * S * S * D              # scores + context
                  + 2 * B * S * D * D              # output projection
                  + 4 * B * S * D * F),            # FFN (two matmuls)
        transcendentals=int(B * num_heads * S * S  # exp
                            + B * num_heads * S    # softmax reciprocal
                            + 4 * B * S),          # LayerNorm rsqrt
        bytes_accessed=int(2 * B * S * D * 4 + wbytes),
    )

    weight_order = ("wqkv", "bqkv", "wo", "bo", "w1", "b1", "w2", "b2",
                    "g1", "be1", "g2", "be2")
    operands = (x,) + tuple(kp[name] for name in weight_order)

    def build(single_buffer_weights):
        def const_spec(shape):
            n = len(shape)
            index_map = lambda b, _n=n: (0,) * _n
            if single_buffer_weights:
                # Constant index map across the grid -> single buffer saves VMEM.
                return pl.BlockSpec(shape, index_map, pipeline_mode=pl.Buffered(1))
            return pl.BlockSpec(shape, index_map)

        in_specs = [pl.BlockSpec((TB, S, D), lambda b: (b, 0, 0))]
        in_specs += [const_spec(tuple(kp[name].shape)) for name in weight_order]

        return pl.pallas_call(
            kernel,
            out_shape=jax.ShapeDtypeStruct((B, S, D), x.dtype),
            grid_spec=pltpu.PrefetchScalarGridSpec(
                num_scalar_prefetch=0,
                grid=grid,
                in_specs=in_specs,
                out_specs=pl.BlockSpec((TB, S, D), lambda b: (b, 0, 0)),
                scratch_shapes=[pltpu.VMEM((rows, D), jnp.float32)]),
            compiler_params=pltpu.CompilerParams(
                dimension_semantics=("parallel",),
                vmem_limit_bytes=vmem_limit),
            cost_estimate=cost,
        )

    try:
        return build(single_buffer_weights=True)(*operands)
    except Exception:
        # TODO(synk): this Pallas version rejected pl.Buffered(1) single-buffering of the
        # constant weight blocks; fall back to default double-buffered weight specs.
        return build(single_buffer_weights=False)(*operands)


def _reference(x, params, num_heads):
    """Pure-JAX reference mirroring PyTorch eval-mode TemporalTransformerLayer."""
    B, S, D = x.shape
    hd = D // num_heads
    scale = 1.0 / np.sqrt(hd)

    qkv = x @ params["w_qkv"] + params["b_qkv"]
    q, k, v = jnp.split(qkv, 3, axis=-1)

    def heads(t):
        return t.reshape(B, S, num_heads, hd).transpose(0, 2, 1, 3)

    qh, kh, vh = heads(q), heads(k), heads(v)
    scores = jnp.einsum("bhqd,bhkd->bhqk", qh, kh) * scale
    p = jax.nn.softmax(scores, axis=-1)
    attn = jnp.einsum("bhqk,bhkd->bhqd", p, vh).transpose(0, 2, 1, 3).reshape(B, S, D)
    attn = attn @ params["w_out"] + params["b_out"]

    def ln(t, g, b, eps=1e-5):
        m = jnp.mean(t, -1, keepdims=True)
        var = jnp.mean((t - m) ** 2, -1, keepdims=True)
        return (t - m) * jax.lax.rsqrt(var + eps) * g + b

    x1 = ln(x + attn, params["g1"], params["be1"])
    ff = jnp.maximum(x1 @ params["w1"] + params["b1"], 0.0) @ params["w2"] + params["b2"]
    return ln(x1 + ff, params["g2"], params["be2"])


def make_params(key, d_model, num_heads, dim_feedforward):
    ks = jax.random.split(key, 8)
    s = 0.05
    return {
        "w_qkv": jax.random.normal(ks[0], (d_model, 3 * d_model), jnp.float32) * s,
        "b_qkv": jax.random.normal(ks[1], (3 * d_model,), jnp.float32) * s,
        "w_out": jax.random.normal(ks[2], (d_model, d_model), jnp.float32) * s,
        "b_out": jax.random.normal(ks[3], (d_model,), jnp.float32) * s,
        "w1": jax.random.normal(ks[4], (d_model, dim_feedforward), jnp.float32) * s,
        "b1": jax.random.normal(ks[5], (dim_feedforward,), jnp.float32) * s,
        "w2": jax.random.normal(ks[6], (dim_feedforward, d_model), jnp.float32) * s,
        "b2": jax.random.normal(ks[7], (d_model,), jnp.float32) * s,
        "g1": jnp.ones((d_model,), jnp.float32),
        "be1": jnp.zeros((d_model,), jnp.float32),
        "g2": jnp.ones((d_model,), jnp.float32),
        "be2": jnp.zeros((d_model,), jnp.float32),
    }


if __name__ == "__main__":
    B, S, d_model = 2, 8, 32
    num_heads = 4
    dim_feedforward = 64

    key = jax.random.PRNGKey(0)
    kx, kparam = jax.random.split(key)
    x = jax.random.normal(kx, (B, S, d_model), jnp.float32)
    params = make_params(kparam, d_model, num_heads, dim_feedforward)

    ref = _reference(x, params, num_heads)

    # f32-matmul path (exact softmax reciprocal): tight check of the kernel structure.
    out_f32 = jax.block_until_ready(
        temporal_transformer_layer(x, params, num_heads, compute_dtype=jnp.float32))
    np.testing.assert_allclose(np.asarray(out_f32), np.asarray(ref), rtol=5e-3, atol=5e-3)

    # bf16-matmul path (production config for v6e/v7x MXU): looser tolerance.
    out_bf16 = jax.block_until_ready(
        temporal_transformer_layer(x, params, num_heads, compute_dtype=jnp.bfloat16))
    np.testing.assert_allclose(np.asarray(out_bf16), np.asarray(ref), rtol=1e-1, atol=1e-1)

    print("KERNEL_OK")
</pallas_src>

<mosaic_0001>
module attributes {stable_mosaic.version = 11 : i64} {
  func.func @_transformer_kernel(%arg0: i32, %arg1: memref<2x8x32xf32, #tpu.memory_space<vmem>>, %arg2: memref<32x96xf32, #tpu.memory_space<vmem>>, %arg3: memref<1x96xf32, #tpu.memory_space<vmem>>, %arg4: memref<32x32xf32, #tpu.memory_space<vmem>>, %arg5: memref<1x32xf32, #tpu.memory_space<vmem>>, %arg6: memref<32x64xf32, #tpu.memory_space<vmem>>, %arg7: memref<1x64xf32, #tpu.memory_space<vmem>>, %arg8: memref<64x32xf32, #tpu.memory_space<vmem>>, %arg9: memref<1x32xf32, #tpu.memory_space<vmem>>, %arg10: memref<1x32xf32, #tpu.memory_space<vmem>>, %arg11: memref<1x32xf32, #tpu.memory_space<vmem>>, %arg12: memref<1x32xf32, #tpu.memory_space<vmem>>, %arg13: memref<1x32xf32, #tpu.memory_space<vmem>>, %arg14: memref<2x8x32xf32, #tpu.memory_space<vmem>>, %arg15: memref<16x32xf32, #tpu.memory_space<vmem>>) attributes {dimension_semantics = [#tpu.dimension_semantics<parallel>], iteration_bounds = array<i64: 1>, scalar_prefetch = 0 : i64, scratch_operands = 1 : i64, tpu.core_type = #tpu.core_type<tc>, window_params = [{transform_indices = @transform_0, window_bounds = array<i64: 2, 8, 32>}, {pipeline_mode = #tpu.pipeline_mode<synchronous>, transform_indices = @transform_1, window_bounds = array<i64: 32, 96>}, {pipeline_mode = #tpu.pipeline_mode<synchronous>, transform_indices = @transform_2, window_bounds = array<i64: 1, 96>}, {pipeline_mode = #tpu.pipeline_mode<synchronous>, transform_indices = @transform_3, window_bounds = array<i64: 32, 32>}, {pipeline_mode = #tpu.pipeline_mode<synchronous>, transform_indices = @transform_4, window_bounds = array<i64: 1, 32>}, {pipeline_mode = #tpu.pipeline_mode<synchronous>, transform_indices = @transform_5, window_bounds = array<i64: 32, 64>}, {pipeline_mode = #tpu.pipeline_mode<synchronous>, transform_indices = @transform_6, window_bounds = array<i64: 1, 64>}, {pipeline_mode = #tpu.pipeline_mode<synchronous>, transform_indices = @transform_7, window_bounds = array<i64: 64, 32>}, {pipeline_mode = #tpu.pipeline_mode<synchronous>, transform_indices = @transform_8, window_bounds = array<i64: 1, 32>}, {pipeline_mode = #tpu.pipeline_mode<synchronous>, transform_indices = @transform_9, window_bounds = array<i64: 1, 32>}, {pipeline_mode = #tpu.pipeline_mode<synchronous>, transform_indices = @transform_10, window_bounds = array<i64: 1, 32>}, {pipeline_mode = #tpu.pipeline_mode<synchronous>, transform_indices = @transform_11, window_bounds = array<i64: 1, 32>}, {pipeline_mode = #tpu.pipeline_mode<synchronous>, transform_indices = @transform_12, window_bounds = array<i64: 1, 32>}, {transform_indices = @transform_13, window_bounds = array<i64: 2, 8, 32>}]} {
    %c0 = arith.constant 0 : index
    %c0_0 = arith.constant 0 : index
    %c0_1 = arith.constant 0 : index
    %0 = vector.load %arg1[%c0, %c0_0, %c0_1] : memref<2x8x32xf32, #tpu.memory_space<vmem>>, vector<2x8x32xf32>
    %1 = vector.shape_cast %0 : vector<2x8x32xf32> to vector<16x32xf32>
    %c0_2 = arith.constant 0 : index
    %c0_3 = arith.constant 0 : index
    %2 = vector.load %arg2[%c0_2, %c0_3] : memref<32x96xf32, #tpu.memory_space<vmem>>, vector<32x96xf32>
    %cst = arith.constant dense<0.000000e+00> : vector<16x96xf32>
    %3 = tpu.matmul %1, %2, %cst {dimension_numbers = #tpu.dot_dimension_numbers<[1], [0], [0], [1], [0, 0, 1, 1], [], []>} : vector<16x32xf32>, vector<32x96xf32>, vector<16x96xf32> -> vector<16x96xf32>
    %c0_4 = arith.constant 0 : index
    %c0_5 = arith.constant 0 : index
    %4 = vector.load %arg3[%c0_4, %c0_5] : memref<1x96xf32, #tpu.memory_space<vmem>>, vector<1x96xf32>
    %5 = vector.broadcast %4 : vector<1x96xf32> to vector<16x96xf32>
    %6 = arith.addf %3, %5 : vector<16x96xf32>
    %7 = vector.extract_strided_slice %6 {offsets = [0, 0], sizes = [16, 32], strides = [1, 1]} : vector<16x96xf32> to vector<16x32xf32>
    %8 = vector.extract_strided_slice %6 {offsets = [0, 32], sizes = [16, 32], strides = [1, 1]} : vector<16x96xf32> to vector<16x32xf32>
    %9 = vector.extract_strided_slice %6 {offsets = [0, 64], sizes = [16, 32], strides = [1, 1]} : vector<16x96xf32> to vector<16x32xf32>
    %10 = vector.extract_strided_slice %7 {offsets = [0, 0], sizes = [16, 8], strides = [1, 1]} : vector<16x32xf32> to vector<16x8xf32>
    %11 = vector.shape_cast %10 : vector<16x8xf32> to vector<2x8x8xf32>
    %12 = vector.extract_strided_slice %8 {offsets = [0, 0], sizes = [16, 8], strides = [1, 1]} : vector<16x32xf32> to vector<16x8xf32>
    %13 = vector.shape_cast %12 : vector<16x8xf32> to vector<2x8x8xf32>
    %14 = vector.extract_strided_slice %9 {offsets = [0, 0], sizes = [16, 8], strides = [1, 1]} : vector<16x32xf32> to vector<16x8xf32>
    %15 = vector.shape_cast %14 : vector<16x8xf32> to vector<2x8x8xf32>
    "tpu.trace_start"() <{level = 10 : i32, message = "bqd,bkd->bqk"}> : () -> ()
    %cst_6 = arith.constant dense<0.000000e+00> : vector<2x8x8xf32>
    %16 = tpu.matmul %11, %13, %cst_6 {dimension_numbers = #tpu.dot_dimension_numbers<[2], [2], [1], [1], [0, 0, 0, 1, 1, 1], [0], [0]>} : vector<2x8x8xf32>, vector<2x8x8xf32>, vector<2x8x8xf32> -> vector<2x8x8xf32>
    "tpu.trace_stop"() : () -> ()
    %cst_7 = arith.constant dense<0xFF800000> : vector<2x8xf32>
    %17 = vector.multi_reduction <maximumf>, %16, %cst_7 [2] : vector<2x8x8xf32> to vector<2x8xf32>
    %18 = vector.shape_cast %17 : vector<2x8xf32> to vector<2x8x1xf32>
    %19 = vector.broadcast %18 : vector<2x8x1xf32> to vector<2x8x8xf32>
    %20 = arith.subf %16, %19 : vector<2x8x8xf32>
    %21 = math.exp %20 : vector<2x8x8xf32>
    %cst_8 = arith.constant dense<0.000000e+00> : vector<2x8xf32>
    %22 = vector.multi_reduction <add>, %21, %cst_8 [2] : vector<2x8x8xf32> to vector<2x8xf32>
    %23 = vector.shape_cast %22 : vector<2x8xf32> to vector<2x8x1xf32>
    %24 = tpu.reciprocal %23 : vector<2x8x1xf32> -> vector<2x8x1xf32>
    %25 = vector.broadcast %24 : vector<2x8x1xf32> to vector<2x8x8xf32>
    %26 = arith.mulf %21, %25 : vector<2x8x8xf32>
    "tpu.trace_start"() <{level = 10 : i32, message = "bqk,bkd->bqd"}> : () -> ()
    %cst_9 = arith.constant dense<0.000000e+00> : vector<2x8x8xf32>
    %27 = tpu.matmul %26, %15, %cst_9 {dimension_numbers = #tpu.dot_dimension_numbers<[2], [1], [1], [2], [0, 0, 0, 1, 1, 2], [0], [0]>} : vector<2x8x8xf32>, vector<2x8x8xf32>, vector<2x8x8xf32> -> vector<2x8x8xf32>
    "tpu.trace_stop"() : () -> ()
    %28 = vector.shape_cast %27 : vector<2x8x8xf32> to vector<16x8xf32>
    %c0_10 = arith.constant 0 : index
    %c0_11 = arith.constant 0 : index
    %29 = vector.load %arg15[%c0_10, %c0_11] : memref<16x32xf32, #tpu.memory_space<vmem>>, vector<16x8xf32>
    tpu.vector_store %arg15[%c0_10, %c0_11], %28 {strides = array<i32>} : memref<16x32xf32, #tpu.memory_space<vmem>>, vector<16x8xf32>,
    %30 = vector.extract_strided_slice %7 {offsets = [0, 8], sizes = [16, 8], strides = [1, 1]} : vector<16x32xf32> to vector<16x8xf32>
    %31 = vector.shape_cast %30 : vector<16x8xf32> to vector<2x8x8xf32>
    %32 = vector.extract_strided_slice %8 {offsets = [0, 8], sizes = [16, 8], strides = [1, 1]} : vector<16x32xf32> to vector<16x8xf32>
    %33 = vector.shape_cast %32 : vector<16x8xf32> to vector<2x8x8xf32>
    %34 = vector.extract_strided_slice %9 {offsets = [0, 8], sizes = [16, 8], strides = [1, 1]} : vector<16x32xf32> to vector<16x8xf32>
    %35 = vector.shape_cast %34 : vector<16x8xf32> to vector<2x8x8xf32>
    "tpu.trace_start"() <{level = 10 : i32, message = "bqd,bkd->bqk"}> : () -> ()
    %cst_12 = arith.constant dense<0.000000e+00> : vector<2x8x8xf32>
    %36 = tpu.matmul %31, %33, %cst_12 {dimension_numbers = #tpu.dot_dimension_numbers<[2], [2], [1], [1], [0, 0, 0, 1, 1, 1], [0], [0]>} : vector<2x8x8xf32>, vector<2x8x8xf32>, vector<2x8x8xf32> -> vector<2x8x8xf32>
    "tpu.trace_stop"() : () -> ()
    %cst_13 = arith.constant dense<0xFF800000> : vector<2x8xf32>
    %37 = vector.multi_reduction <maximumf>, %36, %cst_13 [2] : vector<2x8x8xf32> to vector<2x8xf32>
    %38 = vector.shape_cast %37 : vector<2x8xf32> to vector<2x8x1xf32>
    %39 = vector.broadcast %38 : vector<2x8x1xf32> to vector<2x8x8xf32>
    %40 = arith.subf %36, %39 : vector<2x8x8xf32>
    %41 = math.exp %40 : vector<2x8x8xf32>
    %cst_14 = arith.constant dense<0.000000e+00> : vector<2x8xf32>
    %42 = vector.multi_reduction <add>, %41, %cst_14 [2] : vector<2x8x8xf32> to vector<2x8xf32>
    %43 = vector.shape_cast %42 : vector<2x8xf32> to vector<2x8x1xf32>
    %44 = tpu.reciprocal %43 : vector<2x8x1xf32> -> vector<2x8x1xf32>
    %45 = vector.broadcast %44 : vector<2x8x1xf32> to vector<2x8x8xf32>
    %46 = arith.mulf %41, %45 : vector<2x8x8xf32>
    "tpu.trace_start"() <{level = 10 : i32, message = "bqk,bkd->bqd"}> : () -> ()
    %cst_15 = arith.constant dense<0.000000e+00> : vector<2x8x8xf32>
    %47 = tpu.matmul %46, %35, %cst_15 {dimension_numbers = #tpu.dot_dimension_numbers<[2], [1], [1], [2], [0, 0, 0, 1, 1, 2], [0], [0]>} : vector<2x8x8xf32>, vector<2x8x8xf32>, vector<2x8x8xf32> -> vector<2x8x8xf32>
    "tpu.trace_stop"() : () -> ()
    %48 = vector.shape_cast %47 : vector<2x8x8xf32> to vector<16x8xf32>
    %c0_16 = arith.constant 0 : index
    %c8 = arith.constant 8 : index
    %49 = vector.load %arg15[%c0_16, %c8] : memref<16x32xf32, #tpu.memory_space<vmem>>, vector<16x8xf32>
    tpu.vector_store %arg15[%c0_16, %c8], %48 {strides = array<i32>} : memref<16x32xf32, #tpu.memory_space<vmem>>, vector<16x8xf32>,
    %50 = vector.extract_strided_slice %7 {offsets = [0, 16], sizes = [16, 8], strides = [1, 1]} : vector<16x32xf32> to vector<16x8xf32>
    %51 = vector.shape_cast %50 : vector<16x8xf32> to vector<2x8x8xf32>
    %52 = vector.extract_strided_slice %8 {offsets = [0, 16], sizes = [16, 8], strides = [1, 1]} : vector<16x32xf32> to vector<16x8xf32>
    %53 = vector.shape_cast %52 : vector<16x8xf32> to vector<2x8x8xf32>
    %54 = vector.extract_strided_slice %9 {offsets = [0, 16], sizes = [16, 8], strides = [1, 1]} : vector<16x32xf32> to vector<16x8xf32>
    %55 = vector.shape_cast %54 : vector<16x8xf32> to vector<2x8x8xf32>
    "tpu.trace_start"() <{level = 10 : i32, message = "bqd,bkd->bqk"}> : () -> ()
    %cst_17 = arith.constant dense<0.000000e+00> : vector<2x8x8xf32>
    %56 = tpu.matmul %51, %53, %cst_17 {dimension_numbers = #tpu.dot_dimension_numbers<[2], [2], [1], [1], [0, 0, 0, 1, 1, 1], [0], [0]>} : vector<2x8x8xf32>, vector<2x8x8xf32>, vector<2x8x8xf32> -> vector<2x8x8xf32>
    "tpu.trace_stop"() : () -> ()
    %cst_18 = arith.constant dense<0xFF800000> : vector<2x8xf32>
    %57 = vector.multi_reduction <maximumf>, %56, %cst_18 [2] : vector<2x8x8xf32> to vector<2x8xf32>
    %58 = vector.shape_cast %57 : vector<2x8xf32> to vector<2x8x1xf32>
    %59 = vector.broadcast %58 : vector<2x8x1xf32> to vector<2x8x8xf32>
    %60 = arith.subf %56, %59 : vector<2x8x8xf32>
    %61 = math.exp %60 : vector<2x8x8xf32>
    %cst_19 = arith.constant dense<0.000000e+00> : vector<2x8xf32>
    %62 = vector.multi_reduction <add>, %61, %cst_19 [2] : vector<2x8x8xf32> to vector<2x8xf32>
    %63 = vector.shape_cast %62 : vector<2x8xf32> to vector<2x8x1xf32>
    %64 = tpu.reciprocal %63 : vector<2x8x1xf32> -> vector<2x8x1xf32>
    %65 = vector.broadcast %64 : vector<2x8x1xf32> to vector<2x8x8xf32>
    %66 = arith.mulf %61, %65 : vector<2x8x8xf32>
    "tpu.trace_start"() <{level = 10 : i32, message = "bqk,bkd->bqd"}> : () -> ()
    %cst_20 = arith.constant dense<0.000000e+00> : vector<2x8x8xf32>
    %67 = tpu.matmul %66, %55, %cst_20 {dimension_numbers = #tpu.dot_dimension_numbers<[2], [1], [1], [2], [0, 0, 0, 1, 1, 2], [0], [0]>} : vector<2x8x8xf32>, vector<2x8x8xf32>, vector<2x8x8xf32> -> vector<2x8x8xf32>
    "tpu.trace_stop"() : () -> ()
    %68 = vector.shape_cast %67 : vector<2x8x8xf32> to vector<16x8xf32>
    %c0_21 = arith.constant 0 : index
    %c16 = arith.constant 16 : index
    %69 = vector.load %arg15[%c0_21, %c16] : memref<16x32xf32, #tpu.memory_space<vmem>>, vector<16x8xf32>
    tpu.vector_store %arg15[%c0_21, %c16], %68 {strides = array<i32>} : memref<16x32xf32, #tpu.memory_space<vmem>>, vector<16x8xf32>,
    %70 = vector.extract_strided_slice %7 {offsets = [0, 24], sizes = [16, 8], strides = [1, 1]} : vector<16x32xf32> to vector<16x8xf32>
    %71 = vector.shape_cast %70 : vector<16x8xf32> to vector<2x8x8xf32>
    %72 = vector.extract_strided_slice %8 {offsets = [0, 24], sizes = [16, 8], strides = [1, 1]} : vector<16x32xf32> to vector<16x8xf32>
    %73 = vector.shape_cast %72 : vector<16x8xf32> to vector<2x8x8xf32>
    %74 = vector.extract_strided_slice %9 {offsets = [0, 24], sizes = [16, 8], strides = [1, 1]} : vector<16x32xf32> to vector<16x8xf32>
    %75 = vector.shape_cast %74 : vector<16x8xf32> to vector<2x8x8xf32>
    "tpu.trace_start"() <{level = 10 : i32, message = "bqd,bkd->bqk"}> : () -> ()
    %cst_22 = arith.constant dense<0.000000e+00> : vector<2x8x8xf32>
    %76 = tpu.matmul %71, %73, %cst_22 {dimension_numbers = #tpu.dot_dimension_numbers<[2], [2], [1], [1], [0, 0, 0, 1, 1, 1], [0], [0]>} : vector<2x8x8xf32>, vector<2x8x8xf32>, vector<2x8x8xf32> -> vector<2x8x8xf32>
    "tpu.trace_stop"() : () -> ()
    %cst_23 = arith.constant dense<0xFF800000> : vector<2x8xf32>
    %77 = vector.multi_reduction <maximumf>, %76, %cst_23 [2] : vector<2x8x8xf32> to vector<2x8xf32>
    %78 = vector.shape_cast %77 : vector<2x8xf32> to vector<2x8x1xf32>
    %79 = vector.broadcast %78 : vector<2x8x1xf32> to vector<2x8x8xf32>
    %80 = arith.subf %76, %79 : vector<2x8x8xf32>
    %81 = math.exp %80 : vector<2x8x8xf32>
    %cst_24 = arith.constant dense<0.000000e+00> : vector<2x8xf32>
    %82 = vector.multi_reduction <add>, %81, %cst_24 [2] : vector<2x8x8xf32> to vector<2x8xf32>
    %83 = vector.shape_cast %82 : vector<2x8xf32> to vector<2x8x1xf32>
    %84 = tpu.reciprocal %83 : vector<2x8x1xf32> -> vector<2x8x1xf32>
    %85 = vector.broadcast %84 : vector<2x8x1xf32> to vector<2x8x8xf32>
    %86 = arith.mulf %81, %85 : vector<2x8x8xf32>
    "tpu.trace_start"() <{level = 10 : i32, message = "bqk,bkd->bqd"}> : () -> ()
    %cst_25 = arith.constant dense<0.000000e+00> : vector<2x8x8xf32>
    %87 = tpu.matmul %86, %75, %cst_25 {dimension_numbers = #tpu.dot_dimension_numbers<[2], [1], [1], [2], [0, 0, 0, 1, 1, 2], [0], [0]>} : vector<2x8x8xf32>, vector<2x8x8xf32>, vector<2x8x8xf32> -> vector<2x8x8xf32>
    "tpu.trace_stop"() : () -> ()
    %88 = vector.shape_cast %87 : vector<2x8x8xf32> to vector<16x8xf32>
    %c0_26 = arith.constant 0 : index
    %c24 = arith.constant 24 : index
    %89 = vector.load %arg15[%c0_26, %c24] : memref<16x32xf32, #tpu.memory_space<vmem>>, vector<16x8xf32>
    tpu.vector_store %arg15[%c0_26, %c24], %88 {strides = array<i32>} : memref<16x32xf32, #tpu.memory_space<vmem>>, vector<16x8xf32>,
    %c0_27 = arith.constant 0 : index
    %c0_28 = arith.constant 0 : index
    %90 = vector.load %arg15[%c0_27, %c0_28] : memref<16x32xf32, #tpu.memory_space<vmem>>, vector<16x32xf32>
    %c0_29 = arith.constant 0 : index
    %c0_30 = arith.constant 0 : index
    %91 = vector.load %arg4[%c0_29, %c0_30] : memref<32x32xf32, #tpu.memory_space<vmem>>, vector<32x32xf32>
    %cst_31 = arith.constant dense<0.000000e+00> : vector<16x32xf32>
    %92 = tpu.matmul %90, %91, %cst_31 {dimension_numbers = #tpu.dot_dimension_numbers<[1], [0], [0], [1], [0, 0, 1, 1], [], []>} : vector<16x32xf32>, vector<32x32xf32>, vector<16x32xf32> -> vector<16x32xf32>
    %c0_32 = arith.constant 0 : index
    %c0_33 = arith.constant 0 : index
    %93 = vector.load %arg5[%c0_32, %c0_33] : memref<1x32xf32, #tpu.memory_space<vmem>>, vector<1x32xf32>
    %94 = vector.broadcast %93 : vector<1x32xf32> to vector<16x32xf32>
    %95 = arith.addf %92, %94 : vector<16x32xf32>
    %96 = arith.addf %1, %95 : vector<16x32xf32>
    %c0_34 = arith.constant 0 : index
    %c0_35 = arith.constant 0 : index
    %97 = vector.load %arg10[%c0_34, %c0_35] : memref<1x32xf32, #tpu.memory_space<vmem>>, vector<1x32xf32>
    %c0_36 = arith.constant 0 : index
    %c0_37 = arith.constant 0 : index
    %98 = vector.load %arg11[%c0_36, %c0_37] : memref<1x32xf32, #tpu.memory_space<vmem>>, vector<1x32xf32>
    %cst_38 = arith.constant dense<0.000000e+00> : vector<16xf32>
    %99 = vector.multi_reduction <add>, %96, %cst_38 [1] : vector<16x32xf32> to vector<16xf32>
    %100 = vector.shape_cast %99 : vector<16xf32> to vector<16x1xf32>
    %cst_39 = arith.constant 3.200000e+01 : f32
    %101 = vector.broadcast %cst_39 : f32 to vector<16x1xf32>
    %102 = arith.divf %100, %101 : vector<16x1xf32>
    %103 = vector.broadcast %102 : vector<16x1xf32> to vector<16x32xf32>
    %104 = arith.subf %96, %103 : vector<16x32xf32>
    %105 = arith.mulf %104, %104 : vector<16x32xf32>
    %cst_40 = arith.constant dense<0.000000e+00> : vector<16xf32>
    %106 = vector.multi_reduction <add>, %105, %cst_40 [1] : vector<16x32xf32> to vector<16xf32>
    %107 = vector.shape_cast %106 : vector<16xf32> to vector<16x1xf32>
    %cst_41 = arith.constant 3.200000e+01 : f32
    %108 = vector.broadcast %cst_41 : f32 to vector<16x1xf32>
    %109 = arith.divf %107, %108 : vector<16x1xf32>
    %110 = vector.broadcast %102 : vector<16x1xf32> to vector<16x32xf32>
    %111 = arith.subf %96, %110 : vector<16x32xf32>
    %cst_42 = arith.constant 9.99999974E-6 : f32
    %112 = vector.broadcast %cst_42 : f32 to vector<16x1xf32>
    %113 = arith.addf %109, %112 : vector<16x1xf32>
    %114 = math.rsqrt %113 : vector<16x1xf32>
    %115 = vector.broadcast %114 : vector<16x1xf32> to vector<16x32xf32>
    %116 = arith.mulf %111, %115 : vector<16x32xf32>
    %117 = vector.broadcast %97 : vector<1x32xf32> to vector<16x32xf32>
    %118 = arith.mulf %116, %117 : vector<16x32xf32>
    %119 = vector.broadcast %98 : vector<1x32xf32> to vector<16x32xf32>
    %120 = arith.addf %118, %119 : vector<16x32xf32>
    %c0_43 = arith.constant 0 : index
    %c0_44 = arith.constant 0 : index
    %121 = vector.load %arg6[%c0_43, %c0_44] : memref<32x64xf32, #tpu.memory_space<vmem>>, vector<32x64xf32>
    %cst_45 = arith.constant dense<0.000000e+00> : vector<16x64xf32>
    %122 = tpu.matmul %120, %121, %cst_45 {dimension_numbers = #tpu.dot_dimension_numbers<[1], [0], [0], [1], [0, 0, 1, 1], [], []>} : vector<16x32xf32>, vector<32x64xf32>, vector<16x64xf32> -> vector<16x64xf32>
    %c0_46 = arith.constant 0 : index
    %c0_47 = arith.constant 0 : index
    %123 = vector.load %arg7[%c0_46, %c0_47] : memref<1x64xf32, #tpu.memory_space<vmem>>, vector<1x64xf32>
    %124 = vector.broadcast %123 : vector<1x64xf32> to vector<16x64xf32>
    %125 = arith.addf %122, %124 : vector<16x64xf32>
    %cst_48 = arith.constant 0.000000e+00 : f32
    %126 = vector.broadcast %cst_48 : f32 to vector<16x64xf32>
    %127 = arith.maximumf %125, %126 : vector<16x64xf32>
    %c0_49 = arith.constant 0 : index
    %c0_50 = arith.constant 0 : index
    %128 = vector.load %arg8[%c0_49, %c0_50] : memref<64x32xf32, #tpu.memory_space<vmem>>, vector<64x32xf32>
    %cst_51 = arith.constant dense<0.000000e+00> : vector<16x32xf32>
    %129 = tpu.matmul %127, %128, %cst_51 {dimension_numbers = #tpu.dot_dimension_numbers<[1], [0], [0], [1], [0, 0, 1, 1], [], []>} : vector<16x64xf32>, vector<64x32xf32>, vector<16x32xf32> -> vector<16x32xf32>
    %c0_52 = arith.constant 0 : index
    %c0_53 = arith.constant 0 : index
    %130 = vector.load %arg9[%c0_52, %c0_53] : memref<1x32xf32, #tpu.memory_space<vmem>>, vector<1x32xf32>
    %131 = vector.broadcast %130 : vector<1x32xf32> to vector<16x32xf32>
    %132 = arith.addf %129, %131 : vector<16x32xf32>
    %133 = arith.addf %120, %132 : vector<16x32xf32>
    %c0_54 = arith.constant 0 : index
    %c0_55 = arith.constant 0 : index
    %134 = vector.load %arg12[%c0_54, %c0_55] : memref<1x32xf32, #tpu.memory_space<vmem>>, vector<1x32xf32>
    %c0_56 = arith.constant 0 : index
    %c0_57 = arith.constant 0 : index
    %135 = vector.load %arg13[%c0_56, %c0_57] : memref<1x32xf32, #tpu.memory_space<vmem>>, vector<1x32xf32>
    %cst_58 = arith.constant dense<0.000000e+00> : vector<16xf32>
    %136 = vector.multi_reduction <add>, %133, %cst_58 [1] : vector<16x32xf32> to vector<16xf32>
    %137 = vector.shape_cast %136 : vector<16xf32> to vector<16x1xf32>
    %cst_59 = arith.constant 3.200000e+01 : f32
    %138 = vector.broadcast %cst_59 : f32 to vector<16x1xf32>
    %139 = arith.divf %137, %138 : vector<16x1xf32>
    %140 = vector.broadcast %139 : vector<16x1xf32> to vector<16x32xf32>
    %141 = arith.subf %133, %140 : vector<16x32xf32>
    %142 = arith.mulf %141, %141 : vector<16x32xf32>
    %cst_60 = arith.constant dense<0.000000e+00> : vector<16xf32>
    %143 = vector.multi_reduction <add>, %142, %cst_60 [1] : vector<16x32xf32> to vector<16xf32>
    %144 = vector.shape_cast %143 : vector<16xf32> to vector<16x1xf32>
    %cst_61 = arith.constant 3.200000e+01 : f32
    %145 = vector.broadcast %cst_61 : f32 to vector<16x1xf32>
    %146 = arith.divf %144, %145 : vector<16x1xf32>
    %147 = vector.broadcast %139 : vector<16x1xf32> to vector<16x32xf32>
    %148 = arith.subf %133, %147 : vector<16x32xf32>
    %cst_62 = arith.constant 9.99999974E-6 : f32
    %149 = vector.broadcast %cst_62 : f32 to vector<16x1xf32>
    %150 = arith.addf %146, %149 : vector<16x1xf32>
    %151 = math.rsqrt %150 : vector<16x1xf32>
    %152 = vector.broadcast %151 : vector<16x1xf32> to vector<16x32xf32>
    %153 = arith.mulf %148, %152 : vector<16x32xf32>
    %154 = vector.broadcast %134 : vector<1x32xf32> to vector<16x32xf32>
    %155 = arith.mulf %153, %154 : vector<16x32xf32>
    %156 = vector.broadcast %135 : vector<1x32xf32> to vector<16x32xf32>
    %157 = arith.addf %155, %156 : vector<16x32xf32>
    %158 = vector.shape_cast %157 : vector<16x32xf32> to vector<2x8x32xf32>
    %c0_63 = arith.constant 0 : index
    %c0_64 = arith.constant 0 : index
    %c0_65 = arith.constant 0 : index
    %159 = vector.load %arg14[%c0_63, %c0_64, %c0_65] : memref<2x8x32xf32, #tpu.memory_space<vmem>>, vector<2x8x32xf32>
    tpu.vector_store %arg14[%c0_63, %c0_64, %c0_65], %158 {strides = array<i32>} : memref<2x8x32xf32, #tpu.memory_space<vmem>>, vector<2x8x32xf32>,
    return
  }
  func.func @transform_0(%arg0: i32) -> (i32, i32, i32) {
    %c0_i32 = arith.constant 0 : i32
    %c0_i32_0 = arith.constant 0 : i32
    %c0_i32_1 = arith.constant 0 : i32
    return %arg0, %c0_i32, %c0_i32_0 : i32, i32, i32
  }
  func.func @transform_1(%arg0: i32) -> (i32, i32) {
    %c0_i32 = arith.constant 0 : i32
    %c0_i32_0 = arith.constant 0 : i32
    %c0_i32_1 = arith.constant 0 : i32
    return %c0_i32, %c0_i32_0 : i32, i32
  }
  func.func @transform_2(%arg0: i32) -> (i32, i32) {
    %c0_i32 = arith.constant 0 : i32
    %c0_i32_0 = arith.constant 0 : i32
    %c0_i32_1 = arith.constant 0 : i32
    return %c0_i32, %c0_i32_0 : i32, i32
  }
  func.func @transform_3(%arg0: i32) -> (i32, i32) {
    %c0_i32 = arith.constant 0 : i32
    %c0_i32_0 = arith.constant 0 : i32
    %c0_i32_1 = arith.constant 0 : i32
    return %c0_i32, %c0_i32_0 : i32, i32
  }
  func.func @transform_4(%arg0: i32) -> (i32, i32) {
    %c0_i32 = arith.constant 0 : i32
    %c0_i32_0 = arith.constant 0 : i32
    %c0_i32_1 = arith.constant 0 : i32
    return %c0_i32, %c0_i32_0 : i32, i32
  }
  func.func @transform_5(%arg0: i32) -> (i32, i32) {
    %c0_i32 = arith.constant 0 : i32
    %c0_i32_0 = arith.constant 0 : i32
    %c0_i32_1 = arith.constant 0 : i32
    return %c0_i32, %c0_i32_0 : i32, i32
  }
  func.func @transform_6(%arg0: i32) -> (i32, i32) {
    %c0_i32 = arith.constant 0 : i32
    %c0_i32_0 = arith.constant 0 : i32
    %c0_i32_1 = arith.constant 0 : i32
    return %c0_i32, %c0_i32_0 : i32, i32
  }
  func.func @transform_7(%arg0: i32) -> (i32, i32) {
    %c0_i32 = arith.constant 0 : i32
    %c0_i32_0 = arith.constant 0 : i32
    %c0_i32_1 = arith.constant 0 : i32
    return %c0_i32, %c0_i32_0 : i32, i32
  }
  func.func @transform_8(%arg0: i32) -> (i32, i32) {
    %c0_i32 = arith.constant 0 : i32
    %c0_i32_0 = arith.constant 0 : i32
    %c0_i32_1 = arith.constant 0 : i32
    return %c0_i32, %c0_i32_0 : i32, i32
  }
  func.func @transform_9(%arg0: i32) -> (i32, i32) {
    %c0_i32 = arith.constant 0 : i32
    %c0_i32_0 = arith.constant 0 : i32
    %c0_i32_1 = arith.constant 0 : i32
    return %c0_i32, %c0_i32_0 : i32, i32
  }
  func.func @transform_10(%arg0: i32) -> (i32, i32) {
    %c0_i32 = arith.constant 0 : i32
    %c0_i32_0 = arith.constant 0 : i32
    %c0_i32_1 = arith.constant 0 : i32
    return %c0_i32, %c0_i32_0 : i32, i32
  }
  func.func @transform_11(%arg0: i32) -> (i32, i32) {
    %c0_i32 = arith.constant 0 : i32
    %c0_i32_0 = arith.constant 0 : i32
    %c0_i32_1 = arith.constant 0 : i32
    return %c0_i32, %c0_i32_0 : i32, i32
  }
  func.func @transform_12(%arg0: i32) -> (i32, i32) {
    %c0_i32 = arith.constant 0 : i32
    %c0_i32_0 = arith.constant 0 : i32
    %c0_i32_1 = arith.constant 0 : i32
    return %c0_i32, %c0_i32_0 : i32, i32
  }
  func.func @transform_13(%arg0: i32) -> (i32, i32, i32) {
    %c0_i32 = arith.constant 0 : i32
    %c0_i32_0 = arith.constant 0 : i32
    %c0_i32_1 = arith.constant 0 : i32
    return %arg0, %c0_i32, %c0_i32_0 : i32, i32, i32
  }
}

module attributes {stable_mosaic.version = 11 : i64} {
  func.func @_transformer_kernel(%arg0: i32, %arg1: memref<2x8x32xf32, #tpu.memory_space<vmem>>, %arg2: memref<32x96xf32, #tpu.memory_space<vmem>>, %arg3: memref<1x96xf32, #tpu.memory_space<vmem>>, %arg4: memref<32x32xf32, #tpu.memory_space<vmem>>, %arg5: memref<1x32xf32, #tpu.memory_space<vmem>>, %arg6: memref<32x64xf32, #tpu.memory_space<vmem>>, %arg7: memref<1x64xf32, #tpu.memory_space<vmem>>, %arg8: memref<64x32xf32, #tpu.memory_space<vmem>>, %arg9: memref<1x32xf32, #tpu.memory_space<vmem>>, %arg10: memref<1x32xf32, #tpu.memory_space<vmem>>, %arg11: memref<1x32xf32, #tpu.memory_space<vmem>>, %arg12: memref<1x32xf32, #tpu.memory_space<vmem>>, %arg13: memref<1x32xf32, #tpu.memory_space<vmem>>, %arg14: memref<2x8x32xf32, #tpu.memory_space<vmem>>, %arg15: memref<16x32xf32, #tpu.memory_space<vmem>>) attributes {dimension_semantics = [#tpu.dimension_semantics<parallel>], iteration_bounds = array<i64: 1>, scalar_prefetch = 0 : i64, scratch_operands = 1 : i64, tpu.core_type = #tpu.core_type<tc>, window_params = [{transform_indices = @transform_0, window_bounds = array<i64: 2, 8, 32>}, {pipeline_mode = #tpu.pipeline_mode<synchronous>, transform_indices = @transform_1, window_bounds = array<i64: 32, 96>}, {pipeline_mode = #tpu.pipeline_mode<synchronous>, transform_indices = @transform_2, window_bounds = array<i64: 1, 96>}, {pipeline_mode = #tpu.pipeline_mode<synchronous>, transform_indices = @transform_3, window_bounds = array<i64: 32, 32>}, {pipeline_mode = #tpu.pipeline_mode<synchronous>, transform_indices = @transform_4, window_bounds = array<i64: 1, 32>}, {pipeline_mode = #tpu.pipeline_mode<synchronous>, transform_indices = @transform_5, window_bounds = array<i64: 32, 64>}, {pipeline_mode = #tpu.pipeline_mode<synchronous>, transform_indices = @transform_6, window_bounds = array<i64: 1, 64>}, {pipeline_mode = #tpu.pipeline_mode<synchronous>, transform_indices = @transform_7, window_bounds = array<i64: 64, 32>}, {pipeline_mode = #tpu.pipeline_mode<synchronous>, transform_indices = @transform_8, window_bounds = array<i64: 1, 32>}, {pipeline_mode = #tpu.pipeline_mode<synchronous>, transform_indices = @transform_9, window_bounds = array<i64: 1, 32>}, {pipeline_mode = #tpu.pipeline_mode<synchronous>, transform_indices = @transform_10, window_bounds = array<i64: 1, 32>}, {pipeline_mode = #tpu.pipeline_mode<synchronous>, transform_indices = @transform_11, window_bounds = array<i64: 1, 32>}, {pipeline_mode = #tpu.pipeline_mode<synchronous>, transform_indices = @transform_12, window_bounds = array<i64: 1, 32>}, {transform_indices = @transform_13, window_bounds = array<i64: 2, 8, 32>}]} {
    %c0 = arith.constant 0 : index
    %c0_0 = arith.constant 0 : index
    %c0_1 = arith.constant 0 : index
    %0 = vector.load %arg1[%c0, %c0_0, %c0_1] : memref<2x8x32xf32, #tpu.memory_space<vmem>>, vector<2x8x32xf32>
    %1 = vector.shape_cast %0 : vector<2x8x32xf32> to vector<16x32xf32>
    %c0_2 = arith.constant 0 : index
    %c0_3 = arith.constant 0 : index
    %2 = vector.load %arg2[%c0_2, %c0_3] : memref<32x96xf32, #tpu.memory_space<vmem>>, vector<32x96xf32>
    %cst = arith.constant dense<0.000000e+00> : vector<16x96xf32>
    %3 = tpu.matmul %1, %2, %cst {dimension_numbers = #tpu.dot_dimension_numbers<[1], [0], [0], [1], [0, 0, 1, 1], [], []>} : vector<16x32xf32>, vector<32x96xf32>, vector<16x96xf32> -> vector<16x96xf32>
    %c0_4 = arith.constant 0 : index
    %c0_5 = arith.constant 0 : index
    %4 = vector.load %arg3[%c0_4, %c0_5] : memref<1x96xf32, #tpu.memory_space<vmem>>, vector<1x96xf32>
    %5 = vector.broadcast %4 : vector<1x96xf32> to vector<16x96xf32>
    %6 = arith.addf %3, %5 : vector<16x96xf32>
    %7 = vector.extract_strided_slice %6 {offsets = [0, 0], sizes = [16, 32], strides = [1, 1]} : vector<16x96xf32> to vector<16x32xf32>
    %8 = vector.extract_strided_slice %6 {offsets = [0, 32], sizes = [16, 32], strides = [1, 1]} : vector<16x96xf32> to vector<16x32xf32>
    %9 = vector.extract_strided_slice %6 {offsets = [0, 64], sizes = [16, 32], strides = [1, 1]} : vector<16x96xf32> to vector<16x32xf32>
    %10 = vector.extract_strided_slice %7 {offsets = [0, 0], sizes = [16, 8], strides = [1, 1]} : vector<16x32xf32> to vector<16x8xf32>
    %11 = vector.shape_cast %10 : vector<16x8xf32> to vector<2x8x8xf32>
    %12 = vector.extract_strided_slice %8 {offsets = [0, 0], sizes = [16, 8], strides = [1, 1]} : vector<16x32xf32> to vector<16x8xf32>
    %13 = vector.shape_cast %12 : vector<16x8xf32> to vector<2x8x8xf32>
    %14 = vector.extract_strided_slice %9 {offsets = [0, 0], sizes = [16, 8], strides = [1, 1]} : vector<16x32xf32> to vector<16x8xf32>
    %15 = vector.shape_cast %14 : vector<16x8xf32> to vector<2x8x8xf32>
    "tpu.trace_start"() <{level = 10 : i32, message = "bqd,bkd->bqk"}> : () -> ()
    %cst_6 = arith.constant dense<0.000000e+00> : vector<2x8x8xf32>
    %16 = tpu.matmul %11, %13, %cst_6 {dimension_numbers = #tpu.dot_dimension_numbers<[2], [2], [1], [1], [0, 0, 0, 1, 1, 1], [0], [0]>} : vector<2x8x8xf32>, vector<2x8x8xf32>, vector<2x8x8xf32> -> vector<2x8x8xf32>
    "tpu.trace_stop"() : () -> ()
    %cst_7 = arith.constant dense<0xFF800000> : vector<2x8xf32>
    %17 = vector.multi_reduction <maximumf>, %16, %cst_7 [2] : vector<2x8x8xf32> to vector<2x8xf32>
    %18 = vector.shape_cast %17 : vector<2x8xf32> to vector<2x8x1xf32>
    %19 = vector.broadcast %18 : vector<2x8x1xf32> to vector<2x8x8xf32>
    %20 = arith.subf %16, %19 : vector<2x8x8xf32>
    %21 = math.exp %20 : vector<2x8x8xf32>
    %cst_8 = arith.constant dense<0.000000e+00> : vector<2x8xf32>
    %22 = vector.multi_reduction <add>, %21, %cst_8 [2] : vector<2x8x8xf32> to vector<2x8xf32>
    %23 = vector.shape_cast %22 : vector<2x8xf32> to vector<2x8x1xf32>
    %24 = tpu.reciprocal %23 : vector<2x8x1xf32> -> vector<2x8x1xf32>
    %25 = vector.broadcast %24 : vector<2x8x1xf32> to vector<2x8x8xf32>
    %26 = arith.mulf %21, %25 : vector<2x8x8xf32>
    "tpu.trace_start"() <{level = 10 : i32, message = "bqk,bkd->bqd"}> : () -> ()
    %cst_9 = arith.constant dense<0.000000e+00> : vector<2x8x8xf32>
    %27 = tpu.matmul %26, %15, %cst_9 {dimension_numbers = #tpu.dot_dimension_numbers<[2], [1], [1], [2], [0, 0, 0, 1, 1, 2], [0], [0]>} : vector<2x8x8xf32>, vector<2x8x8xf32>, vector<2x8x8xf32> -> vector<2x8x8xf32>
    "tpu.trace_stop"() : () -> ()
    %28 = vector.shape_cast %27 : vector<2x8x8xf32> to vector<16x8xf32>
    %c0_10 = arith.constant 0 : index
    %c0_11 = arith.constant 0 : index
    %29 = vector.load %arg15[%c0_10, %c0_11] : memref<16x32xf32, #tpu.memory_space<vmem>>, vector<16x8xf32>
    tpu.vector_store %arg15[%c0_10, %c0_11], %28 {strides = array<i32>} : memref<16x32xf32, #tpu.memory_space<vmem>>, vector<16x8xf32>,
    %30 = vector.extract_strided_slice %7 {offsets = [0, 8], sizes = [16, 8], strides = [1, 1]} : vector<16x32xf32> to vector<16x8xf32>
    %31 = vector.shape_cast %30 : vector<16x8xf32> to vector<2x8x8xf32>
    %32 = vector.extract_strided_slice %8 {offsets = [0, 8], sizes = [16, 8], strides = [1, 1]} : vector<16x32xf32> to vector<16x8xf32>
    %33 = vector.shape_cast %32 : vector<16x8xf32> to vector<2x8x8xf32>
    %34 = vector.extract_strided_slice %9 {offsets = [0, 8], sizes = [16, 8], strides = [1, 1]} : vector<16x32xf32> to vector<16x8xf32>
    %35 = vector.shape_cast %34 : vector<16x8xf32> to vector<2x8x8xf32>
    "tpu.trace_start"() <{level = 10 : i32, message = "bqd,bkd->bqk"}> : () -> ()
    %cst_12 = arith.constant dense<0.000000e+00> : vector<2x8x8xf32>
    %36 = tpu.matmul %31, %33, %cst_12 {dimension_numbers = #tpu.dot_dimension_numbers<[2], [2], [1], [1], [0, 0, 0, 1, 1, 1], [0], [0]>} : vector<2x8x8xf32>, vector<2x8x8xf32>, vector<2x8x8xf32> -> vector<2x8x8xf32>
    "tpu.trace_stop"() : () -> ()
    %cst_13 = arith.constant dense<0xFF800000> : vector<2x8xf32>
    %37 = vector.multi_reduction <maximumf>, %36, %cst_13 [2] : vector<2x8x8xf32> to vector<2x8xf32>
    %38 = vector.shape_cast %37 : vector<2x8xf32> to vector<2x8x1xf32>
    %39 = vector.broadcast %38 : vector<2x8x1xf32> to vector<2x8x8xf32>
    %40 = arith.subf %36, %39 : vector<2x8x8xf32>
    %41 = math.exp %40 : vector<2x8x8xf32>
    %cst_14 = arith.constant dense<0.000000e+00> : vector<2x8xf32>
    %42 = vector.multi_reduction <add>, %41, %cst_14 [2] : vector<2x8x8xf32> to vector<2x8xf32>
    %43 = vector.shape_cast %42 : vector<2x8xf32> to vector<2x8x1xf32>
    %44 = tpu.reciprocal %43 : vector<2x8x1xf32> -> vector<2x8x1xf32>
    %45 = vector.broadcast %44 : vector<2x8x1xf32> to vector<2x8x8xf32>
    %46 = arith.mulf %41, %45 : vector<2x8x8xf32>
    "tpu.trace_start"() <{level = 10 : i32, message = "bqk,bkd->bqd"}> : () -> ()
    %cst_15 = arith.constant dense<0.000000e+00> : vector<2x8x8xf32>
    %47 = tpu.matmul %46, %35, %cst_15 {dimension_numbers = #tpu.dot_dimension_numbers<[2], [1], [1], [2], [0, 0, 0, 1, 1, 2], [0], [0]>} : vector<2x8x8xf32>, vector<2x8x8xf32>, vector<2x8x8xf32> -> vector<2x8x8xf32>
    "tpu.trace_stop"() : () -> ()
    %48 = vector.shape_cast %47 : vector<2x8x8xf32> to vector<16x8xf32>
    %c0_16 = arith.constant 0 : index
    %c8 = arith.constant 8 : index
    %49 = vector.load %arg15[%c0_16, %c8] : memref<16x32xf32, #tpu.memory_space<vmem>>, vector<16x8xf32>
    tpu.vector_store %arg15[%c0_16, %c8], %48 {strides = array<i32>} : memref<16x32xf32, #tpu.memory_space<vmem>>, vector<16x8xf32>,
    %50 = vector.extract_strided_slice %7 {offsets = [0, 16], sizes = [16, 8], strides = [1, 1]} : vector<16x32xf32> to vector<16x8xf32>
    %51 = vector.shape_cast %50 : vector<16x8xf32> to vector<2x8x8xf32>
    %52 = vector.extract_strided_slice %8 {offsets = [0, 16], sizes = [16, 8], strides = [1, 1]} : vector<16x32xf32> to vector<16x8xf32>
    %53 = vector.shape_cast %52 : vector<16x8xf32> to vector<2x8x8xf32>
    %54 = vector.extract_strided_slice %9 {offsets = [0, 16], sizes = [16, 8], strides = [1, 1]} : vector<16x32xf32> to vector<16x8xf32>
    %55 = vector.shape_cast %54 : vector<16x8xf32> to vector<2x8x8xf32>
    "tpu.trace_start"() <{level = 10 : i32, message = "bqd,bkd->bqk"}> : () -> ()
    %cst_17 = arith.constant dense<0.000000e+00> : vector<2x8x8xf32>
    %56 = tpu.matmul %51, %53, %cst_17 {dimension_numbers = #tpu.dot_dimension_numbers<[2], [2], [1], [1], [0, 0, 0, 1, 1, 1], [0], [0]>} : vector<2x8x8xf32>, vector<2x8x8xf32>, vector<2x8x8xf32> -> vector<2x8x8xf32>
    "tpu.trace_stop"() : () -> ()
    %cst_18 = arith.constant dense<0xFF800000> : vector<2x8xf32>
    %57 = vector.multi_reduction <maximumf>, %56, %cst_18 [2] : vector<2x8x8xf32> to vector<2x8xf32>
    %58 = vector.shape_cast %57 : vector<2x8xf32> to vector<2x8x1xf32>
    %59 = vector.broadcast %58 : vector<2x8x1xf32> to vector<2x8x8xf32>
    %60 = arith.subf %56, %59 : vector<2x8x8xf32>
    %61 = math.exp %60 : vector<2x8x8xf32>
    %cst_19 = arith.constant dense<0.000000e+00> : vector<2x8xf32>
    %62 = vector.multi_reduction <add>, %61, %cst_19 [2] : vector<2x8x8xf32> to vector<2x8xf32>
    %63 = vector.shape_cast %62 : vector<2x8xf32> to vector<2x8x1xf32>
    %64 = tpu.reciprocal %63 : vector<2x8x1xf32> -> vector<2x8x1xf32>
    %65 = vector.broadcast %64 : vector<2x8x1xf32> to vector<2x8x8xf32>
    %66 = arith.mulf %61, %65 : vector<2x8x8xf32>
    "tpu.trace_start"() <{level = 10 : i32, message = "bqk,bkd->bqd"}> : () -> ()
    %cst_20 = arith.constant dense<0.000000e+00> : vector<2x8x8xf32>
    %67 = tpu.matmul %66, %55, %cst_20 {dimension_numbers = #tpu.dot_dimension_numbers<[2], [1], [1], [2], [0, 0, 0, 1, 1, 2], [0], [0]>} : vector<2x8x8xf32>, vector<2x8x8xf32>, vector<2x8x8xf32> -> vector<2x8x8xf32>
    "tpu.trace_stop"() : () -> ()
    %68 = vector.shape_cast %67 : vector<2x8x8xf32> to vector<16x8xf32>
    %c0_21 = arith.constant 0 : index
    %c16 = arith.constant 16 : index
    %69 = vector.load %arg15[%c0_21, %c16] : memref<16x32xf32, #tpu.memory_space<vmem>>, vector<16x8xf32>
    tpu.vector_store %arg15[%c0_21, %c16], %68 {strides = array<i32>} : memref<16x32xf32, #tpu.memory_space<vmem>>, vector<16x8xf32>,
    %70 = vector.extract_strided_slice %7 {offsets = [0, 24], sizes = [16, 8], strides = [1, 1]} : vector<16x32xf32> to vector<16x8xf32>
    %71 = vector.shape_cast %70 : vector<16x8xf32> to vector<2x8x8xf32>
    %72 = vector.extract_strided_slice %8 {offsets = [0, 24], sizes = [16, 8], strides = [1, 1]} : vector<16x32xf32> to vector<16x8xf32>
    %73 = vector.shape_cast %72 : vector<16x8xf32> to vector<2x8x8xf32>
    %74 = vector.extract_strided_slice %9 {offsets = [0, 24], sizes = [16, 8], strides = [1, 1]} : vector<16x32xf32> to vector<16x8xf32>
    %75 = vector.shape_cast %74 : vector<16x8xf32> to vector<2x8x8xf32>
    "tpu.trace_start"() <{level = 10 : i32, message = "bqd,bkd->bqk"}> : () -> ()
    %cst_22 = arith.constant dense<0.000000e+00> : vector<2x8x8xf32>
    %76 = tpu.matmul %71, %73, %cst_22 {dimension_numbers = #tpu.dot_dimension_numbers<[2], [2], [1], [1], [0, 0, 0, 1, 1, 1], [0], [0]>} : vector<2x8x8xf32>, vector<2x8x8xf32>, vector<2x8x8xf32> -> vector<2x8x8xf32>
    "tpu.trace_stop"() : () -> ()
    %cst_23 = arith.constant dense<0xFF800000> : vector<2x8xf32>
    %77 = vector.multi_reduction <maximumf>, %76, %cst_23 [2] : vector<2x8x8xf32> to vector<2x8xf32>
    %78 = vector.shape_cast %77 : vector<2x8xf32> to vector<2x8x1xf32>
    %79 = vector.broadcast %78 : vector<2x8x1xf32> to vector<2x8x8xf32>
    %80 = arith.subf %76, %79 : vector<2x8x8xf32>
    %81 = math.exp %80 : vector<2x8x8xf32>
    %cst_24 = arith.constant dense<0.000000e+00> : vector<2x8xf32>
    %82 = vector.multi_reduction <add>, %81, %cst_24 [2] : vector<2x8x8xf32> to vector<2x8xf32>
    %83 = vector.shape_cast %82 : vector<2x8xf32> to vector<2x8x1xf32>
    %84 = tpu.reciprocal %83 : vector<2x8x1xf32> -> vector<2x8x1xf32>
    %85 = vector.broadcast %84 : vector<2x8x1xf32> to vector<2x8x8xf32>
    %86 = arith.mulf %81, %85 : vector<2x8x8xf32>
    "tpu.trace_start"() <{level = 10 : i32, message = "bqk,bkd->bqd"}> : () -> ()
    %cst_25 = arith.constant dense<0.000000e+00> : vector<2x8x8xf32>
    %87 = tpu.matmul %86, %75, %cst_25 {dimension_numbers = #tpu.dot_dimension_numbers<[2], [1], [1], [2], [0, 0, 0, 1, 1, 2], [0], [0]>} : vector<2x8x8xf32>, vector<2x8x8xf32>, vector<2x8x8xf32> -> vector<2x8x8xf32>
    "tpu.trace_stop"() : () -> ()
    %88 = vector.shape_cast %87 : vector<2x8x8xf32> to vector<16x8xf32>
    %c0_26 = arith.constant 0 : index
    %c24 = arith.constant 24 : index
    %89 = vector.load %arg15[%c0_26, %c24] : memref<16x32xf32, #tpu.memory_space<vmem>>, vector<16x8xf32>
    tpu.vector_store %arg15[%c0_26, %c24], %88 {strides = array<i32>} : memref<16x32xf32, #tpu.memory_space<vmem>>, vector<16x8xf32>,
    %c0_27 = arith.constant 0 : index
    %c0_28 = arith.constant 0 : index
    %90 = vector.load %arg15[%c0_27, %c0_28] : memref<16x32xf32, #tpu.memory_space<vmem>>, vector<16x32xf32>
    %c0_29 = arith.constant 0 : index
    %c0_30 = arith.constant 0 : index
    %91 = vector.load %arg4[%c0_29, %c0_30] : memref<32x32xf32, #tpu.memory_space<vmem>>, vector<32x32xf32>
    %cst_31 = arith.constant dense<0.000000e+00> : vector<16x32xf32>
    %92 = tpu.matmul %90, %91, %cst_31 {dimension_numbers = #tpu.dot_dimension_numbers<[1], [0], [0], [1], [0, 0, 1, 1], [], []>} : vector<16x32xf32>, vector<32x32xf32>, vector<16x32xf32> -> vector<16x32xf32>
    %c0_32 = arith.constant 0 : index
    %c0_33 = arith.constant 0 : index
    %93 = vector.load %arg5[%c0_32, %c0_33] : memref<1x32xf32, #tpu.memory_space<vmem>>, vector<1x32xf32>
    %94 = vector.broadcast %93 : vector<1x32xf32> to vector<16x32xf32>
    %95 = arith.addf %92, %94 : vector<16x32xf32>
    %96 = arith.addf %1, %95 : vector<16x32xf32>
    %c0_34 = arith.constant 0 : index
    %c0_35 = arith.constant 0 : index
    %97 = vector.load %arg10[%c0_34, %c0_35] : memref<1x32xf32, #tpu.memory_space<vmem>>, vector<1x32xf32>
    %c0_36 = arith.constant 0 : index
    %c0_37 = arith.constant 0 : index
    %98 = vector.load %arg11[%c0_36, %c0_37] : memref<1x32xf32, #tpu.memory_space<vmem>>, vector<1x32xf32>
    %cst_38 = arith.constant dense<0.000000e+00> : vector<16xf32>
    %99 = vector.multi_reduction <add>, %96, %cst_38 [1] : vector<16x32xf32> to vector<16xf32>
    %100 = vector.shape_cast %99 : vector<16xf32> to vector<16x1xf32>
    %cst_39 = arith.constant 3.200000e+01 : f32
    %101 = vector.broadcast %cst_39 : f32 to vector<16x1xf32>
    %102 = arith.divf %100, %101 : vector<16x1xf32>
    %103 = vector.broadcast %102 : vector<16x1xf32> to vector<16x32xf32>
    %104 = arith.subf %96, %103 : vector<16x32xf32>
    %105 = arith.mulf %104, %104 : vector<16x32xf32>
    %cst_40 = arith.constant dense<0.000000e+00> : vector<16xf32>
    %106 = vector.multi_reduction <add>, %105, %cst_40 [1] : vector<16x32xf32> to vector<16xf32>
    %107 = vector.shape_cast %106 : vector<16xf32> to vector<16x1xf32>
    %cst_41 = arith.constant 3.200000e+01 : f32
    %108 = vector.broadcast %cst_41 : f32 to vector<16x1xf32>
    %109 = arith.divf %107, %108 : vector<16x1xf32>
    %110 = vector.broadcast %102 : vector<16x1xf32> to vector<16x32xf32>
    %111 = arith.subf %96, %110 : vector<16x32xf32>
    %cst_42 = arith.constant 9.99999974E-6 : f32
    %112 = vector.broadcast %cst_42 : f32 to vector<16x1xf32>
    %113 = arith.addf %109, %112 : vector<16x1xf32>
    %114 = math.rsqrt %113 : vector<16x1xf32>
    %115 = vector.broadcast %114 : vector<16x1xf32> to vector<16x32xf32>
    %116 = arith.mulf %111, %115 : vector<16x32xf32>
    %117 = vector.broadcast %97 : vector<1x32xf32> to vector<16x32xf32>
    %118 = arith.mulf %116, %117 : vector<16x32xf32>
    %119 = vector.broadcast %98 : vector<1x32xf32> to vector<16x32xf32>
    %120 = arith.addf %118, %119 : vector<16x32xf32>
    %c0_43 = arith.constant 0 : index
    %c0_44 = arith.constant 0 : index
    %121 = vector.load %arg6[%c0_43, %c0_44] : memref<32x64xf32, #tpu.memory_space<vmem>>, vector<32x64xf32>
    %cst_45 = arith.constant dense<0.000000e+00> : vector<16x64xf32>
    %122 = tpu.matmul %120, %121, %cst_45 {dimension_numbers = #tpu.dot_dimension_numbers<[1], [0], [0], [1], [0, 0, 1, 1], [], []>} : vector<16x32xf32>, vector<32x64xf32>, vector<16x64xf32> -> vector<16x64xf32>
    %c0_46 = arith.constant 0 : index
    %c0_47 = arith.constant 0 : index
    %123 = vector.load %arg7[%c0_46, %c0_47] : memref<1x64xf32, #tpu.memory_space<vmem>>, vector<1x64xf32>
    %124 = vector.broadcast %123 : vector<1x64xf32> to vector<16x64xf32>
    %125 = arith.addf %122, %124 : vector<16x64xf32>
    %cst_48 = arith.constant 0.000000e+00 : f32
    %126 = vector.broadcast %cst_48 : f32 to vector<16x64xf32>
    %127 = arith.maximumf %125, %126 : vector<16x64xf32>
    %c0_49 = arith.constant 0 : index
    %c0_50 = arith.constant 0 : index
    %128 = vector.load %arg8[%c0_49, %c0_50] : memref<64x32xf32, #tpu.memory_space<vmem>>, vector<64x32xf32>
    %cst_51 = arith.constant dense<0.000000e+00> : vector<16x32xf32>
    %129 = tpu.matmul %127, %128, %cst_51 {dimension_numbers = #tpu.dot_dimension_numbers<[1], [0], [0], [1], [0, 0, 1, 1], [], []>} : vector<16x64xf32>, vector<64x32xf32>, vector<16x32xf32> -> vector<16x32xf32>
    %c0_52 = arith.constant 0 : index
    %c0_53 = arith.constant 0 : index
    %130 = vector.load %arg9[%c0_52, %c0_53] : memref<1x32xf32, #tpu.memory_space<vmem>>, vector<1x32xf32>
    %131 = vector.broadcast %130 : vector<1x32xf32> to vector<16x32xf32>
    %132 = arith.addf %129, %131 : vector<16x32xf32>
    %133 = arith.addf %120, %132 : vector<16x32xf32>
    %c0_54 = arith.constant 0 : index
    %c0_55 = arith.constant 0 : index
    %134 = vector.load %arg12[%c0_54, %c0_55] : memref<1x32xf32, #tpu.memory_space<vmem>>, vector<1x32xf32>
    %c0_56 = arith.constant 0 : index
    %c0_57 = arith.constant 0 : index
    %135 = vector.load %arg13[%c0_56, %c0_57] : memref<1x32xf32, #tpu.memory_space<vmem>>, vector<1x32xf32>
    %cst_58 = arith.constant dense<0.000000e+00> : vector<16xf32>
    %136 = vector.multi_reduction <add>, %133, %cst_58 [1] : vector<16x32xf32> to vector<16xf32>
    %137 = vector.shape_cast %136 : vector<16xf32> to vector<16x1xf32>
    %cst_59 = arith.constant 3.200000e+01 : f32
    %138 = vector.broadcast %cst_59 : f32 to vector<16x1xf32>
    %139 = arith.divf %137, %138 : vector<16x1xf32>
    %140 = vector.broadcast %139 : vector<16x1xf32> to vector<16x32xf32>
    %141 = arith.subf %133, %140 : vector<16x32xf32>
    %142 = arith.mulf %141, %141 : vector<16x32xf32>
    %cst_60 = arith.constant dense<0.000000e+00> : vector<16xf32>
    %143 = vector.multi_reduction <add>, %142, %cst_60 [1] : vector<16x32xf32> to vector<16xf32>
    %144 = vector.shape_cast %143 : vector<16xf32> to vector<16x1xf32>
    %cst_61 = arith.constant 3.200000e+01 : f32
    %145 = vector.broadcast %cst_61 : f32 to vector<16x1xf32>
    %146 = arith.divf %144, %145 : vector<16x1xf32>
    %147 = vector.broadcast %139 : vector<16x1xf32> to vector<16x32xf32>
    %148 = arith.subf %133, %147 : vector<16x32xf32>
    %cst_62 = arith.constant 9.99999974E-6 : f32
    %149 = vector.broadcast %cst_62 : f32 to vector<16x1xf32>
    %150 = arith.addf %146, %149 : vector<16x1xf32>
    %151 = math.rsqrt %150 : vector<16x1xf32>
    %152 = vector.broadcast %151 : vector<16x1xf32> to vector<16x32xf32>
    %153 = arith.mulf %148, %152 : vector<16x32xf32>
    %154 = vector.broadcast %134 : vector<1x32xf32> to vector<16x32xf32>
    %155 = arith.mulf %153, %154 : vector<16x32xf32>
    %156 = vector.broadcast %135 : vector<1x32xf32> to vector<16x32xf32>
    %157 = arith.addf %155, %156 : vector<16x32xf32>
    %158 = vector.shape_cast %157 : vector<16x32xf32> to vector<2x8x32xf32>
    %c0_63 = arith.constant 0 : index
    %c0_64 = arith.constant 0 : index
    %c0_65 = arith.constant 0 : index
    %159 = vector.load %arg14[%c0_63, %c0_64, %c0_65] : memref<2x8x32xf32, #tpu.memory_space<vmem>>, vector<2x8x32xf32>
    tpu.vector_store %arg14[%c0_63, %c0_64, %c0_65], %158 {strides = array<i32>} : memref<2x8x32xf32, #tpu.memory_space<vmem>>, vector<2x8x32xf32>,
    return
  }
  func.func @transform_0(%arg0: i32) -> (i32, i32, i32) {
    %c0_i32 = arith.constant 0 : i32
    %c0_i32_0 = arith.constant 0 : i32
    %c0_i32_1 = arith.constant 0 : i32
    return %arg0, %c0_i32, %c0_i32_0 : i32, i32, i32
  }
  func.func @transform_1(%arg0: i32) -> (i32, i32) {
    %c0_i32 = arith.constant 0 : i32
    %c0_i32_0 = arith.constant 0 : i32
    %c0_i32_1 = arith.constant 0 : i32
    return %c0_i32, %c0_i32_0 : i32, i32
  }
  func.func @transform_2(%arg0: i32) -> (i32, i32) {
    %c0_i32 = arith.constant 0 : i32
    %c0_i32_0 = arith.constant 0 : i32
    %c0_i32_1 = arith.constant 0 : i32
    return %c0_i32, %c0_i32_0 : i32, i32
  }
  func.func @transform_3(%arg0: i32) -> (i32, i32) {
    %c0_i32 = arith.constant 0 : i32
    %c0_i32_0 = arith.constant 0 : i32
    %c0_i32_1 = arith.constant 0 : i32
    return %c0_i32, %c0_i32_0 : i32, i32
  }
  func.func @transform_4(%arg0: i32) -> (i32, i32) {
    %c0_i32 = arith.constant 0 : i32
    %c0_i32_0 = arith.constant 0 : i32
    %c0_i32_1 = arith.constant 0 : i32
    return %c0_i32, %c0_i32_0 : i32, i32
  }
  func.func @transform_5(%arg0: i32) -> (i32, i32) {
    %c0_i32 = arith.constant 0 : i32
    %c0_i32_0 = arith.constant 0 : i32
    %c0_i32_1 = arith.constant 0 : i32
    return %c0_i32, %c0_i32_0 : i32, i32
  }
  func.func @transform_6(%arg0: i32) -> (i32, i32) {
    %c0_i32 = arith.constant 0 : i32
    %c0_i32_0 = arith.constant 0 : i32
    %c0_i32_1 = arith.constant 0 : i32
    return %c0_i32, %c0_i32_0 : i32, i32
  }
  func.func @transform_7(%arg0: i32) -> (i32, i32) {
    %c0_i32 = arith.constant 0 : i32
    %c0_i32_0 = arith.constant 0 : i32
    %c0_i32_1 = arith.constant 0 : i32
    return %c0_i32, %c0_i32_0 : i32, i32
  }
  func.func @transform_8(%arg0: i32) -> (i32, i32) {
    %c0_i32 = arith.constant 0 : i32
    %c0_i32_0 = arith.constant 0 : i32
    %c0_i32_1 = arith.constant 0 : i32
    return %c0_i32, %c0_i32_0 : i32, i32
  }
  func.func @transform_9(%arg0: i32) -> (i32, i32) {
    %c0_i32 = arith.constant 0 : i32
    %c0_i32_0 = arith.constant 0 : i32
    %c0_i32_1 = arith.constant 0 : i32
    return %c0_i32, %c0_i32_0 : i32, i32
  }
  func.func @transform_10(%arg0: i32) -> (i32, i32) {
    %c0_i32 = arith.constant 0 : i32
    %c0_i32_0 = arith.constant 0 : i32
    %c0_i32_1 = arith.constant 0 : i32
    return %c0_i32, %c0_i32_0 : i32, i32
  }
  func.func @transform_11(%arg0: i32) -> (i32, i32) {
    %c0_i32 = arith.constant 0 : i32
    %c0_i32_0 = arith.constant 0 : i32
    %c0_i32_1 = arith.constant 0 : i32
    return %c0_i32, %c0_i32_0 : i32, i32
  }
  func.func @transform_12(%arg0: i32) -> (i32, i32) {
    %c0_i32 = arith.constant 0 : i32
    %c0_i32_0 = arith.constant 0 : i32
    %c0_i32_1 = arith.constant 0 : i32
    return %c0_i32, %c0_i32_0 : i32, i32
  }
  func.func @transform_13(%arg0: i32) -> (i32, i32, i32) {
    %c0_i32 = arith.constant 0 : i32
    %c0_i32_0 = arith.constant 0 : i32
    %c0_i32_1 = arith.constant 0 : i32
    return %arg0, %c0_i32, %c0_i32_0 : i32, i32, i32
  }
}

</mosaic_0001>

<bundles_post_ra>
// kernel: tpu_custom_call.1
= control target key start
LH: loop header
LB: loop body
LE: loop exit
PB: predicated region body
PF: predicated region fallthrough
CT: control target
= control target key end

     0   :  { %18 = vsyncpa [#allocation4], 0  ;;  %s3177_s0 = inlined_call_operand.hbm [shape: f32[2,8,32], index: 0, kind: input, shape index: {}]   ;;  %s3178_s1 = inlined_call_operand.hbm [shape: f32[32,96], index: 1, kind: input, shape index: {}]   ;;  %s3179_s2 = inlined_call_operand.hbm [shape: f32[1,96], index: 2, kind: input, shape index: {}]   ;;  %s3180_s3 = inlined_call_operand.hbm [shape: f32[32,32], index: 3, kind: input, shape index: {}]   ;;  %s3181_s4 = inlined_call_operand.hbm [shape: f32[1,32], index: 4, kind: input, shape index: {}]   ;;  %s3182_s5 = inlined_call_operand.hbm [shape: f32[32,64], index: 5, kind: input, shape index: {}]   ;;  %s3183_s6 = inlined_call_operand.hbm [shape: f32[1,64], index: 6, kind: input, shape index: {}]   ;;  %s3184_s7 = inlined_call_operand.hbm [shape: f32[64,32], index: 7, kind: input, shape index: {}]   ;;  %s3185_s8 = inlined_call_operand.hbm [shape: f32[1,32], index: 8, kind: input, shape index: {}]   ;;  %s3186_s9 = inlined_call_operand.hbm [shape: f32[1,32], index: 9, kind: input, shape index: {}]   ;;  %s3187_s10 = inlined_call_operand.hbm [shape: f32[1,32], index: 10, kind: input, shape index: {}]   ;;  %s3188_s11 = inlined_call_operand.hbm [shape: f32[1,32], index: 11, kind: input, shape index: {}]   ;;  %s3189_s12 = inlined_call_operand.hbm [shape: f32[1,32], index: 12, kind: input, shape index: {}]   ;;  %s3190_s13 = inlined_call_operand.hbm [shape: f32[2,8,32], index: 13, kind: output, shape index: {}]  }
   0x1   :  { %19 = vsyncpa [#allocation7], 0 }
   0x2   :  { %20 = vsyncpa [#allocation10], 0 }
   0x3   :  { %21 = vsyncpa [#allocation13], 0 }
   0x4   :  { %22 = vsyncpa [#allocation16], 0 }
   0x5   :  { %23 = vsyncpa [#allocation19], 0 }
   0x6   :  { %24 = vsyncpa [#allocation22], 0 }
   0x7   :  { %25 = vsyncpa [#allocation5], 0  ;;  %s2724_s25 = smov [#allocation6]   ;;  %s2725_s27 = smov [#allocation9]  }
   0x8   :  { %s43_s26 = sshll.u32 %s2724_s25, 4  ;;  %s65_s28 = sshll.u32 %s2725_s27, 4  ;;  %s44_s26 = int_to_ptr.vmem [resolvable:$true] %s43_s26  ;;  %s2825_s28 = int_to_ptr.vmem [resolvable:$true] %s65_s28 }
   0x9   :  { %s2400_s14 = scalar_lea.hbm %s3178_s1, 512 }
   0xa   :  { %p2401_p0 = scmp.ne.s32.totalorder %s3178_s1, %s2400_s14  ;;  %p2404_p1 = scmp.lt.u32.totalorder %s2400_s14, %s3178_s1 }
   0xc   :  { %p2406_p2 = pnand %p2404_p1, %p2401_p0 }
   0xe   :  { %2409 = shalt.err (!%p2406_p2)
}
   0xf   :  { %s2410_s19 = scalar_lea.vmem %s44_s26, 512  ;;  %p2415_p4 = scmp.lt.s32.totalorder %s44_s26, %s44_s26 }
  0x10   :  { %p2411_p3 = scmp.ne.s32.totalorder %s44_s26, %s2410_s19  ;;  %p2416_p5 = scmp.lt.s32.totalorder %s2410_s19, %s2410_s19 }
  0x12   :  { %p2417_p6 = por %p2416_p5, %p2415_p4 }
  0x14   :  { %p2418_p7 = pnand %p2417_p6, %p2411_p3 }
  0x16   :  { %2421 = shalt.err (!%p2418_p7)
}
  0x17   :  { %s2726_s20 = smov 128   ;;  %s2727_s21 = smov 8  }
  0x18   :  { %49 = dma.hbm_to_vmem [thread:$0]  %s3178_s1, 512, %s44_s26, [#allocation7], %s2726_s20, %s2726_s20, %s2727_s21  }
  0x19   :  { %s2422_s27 = scalar_lea.hbm %s3180_s3, 512 }
  0x1a   :  { %p2423_p8 = scmp.ne.s32.totalorder %s3180_s3, %s2422_s27  ;;  %p2426_p9 = scmp.lt.u32.totalorder %s2422_s27, %s3180_s3 }
  0x1c   :  { %p2428_p10 = pnand %p2426_p9, %p2423_p8 }
  0x1e   :  { %2431 = shalt.err (!%p2428_p10)
}
  0x1f   :  { %s2432_s16 = scalar_lea.vmem %s2825_s28, 512  ;;  %p2437_p12 = scmp.lt.s32.totalorder %s2825_s28, %s2825_s28 }
  0x20   :  { %p2433_p11 = scmp.ne.s32.totalorder %s2825_s28, %s2432_s16  ;;  %p2438_p13 = scmp.lt.s32.totalorder %s2432_s16, %s2432_s16 }
  0x22   :  { %p2439_p0 = por %p2438_p13, %p2437_p12 }
  0x24   :  { %p2440_p1 = pnand %p2439_p0, %p2433_p11 }
  0x26   :  { %2443 = shalt.err (!%p2440_p1)
}
  0x27   :  { %71 = dma.hbm_to_vmem [thread:$0]  %s3180_s3, 512, %s2825_s28, [#allocation10], %s2726_s20, %s2726_s20, %s2727_s21  }
  0x28   :  { %s2728_s17 = smov [#allocation12]   ;;  %s2729_s19 = smov [#allocation15]  }
  0x29   :  { %s87_s18 = sshll.u32 %s2728_s17, 4  ;;  %s109_s22 = sshll.u32 %s2729_s19, 4  ;;  %s88_s18 = int_to_ptr.vmem [resolvable:$true] %s87_s18  ;;  %s2862_s22 = int_to_ptr.vmem [resolvable:$true] %s109_s22 }
  0x2a   :  { %s2444_s25 = scalar_lea.hbm %s3182_s5, 512 }
  0x2b   :  { %p2445_p2 = scmp.ne.s32.totalorder %s3182_s5, %s2444_s25  ;;  %p2448_p3 = scmp.lt.u32.totalorder %s2444_s25, %s3182_s5 }
  0x2d   :  { %p2450_p4 = pnand %p2448_p3, %p2445_p2 }
  0x2f   :  { %2453 = shalt.err (!%p2450_p4)
}
  0x30   :  { %s2454_s3 = scalar_lea.vmem %s88_s18, 512  ;;  %p2459_p6 = scmp.lt.s32.totalorder %s88_s18, %s88_s18 }
  0x31   :  { %p2455_p5 = scmp.ne.s32.totalorder %s88_s18, %s2454_s3  ;;  %p2460_p7 = scmp.lt.s32.totalorder %s2454_s3, %s2454_s3 }
  0x33   :  { %p2461_p8 = por %p2460_p7, %p2459_p6 }
  0x35   :  { %p2462_p9 = pnand %p2461_p8, %p2455_p5 }
  0x37   :  { %2465 = shalt.err (!%p2462_p9)
}
  0x38   :  { %93 = dma.hbm_to_vmem [thread:$0]  %s3182_s5, 512, %s88_s18, [#allocation13], %s2726_s20, %s2726_s20, %s2727_s21  }
  0x39   :  { %s2466_s26 = scalar_lea.hbm %s3184_s7, 1024 }
  0x3a   :  { %p2467_p10 = scmp.ne.s32.totalorder %s3184_s7, %s2466_s26  ;;  %p2470_p11 = scmp.lt.u32.totalorder %s2466_s26, %s3184_s7 }
  0x3c   :  { %p2472_p12 = pnand %p2470_p11, %p2467_p10 }
  0x3e   :  { %2475 = shalt.err (!%p2472_p12)
}
  0x3f   :  { %s2476_s25 = scalar_lea.vmem %s2862_s22, 1024  ;;  %p2481_p0 = scmp.lt.s32.totalorder %s2862_s22, %s2862_s22 }
  0x40   :  { %p2477_p13 = scmp.ne.s32.totalorder %s2862_s22, %s2476_s25  ;;  %p2482_p1 = scmp.lt.s32.totalorder %s2476_s25, %s2476_s25 }
  0x42   :  { %p2483_p2 = por %p2482_p1, %p2481_p0 }
  0x44   :  { %p2484_p3 = pnand %p2483_p2, %p2477_p13 }
  0x46   :  { %2487 = shalt.err (!%p2484_p3)
}
  0x47   :  { %115 = dma.hbm_to_vmem [thread:$0]  %s3184_s7, 1024, %s2862_s22, [#allocation16], %s2726_s20, %s2726_s20, %s2727_s21  }
  0x48   :  { %s2730_s27 = smov [#allocation18]   ;;  %s2731_s30 = smov [#allocation21]  }
  0x49   :  { %s132_s29 = sshll.u32 %s2730_s27, 4  ;;  %s152_s14 = sshll.u32 %s2731_s30, 4  ;;  %s133_s29 = int_to_ptr.vmem [resolvable:$true] %s132_s29  ;;  %s153_s14 = int_to_ptr.vmem [resolvable:$true] %s152_s14 }
  0x4a   :  { %s2488_s15 = scalar_lea.hbm %s3186_s9, 16 }
  0x4b   :  { %p2489_p4 = scmp.ne.s32.totalorder %s3186_s9, %s2488_s15  ;;  %p2492_p5 = scmp.lt.u32.totalorder %s2488_s15, %s3186_s9 }
  0x4d   :  { %p2494_p6 = pnand %p2492_p5, %p2489_p4 }
  0x4f   :  { %2497 = shalt.err (!%p2494_p6)
}
  0x50   :  { %s2498_s7 = scalar_lea.vmem %s133_s29, 16  ;;  %s2502_s22 = scalar_lea.vmem %s133_s29, 32 }
  0x51   :  { %p2499_p7 = scmp.ne.s32.totalorder %s133_s29, %s2498_s7  ;;  %p2503_p8 = scmp.lt.s32.totalorder %s133_s29, %s133_s29 }
  0x52   :  { %p2504_p9 = scmp.lt.s32.totalorder %s2502_s22, %s2498_s7 }
  0x54   :  { %p2505_p10 = por %p2504_p9, %p2503_p8 }
  0x56   :  { %p2506_p11 = pnand %p2505_p10, %p2499_p7 }
  0x58   :  { %2509 = shalt.err (!%p2506_p11)
}
  0x59   :  { %135 = dma.hbm_to_vmem [thread:$0]  %s3186_s9, 16, %s133_s29, [#allocation19]  }
  0x5a   :  { %s2510_s5 = scalar_lea.hbm %s3188_s11, 16 }
  0x5b   :  { %p2511_p12 = scmp.ne.s32.totalorder %s3188_s11, %s2510_s5  ;;  %p2514_p13 = scmp.lt.u32.totalorder %s2510_s5, %s3188_s11 }
  0x5d   :  { %p2516_p0 = pnand %p2514_p13, %p2511_p12 }
  0x5f   :  { %2519 = shalt.err (!%p2516_p0)
}
  0x60   :  { %s2520_s28 = scalar_lea.vmem %s153_s14, 16  ;;  %s2524_s15 = scalar_lea.vmem %s153_s14, 32 }
  0x61   :  { %p2521_p1 = scmp.ne.s32.totalorder %s153_s14, %s2520_s28  ;;  %p2525_p2 = scmp.lt.s32.totalorder %s153_s14, %s153_s14 }
  0x62   :  { %p2526_p3 = scmp.lt.s32.totalorder %s2524_s15, %s2520_s28 }
  0x64   :  { %p2527_p4 = por %p2526_p3, %p2525_p2 }
  0x66   :  { %p2528_p5 = pnand %p2527_p4, %p2521_p1 }
  0x68   :  { %2531 = shalt.err (!%p2528_p5)
}
  0x69   :  { %155 = dma.hbm_to_vmem [thread:$0]  %s3188_s11, 16, %s153_s14, [#allocation22]  }
  0x6a   :  { %s2732_s16 = smov [#allocation3]   ;;  %s2733_s26 = smov [#allocation8]  }
  0x6b   :  { %s31_s1 = sshll.u32 %s2732_s16, 4  ;;  %s56_s17 = sshll.u32 %s2733_s26, 4  ;;  %s32_s1 = int_to_ptr.vmem [resolvable:$true] %s31_s1  ;;  %s57_s17 = int_to_ptr.vmem [resolvable:$true] %s56_s17 }
  0x6c   :  { %s2532_s19 = scalar_lea.hbm %s3177_s0, 256 }
  0x6d   :  { %p2533_p6 = scmp.ne.s32.totalorder %s3177_s0, %s2532_s19  ;;  %p2536_p7 = scmp.lt.u32.totalorder %s2532_s19, %s3177_s0 }
  0x6f   :  { %p2538_p8 = pnand %p2536_p7, %p2533_p6 }
  0x71   :  { %2541 = shalt.err (!%p2538_p8)
}
  0x72   :  { %s2542_s11 = scalar_lea.vmem %s32_s1, 256  ;;  %p2547_p10 = scmp.lt.s32.totalorder %s32_s1, %s32_s1 }
  0x73   :  { %p2543_p9 = scmp.ne.s32.totalorder %s32_s1, %s2542_s11  ;;  %p2548_p11 = scmp.lt.s32.totalorder %s2542_s11, %s2542_s11 }
  0x75   :  { %p2549_p12 = por %p2548_p11, %p2547_p10 }
  0x77   :  { %p2550_p13 = pnand %p2549_p12, %p2543_p9 }
  0x79   :  { %2553 = shalt.err (!%p2550_p13)
}
  0x7a   :  { %37 = dma.hbm_to_vmem [thread:$0]  %s3177_s0, 256, %s32_s1, [#allocation4], %s2726_s20, %s2726_s20, %s2727_s21  }
  0x7b   :  { %s2554_s3 = scalar_lea.hbm %s3179_s2, 16 }
  0x7c   :  { %p2555_p0 = scmp.ne.s32.totalorder %s3179_s2, %s2554_s3  ;;  %p2558_p1 = scmp.lt.u32.totalorder %s2554_s3, %s3179_s2 }
  0x7e   :  { %p2560_p2 = pnand %p2558_p1, %p2555_p0 }
  0x80   :  { %2563 = shalt.err (!%p2560_p2)
}
  0x81   :  { %s2564_s16 = scalar_lea.vmem %s57_s17, 16  ;;  %s2568_s26 = scalar_lea.vmem %s57_s17, 32 }
  0x82   :  { %p2565_p3 = scmp.ne.s32.totalorder %s57_s17, %s2564_s16  ;;  %p2569_p4 = scmp.lt.s32.totalorder %s57_s17, %s57_s17 }
  0x83   :  { %p2570_p5 = scmp.lt.s32.totalorder %s2568_s26, %s2564_s16 }
  0x85   :  { %p2571_p6 = por %p2570_p5, %p2569_p4 }
  0x87   :  { %p2572_p7 = pnand %p2571_p6, %p2565_p3 }
  0x89   :  { %2575 = shalt.err (!%p2572_p7)
}
  0x8a   :  { %59 = dma.hbm_to_vmem [thread:$0]  %s3179_s2, 16, %s57_s17, [#allocation7]  }
  0x8b   :  { %s2734_s7 = smov [#allocation11]   ;;  %s2735_s19 = smov [#allocation14]  }
  0x8c   :  { %s78_s22 = sshll.u32 %s2734_s7, 4  ;;  %s100_s23 = sshll.u32 %s2735_s19, 4  ;;  %s79_s22 = int_to_ptr.vmem [resolvable:$true] %s78_s22  ;;  %s101_s23 = int_to_ptr.vmem [resolvable:$true] %s100_s23 }
  0x8d   :  { %s2576_s5 = scalar_lea.hbm %s3181_s4, 16 }
  0x8e   :  { %p2577_p8 = scmp.ne.s32.totalorder %s3181_s4, %s2576_s5  ;;  %p2580_p9 = scmp.lt.u32.totalorder %s2576_s5, %s3181_s4 }
  0x90   :  { %p2582_p10 = pnand %p2580_p9, %p2577_p8 }
  0x92   :  { %2585 = shalt.err (!%p2582_p10)
}
  0x93   :  { %s2586_s2 = scalar_lea.vmem %s79_s22, 16  ;;  %s2590_s17 = scalar_lea.vmem %s79_s22, 32 }
  0x94   :  { %p2587_p11 = scmp.ne.s32.totalorder %s79_s22, %s2586_s2  ;;  %p2591_p12 = scmp.lt.s32.totalorder %s79_s22, %s79_s22 }
  0x95   :  { %p2592_p13 = scmp.lt.s32.totalorder %s2590_s17, %s2586_s2 }
  0x97   :  { %p2593_p0 = por %p2592_p13, %p2591_p12 }
  0x99   :  { %p2594_p1 = pnand %p2593_p0, %p2587_p11 }
  0x9b   :  { %2597 = shalt.err (!%p2594_p1)
}
  0x9c   :  { %81 = dma.hbm_to_vmem [thread:$0]  %s3181_s4, 16, %s79_s22, [#allocation10]  }
  0x9d   :  { %s2598_s9 = scalar_lea.hbm %s3183_s6, 16 }
  0x9e   :  { %p2599_p2 = scmp.ne.s32.totalorder %s3183_s6, %s2598_s9  ;;  %p2602_p3 = scmp.lt.u32.totalorder %s2598_s9, %s3183_s6 }
  0xa0   :  { %p2604_p4 = pnand %p2602_p3, %p2599_p2 }
  0xa2   :  { %2607 = shalt.err (!%p2604_p4)
}
  0xa3   :  { %s2608_s1 = scalar_lea.vmem %s101_s23, 16  ;;  %s2612_s7 = scalar_lea.vmem %s101_s23, 32 }
  0xa4   :  { %p2609_p5 = scmp.ne.s32.totalorder %s101_s23, %s2608_s1  ;;  %p2613_p6 = scmp.lt.s32.totalorder %s101_s23, %s101_s23 }
  0xa5   :  { %p2614_p7 = scmp.lt.s32.totalorder %s2612_s7, %s2608_s1 }
  0xa7   :  { %p2615_p8 = por %p2614_p7, %p2613_p6 }
  0xa9   :  { %p2616_p9 = pnand %p2615_p8, %p2609_p5 }
  0xab   :  { %2619 = shalt.err (!%p2616_p9)
}
  0xac   :  { %103 = dma.hbm_to_vmem [thread:$0]  %s3183_s6, 16, %s101_s23, [#allocation13]  }
  0xad   :  { %s2736_s19 = smov [#allocation17]   ;;  %s2737_s25 = smov [#allocation20]  }
  0xae   :  { %s122_s24 = sshll.u32 %s2736_s19, 4  ;;  %s142_s5 = sshll.u32 %s2737_s25, 4  ;;  %s123_s24 = int_to_ptr.vmem [resolvable:$true] %s122_s24  ;;  %s143_s5 = int_to_ptr.vmem [resolvable:$true] %s142_s5 }
  0xaf   :  { %s2620_s18 = scalar_lea.hbm %s3185_s8, 16 }
  0xb0   :  { %p2621_p10 = scmp.ne.s32.totalorder %s3185_s8, %s2620_s18  ;;  %p2624_p11 = scmp.lt.u32.totalorder %s2620_s18, %s3185_s8 }
  0xb2   :  { %p2626_p12 = pnand %p2624_p11, %p2621_p10 }
  0xb4   :  { %2629 = shalt.err (!%p2626_p12)
}
  0xb5   :  { %s2630_s6 = scalar_lea.vmem %s123_s24, 16  ;;  %s2634_s23 = scalar_lea.vmem %s123_s24, 32 }
  0xb6   :  { %p2631_p13 = scmp.ne.s32.totalorder %s123_s24, %s2630_s6  ;;  %p2635_p0 = scmp.lt.s32.totalorder %s123_s24, %s123_s24 }
  0xb7   :  { %p2636_p1 = scmp.lt.s32.totalorder %s2634_s23, %s2630_s6 }
  0xb9   :  { %p2637_p2 = por %p2636_p1, %p2635_p0 }
  0xbb   :  { %p2638_p3 = pnand %p2637_p2, %p2631_p13 }
  0xbd   :  { %2641 = shalt.err (!%p2638_p3)
}
  0xbe   :  { %125 = dma.hbm_to_vmem [thread:$0]  %s3185_s8, 16, %s123_s24, [#allocation16]  }
  0xbf   :  { %s2642_s29 = scalar_lea.hbm %s3187_s10, 16 }
  0xc0   :  { %p2643_p4 = scmp.ne.s32.totalorder %s3187_s10, %s2642_s29  ;;  %p2646_p5 = scmp.lt.u32.totalorder %s2642_s29, %s3187_s10 }
  0xc2   :  { %p2648_p6 = pnand %p2646_p5, %p2643_p4 }
  0xc4   :  { %2651 = shalt.err (!%p2648_p6)
}
  0xc5   :  { %s2652_s7 = scalar_lea.vmem %s143_s5, 16  ;;  %s2656_s4 = scalar_lea.vmem %s143_s5, 32 }
  0xc6   :  { %p2653_p7 = scmp.ne.s32.totalorder %s143_s5, %s2652_s7  ;;  %p2657_p8 = scmp.lt.s32.totalorder %s143_s5, %s143_s5 }
  0xc7   :  { %p2658_p9 = scmp.lt.s32.totalorder %s2656_s4, %s2652_s7 }
  0xc9   :  { %p2659_p10 = por %p2658_p9, %p2657_p8 }
  0xcb   :  { %p2660_p11 = pnand %p2659_p10, %p2653_p7 }
  0xcd   :  { %2663 = shalt.err (!%p2660_p11)
}
  0xce   :  { %145 = dma.hbm_to_vmem [thread:$0]  %s3187_s10, 16, %s143_s5, [#allocation19]  }
  0xcf   :  { %s2738_s19 = smov [#allocation23]   ;;  %s2664_s14 = scalar_lea.hbm %s3189_s12, 16 }
  0xd0   :  { %s162_s24 = sshll.u32 %s2738_s19, 4  ;;  %p2665_p12 = scmp.ne.s32.totalorder %s3189_s12, %s2664_s14  ;;  %s163_s24 = int_to_ptr.vmem [resolvable:$true] %s162_s24 }
  0xd1   :  { %p2668_p13 = scmp.lt.u32.totalorder %s2664_s14, %s3189_s12 }
  0xd3   :  { %p2670_p0 = pnand %p2668_p13, %p2665_p12 }
  0xd5   :  { %2673 = shalt.err (!%p2670_p0)
}
  0xd6   :  { %s2674_s30 = scalar_lea.vmem %s163_s24, 16  ;;  %s2678_s10 = scalar_lea.vmem %s163_s24, 32 }
  0xd7   :  { %p2675_p1 = scmp.ne.s32.totalorder %s163_s24, %s2674_s30  ;;  %p2679_p2 = scmp.lt.s32.totalorder %s163_s24, %s163_s24 }
  0xd8   :  { %p2680_p3 = scmp.lt.s32.totalorder %s2678_s10, %s2674_s30 }
  0xda   :  { %p2681_p4 = por %p2680_p3, %p2679_p2 }
  0xdc   :  { %p2682_p5 = pnand %p2681_p4, %p2675_p1 }
  0xde   :  { %2685 = shalt.err (!%p2682_p5)
}
  0xdf   :  { %165 = dma.hbm_to_vmem [thread:$0]  %s3189_s12, 16, %s163_s24, [#allocation22]  }
  0xe0   :  { %2708 = dma.done.wait [#allocation4], 256  }
  0xe1   :  { %2709 = vsyncadd [#allocation4], 4294967040 }
  0xe2   :  { %2710 = dma.done.wait [#allocation7], 528  }
  0xe3   :  { %2711 = vsyncadd [#allocation7], 4294966768 }
  0xe4   :  { %2712 = dma.done.wait [#allocation10], 528  }
  0xe5   :  { %2713 = vsyncadd [#allocation10], 4294966768 }
  0xe6   :  { %2714 = dma.done.wait [#allocation13], 528  }
  0xe7   :  { %2715 = vsyncadd [#allocation13], 4294966768 }
  0xe8   :  { %2716 = dma.done.wait [#allocation16], 1040  }
  0xe9   :  { %2717 = vsyncadd [#allocation16], 4294966256 }
  0xea   :  { %2718 = dma.done.wait [#allocation19], 32  }
  0xeb   :  { %2719 = vsyncadd [#allocation19], 4294967264 }
  0xec   :  { %2720 = dma.done.wait [#allocation22], 32  }
  0xed   :  { %2721 = vsyncadd [#allocation22], 4294967264  ;;  %vm218_vm0 = vcmask 261120   ;;  %v207_v0 = vld [vmem:[#allocation6] sm:$0xff]  ;;  %v208_v1 = vld [vmem:[#allocation6 + $0x8] sm:$0xff]  ;;  %v2739_v8 = vmov 0.0  }
  0xee   :  { %v209_v2 = vld [vmem:[#allocation6 + $0x10] sm:$0xff]  ;;  %v2289_v3 = vpack.c.bf16 %v208_v1, %v207_v0  ;;  %v210_v4 = vld [vmem:[#allocation6 + $0x18] sm:$0xff]  ;;  %2178 = vmatprep.subr.mxu0 %v2739_v8  ;;  %vm2740_vm1 = vmmov 0   ;;  %v2057_v9 = vld [vmem:[#allocation8] ss:$0 sm:$0xff]  ;;  %s2741_s12 = smov 96  }
  0xef   :  { %v3010_v5 = vld [vmem:[#allocation3] sm:$0xff]  ;;  %v2293_v6 = vpack.c.bf16 %v210_v4, %v209_v2  ;;  %v3014_v7 = vld [vmem:[#allocation3 + $0x8] sm:$0xff]  ;;  %2180 = vmatprep.mubr.msk.f32.mxu0 %vm2740_vm1, %v2739_v8  ;;  %vm303_vm2 = vcmask 64512   ;;  %s2742_s23 = smov 64   ;;  %s2743_s3 = smov 88   ;;  %vm969_vm3 = vcmask 130112  }
  0xf0   :  { %2165 = vmatprep.mubr.msk.f32.mxu1 %vm218_vm0, %v3010_v5  ;;  %2290 = vmatprep.subr.bf16.mxu1 %v2289_v3  ;;  %s2744_s28 = smov 120   ;;  %s2745_s15 = smov 56   ;;  %vm1310_vm4 = vcmask 195712   ;;  %vm1651_vm5 = vcmask 261312   ;;  %vm1904_vm6 = vcmask 523264  }
  0xf1   :  { %2292 = vmatpush3.bf16.msra.mxu1 %v2289_v3  ;;  %s2746_s9 = smov 80   ;;  %s2747_s29 = smov 112  }
  0xf2   :  { %2294 = vmatprep.subr.bf16.mxu1 %v2293_v6  ;;  %s2748_s16 = smov 48   ;;  %s2749_s26 = smov 72  }
  0xf3   :  { %s2750_s0 = smov 104   ;;  %s2751_s1 = smov 40  }
  0xf4   :  { %s2752_s7 = smov 16   ;;  %s2753_s4 = smov 24  }
  0xf5   :  { %2296 = vmatpush3.bf16.msra.mxu1 %v2293_v6  ;;  %s2754_s8 = smov [#allocation24]  }
  0xf6   :  { %2168 = vmatprep.subr.mxu1 %v2739_v8  ;;  %s2039_s22 = sshll.u32 %s2754_s8, 4  ;;  %s2040_s22 = int_to_ptr.vmem [resolvable:$true] %s2039_s22 }
  0xf7   :  { %s2686_s19 = scalar_lea.vmem %s2040_s22, 256  ;;  %p2691_p7 = scmp.lt.s32.totalorder %s2040_s22, %s2040_s22 }
  0xf8   :  { %2166 = vmatmul.mubr.msk.f32.vlgmr.msra.gmra.mrb[0].mxu1 %vm218_vm0, %v3014_v7  ;;  %p2687_p6 = scmp.ne.s32.totalorder %s2040_s22, %s2686_s19  ;;  %p2692_p8 = scmp.lt.s32.totalorder %s2686_s19, %s2686_s19 }
  0xf9   :  { %2170 = vmatprep.mubr.msk.f32.mxu1 %vm2740_vm1, %v2739_v8 }
  0xfa   :  { %p2693_p9 = por %p2692_p8, %p2691_p7 }
  0xfc   :  { %p2694_p10 = pnand %p2693_p9, %p2687_p6 }
 0x1cb   :  { %v2167_v10 = vpop.f32.mrb[0].mxu1 }
 0x1cc   :  { %v291_v11 = vpop.f32.mrb[1].mxu1  ;;  %v3027_v13 = vadd.f32 %v2167_v10, %v2057_v9 }
 0x1cd   :  { %v3024_v12 = vadd.f32 %v2057_v9, %v291_v11 }
 0x1cf   :  { %301 = vrot.lane.b32.xlu0 %v3024_v12, %s2741_s12 }
 0x1d3   :  { %379 = vrot.lane.b32.xlu0 %v3027_v13, %s2741_s12 }
 0x241   :  { %v302_v14 = vpop.permute.xlu0 %301 }
 0x242   :  { %2169 = vmatpush3.xpose.msk.msra.mxu1 %vm303_vm2, %v302_v14 }
 0x243   :  { %2173 = vmatprep.subr.mxu1 %v2739_v8 }
 0x245   :  { %2171 = vmatmul.mubr.msk.f32.vlgmr.msra.gmra.mrb[2].mxu1 %vm303_vm2, %v3024_v12  ;;  %v380_v15 = vpop.permute.xlu0 %379 }
 0x246   :  { %2174 = vmatpush3.xpose.msk.msra.mxu1 %vm303_vm2, %v380_v15  ;;  %2175 = vmatprep.mubr.msk.f32.mxu1 %vm2740_vm1, %v2739_v8 }
 0x247   :  { %2183 = vmatprep.subr.mxu1 %v2739_v8 }
 0x249   :  { %2176 = vmatmul.mubr.msk.f32.vlgmr.msra.gmra.mrb[4].mxu1 %vm303_vm2, %v3027_v13 }
 0x24a   :  { %2185 = vmatprep.mubr.msk.f32.mxu1 %vm2740_vm1, %v2739_v8 }
 0x318   :  { %v374_v16 = vpop.f32.mrb[2].mxu1 }
 0x319   :  { %v2172_v17 = vpop.f32.mrb[3].mxu1  ;;  %v455_v18 = vsel %vm303_vm2, %v374_v16, -inf }
 0x31a   :  { %456 = vmax.xlane.f32.xlu1 %v455_v18 }
 0x31c   :  { %v451_v19 = vpop.f32.mrb[4].mxu1 }
 0x31d   :  { %v2177_v20 = vpop.f32.mrb[5].mxu1  ;;  %v458_v21 = vsel %vm303_vm2, %v451_v19, -inf }
 0x31e   :  { %459 = vmax.xlane.f32.xlu1 %v458_v21 }
 0x32f   :  { %477 = vrot.lane.b32.xlu1 %v3024_v12, %s2742_s23 }
 0x333   :  { %553 = vrot.lane.b32.xlu1 %v3027_v13, %s2742_s23 }
 0x337   :  { %633 = vrot.lane.b32.xlu1 %v3024_v12, %s2743_s3 }
 0x33b   :  { %711 = vrot.lane.b32.xlu1 %v3027_v13, %s2743_s3 }
 0x3a7   :  { %v457_v22 = vpop.xlane.xlu1 %456 }
 0x3a8   :  { %v461_v23 = vsub.f32 %v374_v16, %v457_v22 }
 0x3aa   :  { %v463_v24 = vmul.f32 1.442695, %v461_v23 }
 0x3ab   :  { %v460_v25 = vpop.xlane.xlu1 %459 }
 0x3ac   :  { %2360 = vpow2.f32 %v463_v24  ;;  %v462_v26 = vsub.f32 %v451_v19, %v460_v25 }
 0x3ae   :  { %v465_v27 = vmul.f32 1.442695, %v462_v26 }
 0x3af   :  { %v478_v28 = vpop.permute.xlu1 %477 }
 0x3b0   :  { %2362 = vpow2.f32 %v465_v27  ;;  %2179 = vmatpush3.msra.mxu0 %v478_v28 }
 0x3b1   :  { %2188 = vmatprep.subr.mxu0 %v2739_v8 }
 0x3b3   :  { %v554_v29 = vpop.permute.xlu1 %553 }
 0x3b4   :  { %2184 = vmatpush3.msra.mxu1 %v554_v29 }
 0x3b5   :  { %2193 = vmatprep.subr.mxu1 %v2739_v8 }
 0x3b6   :  { %v2361_v30 = vpop.eup %2360 }
 0x3b7   :  { %v467_v31 = vsel %vm303_vm2, %v2361_v30, 0.0  ;;  %v634_v34 = vpop.permute.xlu1 %633 }
 0x3b8   :  { %468 = vadd.xlane.f32.xlu0 %v467_v31 }
 0x3ba   :  { %v2363_v32 = vpop.eup %2362 }
 0x3bb   :  { %v470_v33 = vsel %vm303_vm2, %v2363_v32, 0.0  ;;  %v712_v35 = vpop.permute.xlu1 %711 }
 0x3bc   :  { %471 = vadd.xlane.f32.xlu1 %v470_v33 }
 0x3cd   :  { %709 = vrot.lane.b32.xlu1 %v3027_v13, %s2744_s28 }
 0x3ce   :  { %631 = vrot.lane.b32.xlu0 %v3024_v12, %s2744_s28 }
 0x445   :  { %v469_v36 = vpop.xlane.xlu0 %468 }
 0x446   :  { %2364 = vrcp.f32 %v469_v36 }
 0x449   :  { %v472_v37 = vpop.xlane.xlu1 %471  ;;  %v632_v42 = vpop.permute.xlu0 %631 }
 0x44a   :  { %2366 = vrcp.f32 %v472_v37 }
 0x44d   :  { %v710_v43 = vpop.permute.xlu1 %709 }
 0x450   :  { %v2365_v38 = vpop.eup %2364 }
 0x451   :  { %v475_v39 = vmul.f32 %v2365_v38, %v2361_v30 }
 0x453   :  { %2181 = vmatmul.mubr.msk.f32.vlgmr.msra.gmra.mrb[0].mxu0 %vm303_vm2, %v475_v39 }
 0x454   :  { %v2367_v40 = vpop.eup %2366  ;;  %2189 = vmatpush3.xpose.msk.msra.mxu0 %vm303_vm2, %v634_v34  ;;  %2190 = vmatprep.mubr.msk.f32.mxu0 %vm2740_vm1, %v2739_v8 }
 0x455   :  { %v476_v41 = vmul.f32 %v2367_v40, %v2363_v32  ;;  %2198 = vmatprep.subr.mxu0 %v2739_v8 }
 0x457   :  { %2186 = vmatmul.mubr.msk.f32.vlgmr.msra.gmra.mrb[6].mxu1 %vm303_vm2, %v476_v41  ;;  %2191 = vmatmul.mubr.msk.f32.vlgmr.msra.gmra.mrb[2].mxu0 %vm303_vm2, %v632_v42 }
 0x458   :  { %2194 = vmatpush3.xpose.msk.msra.mxu1 %vm303_vm2, %v712_v35  ;;  %2195 = vmatprep.mubr.msk.f32.mxu1 %vm2740_vm1, %v2739_v8 }
 0x459   :  { %2203 = vmatprep.subr.mxu1 %v2739_v8  ;;  %2200 = vmatprep.mubr.msk.f32.mxu0 %vm2740_vm1, %v2739_v8 }
 0x45b   :  { %2196 = vmatmul.mubr.msk.f32.vlgmr.msra.gmra.mrb[8].mxu1 %vm303_vm2, %v710_v43 }
 0x45c   :  { %2205 = vmatprep.mubr.msk.f32.mxu1 %vm2740_vm1, %v2739_v8 }
 0x526   :  { %v549_v44 = vpop.f32.mrb[0].mxu0 }
 0x527   :  { %629 = vst.msk [vmem:[#allocation2] sm:$0xff] %vm303_vm2, %v549_v44  ;;  %v2182_v45 = vpop.f32.mrb[1].mxu0 }
 0x52a   :  { %v625_v46 = vpop.f32.mrb[6].mxu1  ;;  %v705_v47 = vpop.f32.mrb[2].mxu0 }
 0x52b   :  { %630 = vst.msk [vmem:[#allocation2 + $0x8] sm:$0xff] %vm303_vm2, %v625_v46  ;;  %v2187_v48 = vpop.f32.mrb[7].mxu1  ;;  %v2192_v49 = vpop.f32.mrb[3].mxu0  ;;  %v787_v50 = vsel %vm303_vm2, %v705_v47, -inf }
 0x52c   :  { %788 = vmax.xlane.f32.xlu1 %v787_v50 }
 0x52e   :  { %v783_v51 = vpop.f32.mrb[8].mxu1 }
 0x52f   :  { %v2197_v52 = vpop.f32.mrb[9].mxu1  ;;  %v790_v53 = vsel %vm303_vm2, %v783_v51, -inf }
 0x530   :  { %791 = vmax.xlane.f32.xlu0 %v790_v53 }
 0x53d   :  { %809 = vrot.lane.b32.xlu1 %v3024_v12, %s2745_s15 }
 0x541   :  { %974 = vrot.lane.b32.xlu1 %v3024_v12, %s2746_s9 }
 0x545   :  { %1052 = vrot.lane.b32.xlu1 %v3027_v13, %s2746_s9 }
 0x546   :  { %885 = vrot.lane.b32.xlu0 %v3027_v13, %s2745_s15 }
 0x54a   :  { %972 = vrot.lane.b32.xlu0 %v3024_v12, %s2747_s29 }
 0x5b9   :  { %v789_v54 = vpop.xlane.xlu1 %788 }
 0x5ba   :  { %v793_v55 = vsub.f32 %v705_v47, %v789_v54 }
 0x5bc   :  { %v795_v56 = vmul.f32 1.442695, %v793_v55 }
 0x5bd   :  { %v810_v57 = vpop.permute.xlu1 %809  ;;  %v792_v58 = vpop.xlane.xlu0 %791 }
 0x5be   :  { %2368 = vpow2.f32 %v795_v56  ;;  %v794_v59 = vsub.f32 %v783_v51, %v792_v58  ;;  %2199 = vmatpush3.msra.mxu0 %v810_v57 }
 0x5bf   :  { %2208 = vmatprep.subr.mxu0 %v2739_v8 }
 0x5c0   :  { %v797_v60 = vmul.f32 1.442695, %v794_v59 }
 0x5c1   :  { %v886_v61 = vpop.permute.xlu0 %885  ;;  %v975_v2 = vpop.permute.xlu1 %974 }
 0x5c2   :  { %2370 = vpow2.f32 %v797_v60  ;;  %2204 = vmatpush3.msra.mxu1 %v886_v61 }
 0x5c3   :  { %2213 = vmatprep.subr.mxu1 %v2739_v8 }
 0x5c5   :  { %v1053_v3 = vpop.permute.xlu1 %1052  ;;  %v973_v15 = vpop.permute.xlu0 %972 }
 0x5c8   :  { %v2369_v62 = vpop.eup %2368 }
 0x5c9   :  { %v799_v63 = vsel %vm303_vm2, %v2369_v62, 0.0 }
 0x5ca   :  { %800 = vadd.xlane.f32.xlu1 %v799_v63 }
 0x5cc   :  { %v2371_v0 = vpop.eup %2370 }
 0x5cd   :  { %v802_v1 = vsel %vm303_vm2, %v2371_v0, 0.0 }
 0x5ce   :  { %803 = vadd.xlane.f32.xlu1 %v802_v1 }
 0x5df   :  { %1050 = vrot.lane.b32.xlu1 %v3027_v13, %s2747_s29 }
 0x657   :  { %v801_v4 = vpop.xlane.xlu1 %800 }
 0x658   :  { %2372 = vrcp.f32 %v801_v4 }
 0x65b   :  { %v804_v6 = vpop.xlane.xlu1 %803 }
 0x65c   :  { %2374 = vrcp.f32 %v804_v6 }
 0x65f   :  { %v1051_v16 = vpop.permute.xlu1 %1050 }
 0x662   :  { %v2373_v9 = vpop.eup %2372 }
 0x663   :  { %v807_v10 = vmul.f32 %v2373_v9, %v2369_v62 }
 0x665   :  { %2201 = vmatmul.mubr.msk.f32.vlgmr.msra.gmra.mrb[4].mxu0 %vm303_vm2, %v807_v10 }
 0x666   :  { %v2375_v11 = vpop.eup %2374  ;;  %2209 = vmatpush3.xpose.msk.msra.mxu0 %vm303_vm2, %v975_v2  ;;  %2210 = vmatprep.mubr.msk.f32.mxu0 %vm2740_vm1, %v2739_v8 }
 0x667   :  { %v808_v14 = vmul.f32 %v2375_v11, %v2371_v0  ;;  %2218 = vmatprep.subr.mxu0 %v2739_v8 }
 0x669   :  { %2206 = vmatmul.mubr.msk.f32.vlgmr.msra.gmra.mrb[10].mxu1 %vm303_vm2, %v808_v14  ;;  %2211 = vmatmul.mubr.msk.f32.vlgmr.msra.gmra.mrb[6].mxu0 %vm303_vm2, %v973_v15 }
 0x66a   :  { %2214 = vmatpush3.xpose.msk.msra.mxu1 %vm303_vm2, %v1053_v3  ;;  %2215 = vmatprep.mubr.msk.f32.mxu1 %vm2740_vm1, %v2739_v8 }
 0x66b   :  { %2223 = vmatprep.subr.mxu1 %v2739_v8  ;;  %2220 = vmatprep.mubr.msk.f32.mxu0 %vm2740_vm1, %v2739_v8 }
 0x66d   :  { %2216 = vmatmul.mubr.msk.f32.vlgmr.msra.gmra.mrb[12].mxu1 %vm303_vm2, %v1051_v16 }
 0x66e   :  { %2225 = vmatprep.mubr.msk.f32.mxu1 %vm2740_vm1, %v2739_v8 }
 0x738   :  { %v3100_v17 = vpop.f32.mrb[4].mxu0 }
 0x739   :  { %v2202_v18 = vpop.f32.mrb[5].mxu0 }
 0x73c   :  { %v3102_v19 = vpop.f32.mrb[10].mxu1  ;;  %v1046_v20 = vpop.f32.mrb[6].mxu0 }
 0x73d   :  { %v2207_v21 = vpop.f32.mrb[11].mxu1  ;;  %v2212_v22 = vpop.f32.mrb[7].mxu0  ;;  %v1128_v23 = vsel %vm303_vm2, %v1046_v20, -inf }
 0x73e   :  { %1129 = vmax.xlane.f32.xlu0 %v1128_v23  ;;  %v1658_v22 = vld [vmem:[#allocation9 + $0x10] sm:$0xff]  ;;  %v1659_v23 = vld [vmem:[#allocation9 + $0x18] sm:$0xff] }
 0x740   :  { %v1124_v24 = vpop.f32.mrb[12].mxu1 }
 0x741   :  { %v2217_v25 = vpop.f32.mrb[13].mxu1  ;;  %v1131_v26 = vsel %vm303_vm2, %v1124_v24, -inf }
 0x742   :  { %1132 = vmax.xlane.f32.xlu1 %v1131_v26 }
 0x753   :  { %1150 = vrot.lane.b32.xlu1 %v3024_v12, %s2748_s16 }
 0x754   :  { %1226 = vrot.lane.b32.xlu0 %v3027_v13, %s2748_s16 }
 0x757   :  { %1315 = vrot.lane.b32.xlu1 %v3024_v12, %s2749_s26 }
 0x75b   :  { %1393 = vrot.lane.b32.xlu1 %v3027_v13, %s2749_s26 }
 0x75f   :  { %1391 = vrot.lane.b32.xlu1 %v3027_v13, %s2750_s0 }
 0x7cb   :  { %v1130_v27 = vpop.xlane.xlu0 %1129 }
 0x7cc   :  { %v1134_v28 = vsub.f32 %v1046_v20, %v1130_v27  ;;  %v1656_v20 = vld [vmem:[#allocation9] sm:$0xff] }
 0x7ce   :  { %v1136_v29 = vmul.f32 1.442695, %v1134_v28 }
 0x7cf   :  { %v1133_v30 = vpop.xlane.xlu1 %1132  ;;  %v1227_v31 = vpop.permute.xlu0 %1226 }
 0x7d0   :  { %2376 = vpow2.f32 %v1136_v29  ;;  %v1135_v32 = vsub.f32 %v1124_v24, %v1133_v30  ;;  %2224 = vmatpush3.msra.mxu1 %v1227_v31  ;;  %v2301_v24 = vpack.c.bf16 %v1659_v23, %v1658_v22  ;;  %v2089_v22 = vld [vmem:[#allocation14] ss:$0 sm:$0xff] }
 0x7d1   :  { %2233 = vmatprep.subr.mxu1 %v2739_v8 }
 0x7d2   :  { %v1138_v33 = vmul.f32 1.442695, %v1135_v32 }
 0x7d3   :  { %v1151_v34 = vpop.permute.xlu1 %1150 }
 0x7d4   :  { %2378 = vpow2.f32 %v1138_v33  ;;  %2219 = vmatpush3.msra.mxu0 %v1151_v34  ;;  %v2084_v33 = vld [vmem:[#allocation11] ss:$0 sm:$0xff] }
 0x7d5   :  { %2228 = vmatprep.subr.mxu0 %v2739_v8 }
 0x7d7   :  { %v1316_v41 = vpop.permute.xlu1 %1315 }
 0x7da   :  { %v2377_v35 = vpop.eup %2376 }
 0x7db   :  { %v1140_v36 = vsel %vm303_vm2, %v2377_v35, 0.0  ;;  %v1394_v45 = vpop.permute.xlu1 %1393 }
 0x7dc   :  { %1141 = vadd.xlane.f32.xlu0 %v1140_v36 }
 0x7de   :  { %v2379_v37 = vpop.eup %2378 }
 0x7df   :  { %v1143_v38 = vsel %vm303_vm2, %v2379_v37, 0.0  ;;  %v1392_v48 = vpop.permute.xlu1 %1391 }
 0x7e0   :  { %1144 = vadd.xlane.f32.xlu0 %v1143_v38 }
 0x7f6   :  { %1313 = vrot.lane.b32.xlu0 %v3024_v12, %s2750_s0 }
 0x869   :  { %v1142_v39 = vpop.xlane.xlu0 %1141 }
 0x86a   :  { %2380 = vrcp.f32 %v1142_v39 }
 0x86d   :  { %v1145_v40 = vpop.xlane.xlu0 %1144 }
 0x86e   :  { %2382 = vrcp.f32 %v1145_v40 }
 0x871   :  { %v1314_v47 = vpop.permute.xlu0 %1313 }
 0x874   :  { %v2381_v42 = vpop.eup %2380 }
 0x875   :  { %v1148_v43 = vmul.f32 %v2381_v42, %v2377_v35 }
 0x877   :  { %2221 = vmatmul.mubr.msk.f32.vlgmr.msra.gmra.mrb[8].mxu0 %vm303_vm2, %v1148_v43 }
 0x878   :  { %v2383_v44 = vpop.eup %2382  ;;  %2229 = vmatpush3.xpose.msk.msra.mxu0 %vm303_vm2, %v1316_v41  ;;  %2230 = vmatprep.mubr.msk.f32.mxu0 %vm2740_vm1, %v2739_v8 }
 0x879   :  { %v1149_v46 = vmul.f32 %v2383_v44, %v2379_v37  ;;  %2238 = vmatprep.subr.mxu0 %v2739_v8 }
 0x87b   :  { %2226 = vmatmul.mubr.msk.f32.vlgmr.msra.gmra.mrb[14].mxu1 %vm303_vm2, %v1149_v46  ;;  %2231 = vmatmul.mubr.msk.f32.vlgmr.msra.gmra.mrb[10].mxu0 %vm303_vm2, %v1314_v47 }
 0x87c   :  { %2234 = vmatpush3.xpose.msk.msra.mxu1 %vm303_vm2, %v1394_v45  ;;  %2235 = vmatprep.mubr.msk.f32.mxu1 %vm2740_vm1, %v2739_v8 }
 0x87d   :  { %2243 = vmatprep.subr.mxu1 %v2739_v8  ;;  %2240 = vmatprep.mubr.msk.f32.mxu0 %vm2740_vm1, %v2739_v8 }
 0x87f   :  { %2236 = vmatmul.mubr.msk.f32.vlgmr.msra.gmra.mrb[16].mxu1 %vm303_vm2, %v1392_v48 }
 0x880   :  { %2245 = vmatprep.mubr.msk.f32.mxu1 %vm2740_vm1, %v2739_v8 }
 0x94a   :  { %v1222_v49 = vpop.f32.mrb[8].mxu0 }
 0x94b   :  { %v2222_v50 = vpop.f32.mrb[9].mxu0 }
 0x94e   :  { %v1298_v51 = vpop.f32.mrb[14].mxu1  ;;  %v1387_v52 = vpop.f32.mrb[10].mxu0 }
 0x94f   :  { %v2227_v53 = vpop.f32.mrb[15].mxu1  ;;  %v2232_v54 = vpop.f32.mrb[11].mxu0  ;;  %v1469_v55 = vsel %vm303_vm2, %v1387_v52, -inf }
 0x950   :  { %1470 = vmax.xlane.f32.xlu0 %v1469_v55  ;;  %v1797_v53 = vld [vmem:[#allocation12 + $0x10] sm:$0xff]  ;;  %v1798_v54 = vld [vmem:[#allocation12 + $0x18] sm:$0xff] }
 0x951   :  { %v2309_v55 = vpack.c.bf16 %v1798_v54, %v1797_v53  ;;  %v2095_v53 = vld [vmem:[#allocation21] ss:$0 sm:$0xff] }
 0x952   :  { %v1465_v56 = vpop.f32.mrb[16].mxu1 }
 0x953   :  { %v2237_v57 = vpop.f32.mrb[17].mxu1  ;;  %v1472_v58 = vsel %vm303_vm2, %v1465_v56, -inf }
 0x954   :  { %1473 = vmax.xlane.f32.xlu1 %v1472_v58  ;;  %v1890_v57 = vld [vmem:[#allocation15 + $0x8] sm:$0xff]  ;;  %v1891_v58 = vld [vmem:[#allocation15 + $0x10] sm:$0xff] }
 0x965   :  { %1491 = vrot.lane.b32.xlu1 %v3024_v12, %s2751_s1 }
 0x969   :  { %963 = vrot.lane.b32.xlu1 %v3100_v17, %s2727_s21 }
 0x96d   :  { %965 = vrot.lane.b32.xlu1 %v3102_v19, %s2727_s21 }
 0x971   :  { %1306 = vrot.lane.b32.xlu1 %v1298_v51, %s2752_s7  ;;  %v1796_v51 = vld [vmem:[#allocation12 + $0x8] sm:$0xff] }
 0x9dd   :  { %v1471_v8 = vpop.xlane.xlu0 %1470 }
 0x9de   :  { %v1475_v59 = vsub.f32 %v1387_v52, %v1471_v8 }
 0x9e0   :  { %v1477_v60 = vmul.f32 1.442695, %v1475_v59  ;;  %v1892_v59 = vld [vmem:[#allocation15 + $0x18] sm:$0xff] }
 0x9e1   :  { %v1474_v61 = vpop.xlane.xlu1 %1473 }
 0x9e2   :  { %2384 = vpow2.f32 %v1477_v60  ;;  %v1476_v62 = vsub.f32 %v1465_v56, %v1474_v61  ;;  %v1889_v56 = vld [vmem:[#allocation15] sm:$0xff]  ;;  %v2317_v60 = vpack.c.bf16 %v1892_v59, %v1891_v58 }
 0x9e3   :  { %v2313_v8 = vpack.c.bf16 %v1890_v57, %v1889_v56  ;;  %v1893_v61 = vld [vmem:[#allocation15 + $0x20] sm:$0xff]  ;;  %v2096_v57 = vld [vmem:[#allocation23] ss:$0 sm:$0xff] }
 0x9e4   :  { %v1479_v63 = vmul.f32 1.442695, %v1476_v62  ;;  %v1894_v62 = vld [vmem:[#allocation15 + $0x28] sm:$0xff] }
 0x9e5   :  { %v1492_v0 = vpop.permute.xlu1 %1491 }
 0x9e6   :  { %2386 = vpow2.f32 %v1479_v63  ;;  %2239 = vmatpush3.msra.mxu0 %v1492_v0  ;;  %v2321_v63 = vpack.c.bf16 %v1894_v62, %v1893_v61 }
 0x9e9   :  { %v964_v12 = vpop.permute.xlu1 %963 }
 0x9ea   :  { %970 = vst.msk [vmem:[#allocation2] sm:$0xff] %vm969_vm3, %v964_v12 }
 0x9ec   :  { %v2385_v1 = vpop.eup %2384 }
 0x9ed   :  { %v966_v2 = vpop.permute.xlu1 %965  ;;  %v1481_v3 = vsel %vm303_vm2, %v2385_v1, 0.0 }
 0x9ee   :  { %971 = vst.msk [vmem:[#allocation2 + $0x8] sm:$0xff] %vm969_vm3, %v966_v2  ;;  %1482 = vadd.xlane.f32.xlu0 %v1481_v3 }
 0x9f0   :  { %v2387_v4 = vpop.eup %2386 }
 0x9f1   :  { %v1307_v6 = vpop.permute.xlu1 %1306  ;;  %v1484_v9 = vsel %vm303_vm2, %v2387_v4, 0.0 }
 0x9f2   :  { %1312 = vst.msk [vmem:[#allocation2 + $0x8] sm:$0xff] %vm1310_vm4, %v1307_v6  ;;  %1485 = vadd.xlane.f32.xlu0 %v1484_v9  ;;  %v2087_v9 = vld [vmem:[#allocation18] ss:$0 sm:$0xff] }
 0xa08   :  { %1567 = vrot.lane.b32.xlu0 %v3027_v13, %s2751_s1  ;;  %v1657_v13 = vld [vmem:[#allocation9 + $0x8] sm:$0xff] }
 0xa09   :  { %v2297_v21 = vpack.c.bf16 %v1657_v13, %v1656_v20  ;;  %v1895_v20 = vld [vmem:[#allocation15 + $0x30] sm:$0xff]  ;;  %v1896_v13 = vld [vmem:[#allocation15 + $0x38] sm:$0xff] }
 0xa0b   :  { %2298 = vmatprep.subr.bf16.mxu0 %v2297_v21 }
 0xa0c   :  { %1304 = vrot.lane.b32.xlu0 %v1222_v49, %s2752_s7 }
 0xa7b   :  { %v1483_v10 = vpop.xlane.xlu0 %1482 }
 0xa7c   :  { %2388 = vrcp.f32 %v1483_v10 }
 0xa7f   :  { %v1486_v11 = vpop.xlane.xlu0 %1485 }
 0xa80   :  { %2390 = vrcp.f32 %v1486_v11  ;;  %v2088_v11 = vld [vmem:[#allocation20] ss:$0 sm:$0xff] }
 0xa83   :  { %v1568_v14 = vpop.permute.xlu0 %1567 }
 0xa84   :  { %2244 = vmatpush3.msra.mxu1 %v1568_v14 }
 0xa86   :  { %v2389_v15 = vpop.eup %2388 }
 0xa87   :  { %v1489_v16 = vmul.f32 %v2389_v15, %v2385_v1  ;;  %v1305_v17 = vpop.permute.xlu0 %1304 }
 0xa88   :  { %1311 = vst.msk [vmem:[#allocation2] sm:$0xff] %vm1310_vm4, %v1305_v17 }
 0xa89   :  { %2241 = vmatmul.mubr.msk.f32.vlgmr.msra.gmra.mrb[12].mxu0 %vm303_vm2, %v1489_v16 }
 0xa8a   :  { %v2391_v18 = vpop.eup %2390  ;;  %2300 = vmatpush3.bf16.msra.mxu0 %v2297_v21  ;;  %v2325_v21 = vpack.c.bf16 %v1896_v13, %v1895_v20 }
 0xa8b   :  { %v1490_v19 = vmul.f32 %v2391_v18, %v2387_v4  ;;  %2302 = vmatprep.subr.bf16.mxu0 %v2301_v24 }
 0xa8d   :  { %2246 = vmatmul.mubr.msk.f32.vlgmr.msra.gmra.mrb[18].mxu1 %vm303_vm2, %v1490_v19 }
 0xa8e   :  { %2304 = vmatpush3.bf16.msra.mxu0 %v2301_v24 }
 0xa8f   :  { %2314 = vmatprep.subr.bf16.mxu0 %v2313_v8 }
 0xb5c   :  { %v1563_v25 = vpop.f32.mrb[12].mxu0 }
 0xb5d   :  { %1645 = vrot.lane.b32.xlu0 %v1563_v25, %s2753_s4  ;;  %v2242_v26 = vpop.f32.mrb[13].mxu0 }
 0xb60   :  { %v1639_v27 = vpop.f32.mrb[18].mxu1 }
 0xb61   :  { %1647 = vrot.lane.b32.xlu1 %v1639_v27, %s2753_s4  ;;  %v2247_v28 = vpop.f32.mrb[19].mxu1 }
 0xbcf   :  { %v1646_v29 = vpop.permute.xlu0 %1645 }
 0xbd0   :  { %1652 = vst.msk [vmem:[#allocation2] sm:$0xff] %vm1651_vm5, %v1646_v29  ;;  %v2092_v29 = vld [vmem:[#allocation17] ss:$0 sm:$0xff] }
 0xbd3   :  { %v1648_v30 = vpop.permute.xlu1 %1647 }
 0xbd4   :  { %1653 = vst.msk [vmem:[#allocation2 + $0x8] sm:$0xff] %vm1651_vm5, %v1648_v30 }
 0xbd7   :  { %v1654_v31 = vld [vmem:[#allocation2] sm:$0xff] }
 0xbd8   :  { %2256 = vmatprep.mubr.msk.f32.mxu0 %vm218_vm0, %v1654_v31 }
 0xbdb   :  { %v1655_v32 = vld [vmem:[#allocation2 + $0x8] sm:$0xff] }
 0xbdc   :  { %2257 = vmatmul.mubr.msk.f32.vlgmr.msra.gmra.mrb[14].mxu0 %vm218_vm0, %v1655_v32 }
 0xbdd   :  { %2316 = vmatpush3.bf16.msra.mxu0 %v2313_v8 }
 0xbde   :  { %2318 = vmatprep.subr.bf16.mxu0 %v2317_v60 }
 0xbe1   :  { %2320 = vmatpush3.bf16.msra.mxu0 %v2317_v60 }
 0xbe2   :  { %2322 = vmatprep.subr.bf16.mxu0 %v2321_v63 }
 0xbe5   :  { %2324 = vmatpush3.bf16.msra.mxu0 %v2321_v63 }
 0xbe6   :  { %2326 = vmatprep.subr.bf16.mxu0 %v2325_v21 }
 0xbe9   :  { %2328 = vmatpush3.bf16.msra.mxu0 %v2325_v21 }
 0xcaf   :  { %v2258_v34 = vpop.f32.mrb[14].mxu0 }
 0xcb0   :  { %v1745_v35 = vadd.f32 %v2258_v34, %v2084_v33  ;;  %v1739_v36 = vpop.f32.mrb[15].mxu0 }
 0xcb1   :  { %v1740_v37 = vadd.f32 %v2084_v33, %v1739_v36 }
 0xcb2   :  { %v1749_v38 = vadd.f32 %v1745_v35, %v3014_v7 }
 0xcb3   :  { %v1748_v39 = vadd.f32 %v1740_v37, %v3010_v5  ;;  %v1795_v5 = vld [vmem:[#allocation12] sm:$0xff] }
 0xcb4   :  { %v1755_v40 = vsel %vm218_vm0, %v1749_v38, 0.0  ;;  %v2305_v52 = vpack.c.bf16 %v1796_v51, %v1795_v5 }
 0xcb5   :  { %1756 = vadd.xlane.f32.xlu1 %v1755_v40  ;;  %v1752_v41 = vsel %vm218_vm0, %v1748_v39, 0.0 }
 0xcb6   :  { %1753 = vadd.xlane.f32.xlu0 %v1752_v41  ;;  %2306 = vmatprep.subr.bf16.mxu1 %v2305_v52 }
 0xcb7   :  { %2308 = vmatpush3.bf16.msra.mxu1 %v2305_v52 }
 0xcb8   :  { %2310 = vmatprep.subr.bf16.mxu1 %v2309_v55 }
 0xcbb   :  { %2312 = vmatpush3.bf16.msra.mxu1 %v2309_v55 }
 0xd42   :  { %v1757_v42 = vpop.xlane.xlu1 %1756 }
 0xd43   :  { %v1760_v43 = vmul.f32 0.03125, %v1757_v42  ;;  %v1754_v44 = vpop.xlane.xlu0 %1753 }
 0xd44   :  { %v1759_v45 = vmul.f32 0.03125, %v1754_v44 }
 0xd45   :  { %v1762_v46 = vsub.f32 %v1749_v38, %v1760_v43 }
 0xd46   :  { %v1761_v47 = vsub.f32 %v1748_v39, %v1759_v45 }
 0xd47   :  { %v1764_v50 = vmul.f32 %v1762_v46, %v1762_v46 }
 0xd48   :  { %v1763_v48 = vmul.f32 %v1761_v47, %v1761_v47 }
 0xd49   :  { %v1768_v7 = vsel %vm218_vm0, %v1764_v50, 0.0 }
 0xd4a   :  { %v1765_v49 = vsel %vm218_vm0, %v1763_v48, 0.0 }
 0xd4b   :  { %1766 = vadd.xlane.f32.xlu0 %v1765_v49 }
 0xd4f   :  { %1769 = vadd.xlane.f32.xlu0 %v1768_v7 }
 0xdd8   :  { %v1767_v0 = vpop.xlane.xlu0 %1766 }
 0xdd9   :  { %v1771_v12 = vmul.f32 0.03125, %v1767_v0 }
 0xddb   :  { %v1773_v1 = vadd.f32 1e-05, %v1771_v12 }
 0xddc   :  { %v1770_v2 = vpop.xlane.xlu0 %1769 }
 0xddd   :  { %2392 = vrsqrt.f32 %v1773_v1  ;;  %v1772_v3 = vmul.f32 0.03125, %v1770_v2 }
 0xddf   :  { %v1774_v4 = vadd.f32 1e-05, %v1772_v3 }
 0xde1   :  { %2394 = vrsqrt.f32 %v1774_v4 }
 0xde7   :  { %v2393_v6 = vpop.eup %2392 }
 0xde8   :  { %v1777_v10 = vmul.f32 %v2393_v6, %v1761_v47 }
 0xdea   :  { %v1785_v14 = vmul.f32 %v2087_v9, %v1777_v10 }
 0xdeb   :  { %v2395_v15 = vpop.eup %2394 }
 0xdec   :  { %v1778_v16 = vmul.f32 %v2395_v15, %v1762_v46  ;;  %v1793_v17 = vadd.f32 %v2088_v11, %v1785_v14 }
 0xdee   :  { %v1786_v18 = vmul.f32 %v2087_v9, %v1778_v16  ;;  %2267 = vmatprep.mubr.msk.f32.mxu1 %vm218_vm0, %v1793_v17 }
 0xdf0   :  { %v1794_v19 = vadd.f32 %v2088_v11, %v1786_v18 }
 0xdf2   :  { %2268 = vmatmul.mubr.msk.f32.vlgmr.msra.gmra.mrb[20].mxu1 %vm218_vm0, %v1794_v19 }
 0xec5   :  { %v2269_v23 = vpop.f32.mrb[20].mxu1 }
 0xec6   :  { %v1884_v24 = vadd.f32 %v2269_v23, %v2089_v22  ;;  %v1878_v25 = vpop.f32.mrb[21].mxu1 }
 0xec7   :  { %v1879_v26 = vadd.f32 %v2089_v22, %v1878_v25 }
 0xec8   :  { %v1888_v28 = vmax.f32 %v1884_v24, 0.0 }
 0xec9   :  { %v1887_v27 = vmax.f32 %v1879_v26, 0.0 }
 0xecb   :  { %2286 = vmatprep.mubr.msk.f32.mxu0 %vm1904_vm6, %v1887_v27 }
 0xecc   :  { %2287 = vmatmul.mubr.msk.f32.vlgmr.msra.gmra.mrb[16].mxu0 %vm1904_vm6, %v1888_v28 }
 0xf9f   :  { %v2288_v30 = vpop.f32.mrb[16].mxu0 }
 0xfa0   :  { %v1983_v31 = vadd.f32 %v2288_v30, %v2092_v29  ;;  %v1977_v32 = vpop.f32.mrb[17].mxu0 }
 0xfa1   :  { %v1978_v33 = vadd.f32 %v2092_v29, %v1977_v32 }
 0xfa2   :  { %v1987_v34 = vadd.f32 %v1983_v31, %v1794_v19 }
 0xfa3   :  { %v1986_v35 = vadd.f32 %v1978_v33, %v1793_v17 }
 0xfa4   :  { %v1993_v36 = vsel %vm218_vm0, %v1987_v34, 0.0 }
 0xfa5   :  { %1994 = vadd.xlane.f32.xlu0 %v1993_v36  ;;  %v1990_v37 = vsel %vm218_vm0, %v1986_v35, 0.0 }
 0xfa6   :  { %1991 = vadd.xlane.f32.xlu1 %v1990_v37 }
0x1032   :  { %v1995_v38 = vpop.xlane.xlu0 %1994 }
0x1033   :  { %v1997_v39 = vmul.f32 0.03125, %v1995_v38  ;;  %v1992_v40 = vpop.xlane.xlu1 %1991 }
0x1034   :  { %v1996_v41 = vmul.f32 0.03125, %v1992_v40 }
0x1035   :  { %v1999_v42 = vsub.f32 %v1987_v34, %v1997_v39 }
0x1036   :  { %v1998_v43 = vsub.f32 %v1986_v35, %v1996_v41 }
0x1037   :  { %v2001_v44 = vmul.f32 %v1999_v42, %v1999_v42 }
0x1038   :  { %v2000_v45 = vmul.f32 %v1998_v43, %v1998_v43 }
0x1039   :  { %v2005_v46 = vsel %vm218_vm0, %v2001_v44, 0.0 }
0x103a   :  { %2006 = vadd.xlane.f32.xlu0 %v2005_v46  ;;  %v2002_v47 = vsel %vm218_vm0, %v2000_v45, 0.0 }
0x103b   :  { %2003 = vadd.xlane.f32.xlu1 %v2002_v47 }
0x10c7   :  { %v2007_v48 = vpop.xlane.xlu0 %2006 }
0x10c8   :  { %v2009_v49 = vmul.f32 0.03125, %v2007_v48  ;;  %v2004_v50 = vpop.xlane.xlu1 %2003 }
0x10c9   :  { %v2008_v7 = vmul.f32 0.03125, %v2004_v50 }
0x10ca   :  { %v2011_v5 = vadd.f32 1e-05, %v2009_v49 }
0x10cb   :  { %v2010_v51 = vadd.f32 1e-05, %v2008_v7 }
0x10cc   :  { %2396 = vrsqrt.f32 %v2011_v5 }
0x10cd   :  { %2398 = vrsqrt.f32 %v2010_v51 }
0x10d6   :  { %v2397_v52 = vpop.eup %2396 }
0x10d7   :  { %v2399_v54 = vpop.eup %2398  ;;  %v2015_v55 = vmul.f32 %v2397_v52, %v1999_v42 }
0x10d8   :  { %v2014_v56 = vmul.f32 %v2399_v54, %v1998_v43 }
0x10d9   :  { %v2023_v58 = vmul.f32 %v2095_v53, %v2015_v55 }
0x10da   :  { %v2022_v8 = vmul.f32 %v2095_v53, %v2014_v56 }
0x10db   :  { %v2031_v59 = vadd.f32 %v2096_v57, %v2023_v58 }
0x10dc   :  { %v2030_v60 = vadd.f32 %v2096_v57, %v2022_v8 }
0x10dd   :  { %2033 = vst.msk [vmem:[#allocation24 + $0x8] sm:$0xff] %vm218_vm0, %v2031_v59 }
0x10de   :  { %2032 = vst.msk [vmem:[#allocation24] sm:$0xff] %vm218_vm0, %v2030_v60 }
0x10df   :  { %2697 = shalt.err (!%p2694_p10)
}
0x10e0   :  { %s2698_s11 = scalar_lea.hbm %s3190_s13, 256 }
0x10e1   :  { %p2699_p11 = scmp.ne.s32.totalorder %s3190_s13, %s2698_s11  ;;  %p2702_p12 = scmp.lt.u32.totalorder %s2698_s11, %s3190_s13 }
0x10e3   :  { %p2704_p13 = pnand %p2702_p12, %p2699_p11 }
0x10e5   :  { %2707 = shalt.err (!%p2704_p13)
}
0x10e6   :  { %2045 = dma.vmem_to_hbm [thread:$0]  %s2040_s22, 256, %s3190_s13, [#allocation5], %s2726_s20, %s2726_s20, %s2727_s21  }
0x10e7   :  { %2722 = dma.done.wait [#allocation5], 256  }
0x10e8   :  { %2723 = vsyncadd [#allocation5], 4294967040 }
0x10e9   :  { %2049 = vsyncpa [#allocation4], 1 }
0x10ea   :  { %2050 = vsyncpa [#allocation7], 1 }
0x10eb   :  { %2051 = vsyncpa [#allocation10], 1 }
0x10ec   :  { %2052 = vsyncpa [#allocation13], 1 }
0x10ed   :  { %2053 = vsyncpa [#allocation16], 1 }
0x10ee   :  { %2054 = vsyncpa [#allocation19], 1 }
0x10ef   :  { %2055 = vsyncpa [#allocation22], 1 }
0x10f0   :  { %2056 = vsyncpa [#allocation5], 1 }

// kernel: tpu_custom_call.1
= control target key start
LH: loop header
LB: loop body
LE: loop exit
PB: predicated region body
PF: predicated region fallthrough
CT: control target
= control target key end

     0   :  { %18 = vsyncpa [#allocation4], 0  ;;  %s3177_s0 = inlined_call_operand.hbm [shape: f32[2,8,32], index: 0, kind: input, shape index: {}]   ;;  %s3178_s1 = inlined_call_operand.hbm [shape: f32[32,96], index: 1, kind: input, shape index: {}]   ;;  %s3179_s2 = inlined_call_operand.hbm [shape: f32[1,96], index: 2, kind: input, shape index: {}]   ;;  %s3180_s3 = inlined_call_operand.hbm [shape: f32[32,32], index: 3, kind: input, shape index: {}]   ;;  %s3181_s4 = inlined_call_operand.hbm [shape: f32[1,32], index: 4, kind: input, shape index: {}]   ;;  %s3182_s5 = inlined_call_operand.hbm [shape: f32[32,64], index: 5, kind: input, shape index: {}]   ;;  %s3183_s6 = inlined_call_operand.hbm [shape: f32[1,64], index: 6, kind: input, shape index: {}]   ;;  %s3184_s7 = inlined_call_operand.hbm [shape: f32[64,32], index: 7, kind: input, shape index: {}]   ;;  %s3185_s8 = inlined_call_operand.hbm [shape: f32[1,32], index: 8, kind: input, shape index: {}]   ;;  %s3186_s9 = inlined_call_operand.hbm [shape: f32[1,32], index: 9, kind: input, shape index: {}]   ;;  %s3187_s10 = inlined_call_operand.hbm [shape: f32[1,32], index: 10, kind: input, shape index: {}]   ;;  %s3188_s11 = inlined_call_operand.hbm [shape: f32[1,32], index: 11, kind: input, shape index: {}]   ;;  %s3189_s12 = inlined_call_operand.hbm [shape: f32[1,32], index: 12, kind: input, shape index: {}]   ;;  %s3190_s13 = inlined_call_operand.hbm [shape: f32[2,8,32], index: 13, kind: output, shape index: {}]  }
   0x1   :  { %19 = vsyncpa [#allocation7], 0 }
   0x2   :  { %20 = vsyncpa [#allocation10], 0 }
   0x3   :  { %21 = vsyncpa [#allocation13], 0 }
   0x4   :  { %22 = vsyncpa [#allocation16], 0 }
   0x5   :  { %23 = vsyncpa [#allocation19], 0 }
   0x6   :  { %24 = vsyncpa [#allocation22], 0 }
   0x7   :  { %25 = vsyncpa [#allocation5], 0  ;;  %s2724_s25 = smov [#allocation6]   ;;  %s2725_s27 = smov [#allocation9]  }
   0x8   :  { %s43_s26 = sshll.u32 %s2724_s25, 4  ;;  %s65_s28 = sshll.u32 %s2725_s27, 4  ;;  %s44_s26 = int_to_ptr.vmem [resolvable:$true] %s43_s26  ;;  %s2825_s28 = int_to_ptr.vmem [resolvable:$true] %s65_s28 }
   0x9   :  { %s2400_s14 = scalar_lea.hbm %s3178_s1, 512 }
   0xa   :  { %p2401_p0 = scmp.ne.s32.totalorder %s3178_s1, %s2400_s14  ;;  %p2404_p1 = scmp.lt.u32.totalorder %s2400_s14, %s3178_s1 }
   0xc   :  { %p2406_p2 = pnand %p2404_p1, %p2401_p0 }
   0xe   :  { %2409 = shalt.err (!%p2406_p2)
}
   0xf   :  { %s2410_s19 = scalar_lea.vmem %s44_s26, 512  ;;  %p2415_p4 = scmp.lt.s32.totalorder %s44_s26, %s44_s26 }
  0x10   :  { %p2411_p3 = scmp.ne.s32.totalorder %s44_s26, %s2410_s19  ;;  %p2416_p5 = scmp.lt.s32.totalorder %s2410_s19, %s2410_s19 }
  0x12   :  { %p2417_p6 = por %p2416_p5, %p2415_p4 }
  0x14   :  { %p2418_p7 = pnand %p2417_p6, %p2411_p3 }
  0x16   :  { %2421 = shalt.err (!%p2418_p7)
}
  0x17   :  { %s2726_s20 = smov 128   ;;  %s2727_s21 = smov 8  }
  0x18   :  { %49 = dma.hbm_to_vmem [thread:$0]  %s3178_s1, 512, %s44_s26, [#allocation7], %s2726_s20, %s2726_s20, %s2727_s21  }
  0x19   :  { %s2422_s27 = scalar_lea.hbm %s3180_s3, 512 }
  0x1a   :  { %p2423_p8 = scmp.ne.s32.totalorder %s3180_s3, %s2422_s27  ;;  %p2426_p9 = scmp.lt.u32.totalorder %s2422_s27, %s3180_s3 }
  0x1c   :  { %p2428_p10 = pnand %p2426_p9, %p2423_p8 }
  0x1e   :  { %2431 = shalt.err (!%p2428_p10)
}
  0x1f   :  { %s2432_s16 = scalar_lea.vmem %s2825_s28, 512  ;;  %p2437_p12 = scmp.lt.s32.totalorder %s2825_s28, %s2825_s28 }
  0x20   :  { %p2433_p11 = scmp.ne.s32.totalorder %s2825_s28, %s2432_s16  ;;  %p2438_p13 = scmp.lt.s32.totalorder %s2432_s16, %s2432_s16 }
  0x22   :  { %p2439_p0 = por %p2438_p13, %p2437_p12 }
  0x24   :  { %p2440_p1 = pnand %p2439_p0, %p2433_p11 }
  0x26   :  { %2443 = shalt.err (!%p2440_p1)
}
  0x27   :  { %71 = dma.hbm_to_vmem [thread:$0]  %s3180_s3, 512, %s2825_s28, [#allocation10], %s2726_s20, %s2726_s20, %s2727_s21  }
  0x28   :  { %s2728_s17 = smov [#allocation12]   ;;  %s2729_s19 = smov [#allocation15]  }
  0x29   :  { %s87_s18 = sshll.u32 %s2728_s17, 4  ;;  %s109_s22 = sshll.u32 %s2729_s19, 4  ;;  %s88_s18 = int_to_ptr.vmem [resolvable:$true] %s87_s18  ;;  %s2862_s22 = int_to_ptr.vmem [resolvable:$true] %s109_s22 }
  0x2a   :  { %s2444_s25 = scalar_lea.hbm %s3182_s5, 512 }
  0x2b   :  { %p2445_p2 = scmp.ne.s32.totalorder %s3182_s5, %s2444_s25  ;;  %p2448_p3 = scmp.lt.u32.totalorder %s2444_s25, %s3182_s5 }
  0x2d   :  { %p2450_p4 = pnand %p2448_p3, %p2445_p2 }
  0x2f   :  { %2453 = shalt.err (!%p2450_p4)
}
  0x30   :  { %s2454_s3 = scalar_lea.vmem %s88_s18, 512  ;;  %p2459_p6 = scmp.lt.s32.totalorder %s88_s18, %s88_s18 }
  0x31   :  { %p2455_p5 = scmp.ne.s32.totalorder %s88_s18, %s2454_s3  ;;  %p2460_p7 = scmp.lt.s32.totalorder %s2454_s3, %s2454_s3 }
  0x33   :  { %p2461_p8 = por %p2460_p7, %p2459_p6 }
  0x35   :  { %p2462_p9 = pnand %p2461_p8, %p2455_p5 }
  0x37   :  { %2465 = shalt.err (!%p2462_p9)
}
  0x38   :  { %93 = dma.hbm_to_vmem [thread:$0]  %s3182_s5, 512, %s88_s18, [#allocation13], %s2726_s20, %s2726_s20, %s2727_s21  }
  0x39   :  { %s2466_s26 = scalar_lea.hbm %s3184_s7, 1024 }
  0x3a   :  { %p2467_p10 = scmp.ne.s32.totalorder %s3184_s7, %s2466_s26  ;;  %p2470_p11 = scmp.lt.u32.totalorder %s2466_s26, %s3184_s7 }
  0x3c   :  { %p2472_p12 = pnand %p2470_p11, %p2467_p10 }
  0x3e   :  { %2475 = shalt.err (!%p2472_p12)
}
  0x3f   :  { %s2476_s25 = scalar_lea.vmem %s2862_s22, 1024  ;;  %p2481_p0 = scmp.lt.s32.totalorder %s2862_s22, %s2862_s22 }
  0x40   :  { %p2477_p13 = scmp.ne.s32.totalorder %s2862_s22, %s2476_s25  ;;  %p2482_p1 = scmp.lt.s32.totalorder %s2476_s25, %s2476_s25 }
  0x42   :  { %p2483_p2 = por %p2482_p1, %p2481_p0 }
  0x44   :  { %p2484_p3 = pnand %p2483_p2, %p2477_p13 }
  0x46   :  { %2487 = shalt.err (!%p2484_p3)
}
  0x47   :  { %115 = dma.hbm_to_vmem [thread:$0]  %s3184_s7, 1024, %s2862_s22, [#allocation16], %s2726_s20, %s2726_s20, %s2727_s21  }
  0x48   :  { %s2730_s27 = smov [#allocation18]   ;;  %s2731_s30 = smov [#allocation21]  }
  0x49   :  { %s132_s29 = sshll.u32 %s2730_s27, 4  ;;  %s152_s14 = sshll.u32 %s2731_s30, 4  ;;  %s133_s29 = int_to_ptr.vmem [resolvable:$true] %s132_s29  ;;  %s153_s14 = int_to_ptr.vmem [resolvable:$true] %s152_s14 }
  0x4a   :  { %s2488_s15 = scalar_lea.hbm %s3186_s9, 16 }
  0x4b   :  { %p2489_p4 = scmp.ne.s32.totalorder %s3186_s9, %s2488_s15  ;;  %p2492_p5 = scmp.lt.u32.totalorder %s2488_s15, %s3186_s9 }
  0x4d   :  { %p2494_p6 = pnand %p2492_p5, %p2489_p4 }
  0x4f   :  { %2497 = shalt.err (!%p2494_p6)
}
  0x50   :  { %s2498_s7 = scalar_lea.vmem %s133_s29, 16  ;;  %s2502_s22 = scalar_lea.vmem %s133_s29, 32 }
  0x51   :  { %p2499_p7 = scmp.ne.s32.totalorder %s133_s29, %s2498_s7  ;;  %p2503_p8 = scmp.lt.s32.totalorder %s133_s29, %s133_s29 }
  0x52   :  { %p2504_p9 = scmp.lt.s32.totalorder %s2502_s22, %s2498_s7 }
  0x54   :  { %p2505_p10 = por %p2504_p9, %p2503_p8 }
  0x56   :  { %p2506_p11 = pnand %p2505_p10, %p2499_p7 }
  0x58   :  { %2509 = shalt.err (!%p2506_p11)
}
  0x59   :  { %135 = dma.hbm_to_vmem [thread:$0]  %s3186_s9, 16, %s133_s29, [#allocation19]  }
  0x5a   :  { %s2510_s5 = scalar_lea.hbm %s3188_s11, 16 }
  0x5b   :  { %p2511_p12 = scmp.ne.s32.totalorder %s3188_s11, %s2510_s5  ;;  %p2514_p13 = scmp.lt.u32.totalorder %s2510_s5, %s3188_s11 }
  0x5d   :  { %p2516_p0 = pnand %p2514_p13, %p2511_p12 }
  0x5f   :  { %2519 = shalt.err (!%p2516_p0)
}
  0x60   :  { %s2520_s28 = scalar_lea.vmem %s153_s14, 16  ;;  %s2524_s15 = scalar_lea.vmem %s153_s14, 32 }
  0x61   :  { %p2521_p1 = scmp.ne.s32.totalorder %s153_s14, %s2520_s28  ;;  %p2525_p2 = scmp.lt.s32.totalorder %s153_s14, %s153_s14 }
  0x62   :  { %p2526_p3 = scmp.lt.s32.totalorder %s2524_s15, %s2520_s28 }
  0x64   :  { %p2527_p4 = por %p2526_p3, %p2525_p2 }
  0x66   :  { %p2528_p5 = pnand %p2527_p4, %p2521_p1 }
  0x68   :  { %2531 = shalt.err (!%p2528_p5)
}
  0x69   :  { %155 = dma.hbm_to_vmem [thread:$0]  %s3188_s11, 16, %s153_s14, [#allocation22]  }
  0x6a   :  { %s2732_s16 = smov [#allocation3]   ;;  %s2733_s26 = smov [#allocation8]  }
  0x6b   :  { %s31_s1 = sshll.u32 %s2732_s16, 4  ;;  %s56_s17 = sshll.u32 %s2733_s26, 4  ;;  %s32_s1 = int_to_ptr.vmem [resolvable:$true] %s31_s1  ;;  %s57_s17 = int_to_ptr.vmem [resolvable:$true] %s56_s17 }
  0x6c   :  { %s2532_s19 = scalar_lea.hbm %s3177_s0, 256 }
  0x6d   :  { %p2533_p6 = scmp.ne.s32.totalorder %s3177_s0, %s2532_s19  ;;  %p2536_p7 = scmp.lt.u32.totalorder %s2532_s19, %s3177_s0 }
  0x6f   :  { %p2538_p8 = pnand %p2536_p7, %p2533_p6 }
  0x71   :  { %2541 = shalt.err (!%p2538_p8)
}
  0x72   :  { %s2542_s11 = scalar_lea.vmem %s32_s1, 256  ;;  %p2547_p10 = scmp.lt.s32.totalorder %s32_s1, %s32_s1 }
  0x73   :  { %p2543_p9 = scmp.ne.s32.totalorder %s32_s1, %s2542_s11  ;;  %p2548_p11 = scmp.lt.s32.totalorder %s2542_s11, %s2542_s11 }
  0x75   :  { %p2549_p12 = por %p2548_p11, %p2547_p10 }
  0x77   :  { %p2550_p13 = pnand %p2549_p12, %p2543_p9 }
  0x79   :  { %2553 = shalt.err (!%p2550_p13)
}
  0x7a   :  { %37 = dma.hbm_to_vmem [thread:$0]  %s3177_s0, 256, %s32_s1, [#allocation4], %s2726_s20, %s2726_s20, %s2727_s21  }
  0x7b   :  { %s2554_s3 = scalar_lea.hbm %s3179_s2, 16 }
  0x7c   :  { %p2555_p0 = scmp.ne.s32.totalorder %s3179_s2, %s2554_s3  ;;  %p2558_p1 = scmp.lt.u32.totalorder %s2554_s3, %s3179_s2 }
  0x7e   :  { %p2560_p2 = pnand %p2558_p1, %p2555_p0 }
  0x80   :  { %2563 = shalt.err (!%p2560_p2)
}
  0x81   :  { %s2564_s16 = scalar_lea.vmem %s57_s17, 16  ;;  %s2568_s26 = scalar_lea.vmem %s57_s17, 32 }
  0x82   :  { %p2565_p3 = scmp.ne.s32.totalorder %s57_s17, %s2564_s16  ;;  %p2569_p4 = scmp.lt.s32.totalorder %s57_s17, %s57_s17 }
  0x83   :  { %p2570_p5 = scmp.lt.s32.totalorder %s2568_s26, %s2564_s16 }
  0x85   :  { %p2571_p6 = por %p2570_p5, %p2569_p4 }
  0x87   :  { %p2572_p7 = pnand %p2571_p6, %p2565_p3 }
  0x89   :  { %2575 = shalt.err (!%p2572_p7)
}
  0x8a   :  { %59 = dma.hbm_to_vmem [thread:$0]  %s3179_s2, 16, %s57_s17, [#allocation7]  }
  0x8b   :  { %s2734_s7 = smov [#allocation11]   ;;  %s2735_s19 = smov [#allocation14]  }
  0x8c   :  { %s78_s22 = sshll.u32 %s2734_s7, 4  ;;  %s100_s23 = sshll.u32 %s2735_s19, 4  ;;  %s79_s22 = int_to_ptr.vmem [resolvable:$true] %s78_s22  ;;  %s101_s23 = int_to_ptr.vmem [resolvable:$true] %s100_s23 }
  0x8d   :  { %s2576_s5 = scalar_lea.hbm %s3181_s4, 16 }
  0x8e   :  { %p2577_p8 = scmp.ne.s32.totalorder %s3181_s4, %s2576_s5  ;;  %p2580_p9 = scmp.lt.u32.totalorder %s2576_s5, %s3181_s4 }
  0x90   :  { %p2582_p10 = pnand %p2580_p9, %p2577_p8 }
  0x92   :  { %2585 = shalt.err (!%p2582_p10)
}
  0x93   :  { %s2586_s2 = scalar_lea.vmem %s79_s22, 16  ;;  %s2590_s17 = scalar_lea.vmem %s79_s22, 32 }
  0x94   :  { %p2587_p11 = scmp.ne.s32.totalorder %s79_s22, %s2586_s2  ;;  %p2591_p12 = scmp.lt.s32.totalorder %s79_s22, %s79_s22 }
  0x95   :  { %p2592_p13 = scmp.lt.s32.totalorder %s2590_s17, %s2586_s2 }
  0x97   :  { %p2593_p0 = por %p2592_p13, %p2591_p12 }
  0x99   :  { %p2594_p1 = pnand %p2593_p0, %p2587_p11 }
  0x9b   :  { %2597 = shalt.err (!%p2594_p1)
}
  0x9c   :  { %81 = dma.hbm_to_vmem [thread:$0]  %s3181_s4, 16, %s79_s22, [#allocation10]  }
  0x9d   :  { %s2598_s9 = scalar_lea.hbm %s3183_s6, 16 }
  0x9e   :  { %p2599_p2 = scmp.ne.s32.totalorder %s3183_s6, %s2598_s9  ;;  %p2602_p3 = scmp.lt.u32.totalorder %s2598_s9, %s3183_s6 }
  0xa0   :  { %p2604_p4 = pnand %p2602_p3, %p2599_p2 }
  0xa2   :  { %2607 = shalt.err (!%p2604_p4)
}
  0xa3   :  { %s2608_s1 = scalar_lea.vmem %s101_s23, 16  ;;  %s2612_s7 = scalar_lea.vmem %s101_s23, 32 }
  0xa4   :  { %p2609_p5 = scmp.ne.s32.totalorder %s101_s23, %s2608_s1  ;;  %p2613_p6 = scmp.lt.s32.totalorder %s101_s23, %s101_s23 }
  0xa5   :  { %p2614_p7 = scmp.lt.s32.totalorder %s2612_s7, %s2608_s1 }
  0xa7   :  { %p2615_p8 = por %p2614_p7, %p2613_p6 }
  0xa9   :  { %p2616_p9 = pnand %p2615_p8, %p2609_p5 }
  0xab   :  { %2619 = shalt.err (!%p2616_p9)
}
  0xac   :  { %103 = dma.hbm_to_vmem [thread:$0]  %s3183_s6, 16, %s101_s23, [#allocation13]  }
  0xad   :  { %s2736_s19 = smov [#allocation17]   ;;  %s2737_s25 = smov [#allocation20]  }
  0xae   :  { %s122_s24 = sshll.u32 %s2736_s19, 4  ;;  %s142_s5 = sshll.u32 %s2737_s25, 4  ;;  %s123_s24 = int_to_ptr.vmem [resolvable:$true] %s122_s24  ;;  %s143_s5 = int_to_ptr.vmem [resolvable:$true] %s142_s5 }
  0xaf   :  { %s2620_s18 = scalar_lea.hbm %s3185_s8, 16 }
  0xb0   :  { %p2621_p10 = scmp.ne.s32.totalorder %s3185_s8, %s2620_s18  ;;  %p2624_p11 = scmp.lt.u32.totalorder %s2620_s18, %s3185_s8 }
  0xb2   :  { %p2626_p12 = pnand %p2624_p11, %p2621_p10 }
  0xb4   :  { %2629 = shalt.err (!%p2626_p12)
}
  0xb5   :  { %s2630_s6 = scalar_lea.vmem %s123_s24, 16  ;;  %s2634_s23 = scalar_lea.vmem %s123_s24, 32 }
  0xb6   :  { %p2631_p13 = scmp.ne.s32.totalorder %s123_s24, %s2630_s6  ;;  %p2635_p0 = scmp.lt.s32.totalorder %s123_s24, %s123_s24 }
  0xb7   :  { %p2636_p1 = scmp.lt.s32.totalorder %s2634_s23, %s2630_s6 }
  0xb9   :  { %p2637_p2 = por %p2636_p1, %p2635_p0 }
  0xbb   :  { %p2638_p3 = pnand %p2637_p2, %p2631_p13 }
  0xbd   :  { %2641 = shalt.err (!%p2638_p3)
}
  0xbe   :  { %125 = dma.hbm_to_vmem [thread:$0]  %s3185_s8, 16, %s123_s24, [#allocation16]  }
  0xbf   :  { %s2642_s29 = scalar_lea.hbm %s3187_s10, 16 }
  0xc0   :  { %p2643_p4 = scmp.ne.s32.totalorder %s3187_s10, %s2642_s29  ;;  %p2646_p5 = scmp.lt.u32.totalorder %s2642_s29, %s3187_s10 }
  0xc2   :  { %p2648_p6 = pnand %p2646_p5, %p2643_p4 }
  0xc4   :  { %2651 = shalt.err (!%p2648_p6)
}
  0xc5   :  { %s2652_s7 = scalar_lea.vmem %s143_s5, 16  ;;  %s2656_s4 = scalar_lea.vmem %s143_s5, 32 }
  0xc6   :  { %p2653_p7 = scmp.ne.s32.totalorder %s143_s5, %s2652_s7  ;;  %p2657_p8 = scmp.lt.s32.totalorder %s143_s5, %s143_s5 }
  0xc7   :  { %p2658_p9 = scmp.lt.s32.totalorder %s2656_s4, %s2652_s7 }
  0xc9   :  { %p2659_p10 = por %p2658_p9, %p2657_p8 }
  0xcb   :  { %p2660_p11 = pnand %p2659_p10, %p2653_p7 }
  0xcd   :  { %2663 = shalt.err (!%p2660_p11)
}
  0xce   :  { %145 = dma.hbm_to_vmem [thread:$0]  %s3187_s10, 16, %s143_s5, [#allocation19]  }
  0xcf   :  { %s2738_s19 = smov [#allocation23]   ;;  %s2664_s14 = scalar_lea.hbm %s3189_s12, 16 }
  0xd0   :  { %s162_s24 = sshll.u32 %s2738_s19, 4  ;;  %p2665_p12 = scmp.ne.s32.totalorder %s3189_s12, %s2664_s14  ;;  %s163_s24 = int_to_ptr.vmem [resolvable:$true] %s162_s24 }
  0xd1   :  { %p2668_p13 = scmp.lt.u32.totalorder %s2664_s14, %s3189_s12 }
  0xd3   :  { %p2670_p0 = pnand %p2668_p13, %p2665_p12 }
  0xd5   :  { %2673 = shalt.err (!%p2670_p0)
}
  0xd6   :  { %s2674_s30 = scalar_lea.vmem %s163_s24, 16  ;;  %s2678_s10 = scalar_lea.vmem %s163_s24, 32 }
  0xd7   :  { %p2675_p1 = scmp.ne.s32.totalorder %s163_s24, %s2674_s30  ;;  %p2679_p2 = scmp.lt.s32.totalorder %s163_s24, %s163_s24 }
  0xd8   :  { %p2680_p3 = scmp.lt.s32.totalorder %s2678_s10, %s2674_s30 }
  0xda   :  { %p2681_p4 = por %p2680_p3, %p2679_p2 }
  0xdc   :  { %p2682_p5 = pnand %p2681_p4, %p2675_p1 }
  0xde   :  { %2685 = shalt.err (!%p2682_p5)
}
  0xdf   :  { %165 = dma.hbm_to_vmem [thread:$0]  %s3189_s12, 16, %s163_s24, [#allocation22]  }
  0xe0   :  { %2708 = dma.done.wait [#allocation4], 256  }
  0xe1   :  { %2709 = vsyncadd [#allocation4], 4294967040 }
  0xe2   :  { %2710 = dma.done.wait [#allocation7], 528  }
  0xe3   :  { %2711 = vsyncadd [#allocation7], 4294966768 }
  0xe4   :  { %2712 = dma.done.wait [#allocation10], 528  }
  0xe5   :  { %2713 = vsyncadd [#allocation10], 4294966768 }
  0xe6   :  { %2714 = dma.done.wait [#allocation13], 528  }
  0xe7   :  { %2715 = vsyncadd [#allocation13], 4294966768 }
  0xe8   :  { %2716 = dma.done.wait [#allocation16], 1040  }
  0xe9   :  { %2717 = vsyncadd [#allocation16], 4294966256 }
  0xea   :  { %2718 = dma.done.wait [#allocation19], 32  }
  0xeb   :  { %2719 = vsyncadd [#allocation19], 4294967264 }
  0xec   :  { %2720 = dma.done.wait [#allocation22], 32  }
  0xed   :  { %2721 = vsyncadd [#allocation22], 4294967264  ;;  %vm218_vm0 = vcmask 261120   ;;  %v207_v0 = vld [vmem:[#allocation6] sm:$0xff]  ;;  %v208_v1 = vld [vmem:[#allocation6 + $0x8] sm:$0xff]  ;;  %v2739_v8 = vmov 0.0  }
  0xee   :  { %v209_v2 = vld [vmem:[#allocation6 + $0x10] sm:$0xff]  ;;  %v2289_v3 = vpack.c.bf16 %v208_v1, %v207_v0  ;;  %v210_v4 = vld [vmem:[#allocation6 + $0x18] sm:$0xff]  ;;  %2178 = vmatprep.subr.mxu0 %v2739_v8  ;;  %vm2740_vm1 = vmmov 0   ;;  %v2057_v9 = vld [vmem:[#allocation8] ss:$0 sm:$0xff]  ;;  %s2741_s12 = smov 96  }
  0xef   :  { %v3010_v5 = vld [vmem:[#allocation3] sm:$0xff]  ;;  %v2293_v6 = vpack.c.bf16 %v210_v4, %v209_v2  ;;  %v3014_v7 = vld [vmem:[#allocation3 + $0x8] sm:$0xff]  ;;  %2180 = vmatprep.mubr.msk.f32.mxu0 %vm2740_vm1, %v2739_v8  ;;  %vm303_vm2 = vcmask 64512   ;;  %s2742_s23 = smov 64   ;;  %s2743_s3 = smov 88   ;;  %vm969_vm3 = vcmask 130112  }
  0xf0   :  { %2165 = vmatprep.mubr.msk.f32.mxu1 %vm218_vm0, %v3010_v5  ;;  %2290 = vmatprep.subr.bf16.mxu1 %v2289_v3  ;;  %s2744_s28 = smov 120   ;;  %s2745_s15 = smov 56   ;;  %vm1310_vm4 = vcmask 195712   ;;  %vm1651_vm5 = vcmask 261312   ;;  %vm1904_vm6 = vcmask 523264  }
  0xf1   :  { %2292 = vmatpush3.bf16.msra.mxu1 %v2289_v3  ;;  %s2746_s9 = smov 80   ;;  %s2747_s29 = smov 112  }
  0xf2   :  { %2294 = vmatprep.subr.bf16.mxu1 %v2293_v6  ;;  %s2748_s16 = smov 48   ;;  %s2749_s26 = smov 72  }
  0xf3   :  { %s2750_s0 = smov 104   ;;  %s2751_s1 = smov 40  }
  0xf4   :  { %s2752_s7 = smov 16   ;;  %s2753_s4 = smov 24  }
  0xf5   :  { %2296 = vmatpush3.bf16.msra.mxu1 %v2293_v6  ;;  %s2754_s8 = smov [#allocation24]  }
  0xf6   :  { %2168 = vmatprep.subr.mxu1 %v2739_v8  ;;  %s2039_s22 = sshll.u32 %s2754_s8, 4  ;;  %s2040_s22 = int_to_ptr.vmem [resolvable:$true] %s2039_s22 }
  0xf7   :  { %s2686_s19 = scalar_lea.vmem %s2040_s22, 256  ;;  %p2691_p7 = scmp.lt.s32.totalorder %s2040_s22, %s2040_s22 }
  0xf8   :  { %2166 = vmatmul.mubr.msk.f32.vlgmr.msra.gmra.mrb[0].mxu1 %vm218_vm0, %v3014_v7  ;;  %p2687_p6 = scmp.ne.s32.totalorder %s2040_s22, %s2686_s19  ;;  %p2692_p8 = scmp.lt.s32.totalorder %s2686_s19, %s2686_s19 }
  0xf9   :  { %2170 = vmatprep.mubr.msk.f32.mxu1 %vm2740_vm1, %v2739_v8 }
  0xfa   :  { %p2693_p9 = por %p2692_p8, %p2691_p7 }
  0xfc   :  { %p2694_p10 = pnand %p2693_p9, %p2687_p6 }
 0x1cb   :  { %v2167_v10 = vpop.f32.mrb[0].mxu1 }
 0x1cc   :  { %v291_v11 = vpop.f32.mrb[1].mxu1  ;;  %v3027_v13 = vadd.f32 %v2167_v10, %v2057_v9 }
 0x1cd   :  { %v3024_v12 = vadd.f32 %v2057_v9, %v291_v11 }
 0x1cf   :  { %301 = vrot.lane.b32.xlu0 %v3024_v12, %s2741_s12 }
 0x1d3   :  { %379 = vrot.lane.b32.xlu0 %v3027_v13, %s2741_s12 }
 0x241   :  { %v302_v14 = vpop.permute.xlu0 %301 }
 0x242   :  { %2169 = vmatpush3.xpose.msk.msra.mxu1 %vm303_vm2, %v302_v14 }
 0x243   :  { %2173 = vmatprep.subr.mxu1 %v2739_v8 }
 0x245   :  { %2171 = vmatmul.mubr.msk.f32.vlgmr.msra.gmra.mrb[2].mxu1 %vm303_vm2, %v3024_v12  ;;  %v380_v15 = vpop.permute.xlu0 %379 }
 0x246   :  { %2174 = vmatpush3.xpose.msk.msra.mxu1 %vm303_vm2, %v380_v15  ;;  %2175 = vmatprep.mubr.msk.f32.mxu1 %vm2740_vm1, %v2739_v8 }
 0x247   :  { %2183 = vmatprep.subr.mxu1 %v2739_v8 }
 0x249   :  { %2176 = vmatmul.mubr.msk.f32.vlgmr.msra.gmra.mrb[4].mxu1 %vm303_vm2, %v3027_v13 }
 0x24a   :  { %2185 = vmatprep.mubr.msk.f32.mxu1 %vm2740_vm1, %v2739_v8 }
 0x318   :  { %v374_v16 = vpop.f32.mrb[2].mxu1 }
 0x319   :  { %v2172_v17 = vpop.f32.mrb[3].mxu1  ;;  %v455_v18 = vsel %vm303_vm2, %v374_v16, -inf }
 0x31a   :  { %456 = vmax.xlane.f32.xlu1 %v455_v18 }
 0x31c   :  { %v451_v19 = vpop.f32.mrb[4].mxu1 }
 0x31d   :  { %v2177_v20 = vpop.f32.mrb[5].mxu1  ;;  %v458_v21 = vsel %vm303_vm2, %v451_v19, -inf }
 0x31e   :  { %459 = vmax.xlane.f32.xlu1 %v458_v21 }
 0x32f   :  { %477 = vrot.lane.b32.xlu1 %v3024_v12, %s2742_s23 }
 0x333   :  { %553 = vrot.lane.b32.xlu1 %v3027_v13, %s2742_s23 }
 0x337   :  { %633 = vrot.lane.b32.xlu1 %v3024_v12, %s2743_s3 }
 0x33b   :  { %711 = vrot.lane.b32.xlu1 %v3027_v13, %s2743_s3 }
 0x3a7   :  { %v457_v22 = vpop.xlane.xlu1 %456 }
 0x3a8   :  { %v461_v23 = vsub.f32 %v374_v16, %v457_v22 }
 0x3aa   :  { %v463_v24 = vmul.f32 1.442695, %v461_v23 }
 0x3ab   :  { %v460_v25 = vpop.xlane.xlu1 %459 }
 0x3ac   :  { %2360 = vpow2.f32 %v463_v24  ;;  %v462_v26 = vsub.f32 %v451_v19, %v460_v25 }
 0x3ae   :  { %v465_v27 = vmul.f32 1.442695, %v462_v26 }
 0x3af   :  { %v478_v28 = vpop.permute.xlu1 %477 }
 0x3b0   :  { %2362 = vpow2.f32 %v465_v27  ;;  %2179 = vmatpush3.msra.mxu0 %v478_v28 }
 0x3b1   :  { %2188 = vmatprep.subr.mxu0 %v2739_v8 }
 0x3b3   :  { %v554_v29 = vpop.permute.xlu1 %553 }
 0x3b4   :  { %2184 = vmatpush3.msra.mxu1 %v554_v29 }
 0x3b5   :  { %2193 = vmatprep.subr.mxu1 %v2739_v8 }
 0x3b6   :  { %v2361_v30 = vpop.eup %2360 }
 0x3b7   :  { %v467_v31 = vsel %vm303_vm2, %v2361_v30, 0.0  ;;  %v634_v34 = vpop.permute.xlu1 %633 }
 0x3b8   :  { %468 = vadd.xlane.f32.xlu0 %v467_v31 }
 0x3ba   :  { %v2363_v32 = vpop.eup %2362 }
 0x3bb   :  { %v470_v33 = vsel %vm303_vm2, %v2363_v32, 0.0  ;;  %v712_v35 = vpop.permute.xlu1 %711 }
 0x3bc   :  { %471 = vadd.xlane.f32.xlu1 %v470_v33 }
 0x3cd   :  { %709 = vrot.lane.b32.xlu1 %v3027_v13, %s2744_s28 }
 0x3ce   :  { %631 = vrot.lane.b32.xlu0 %v3024_v12, %s2744_s28 }
 0x445   :  { %v469_v36 = vpop.xlane.xlu0 %468 }
 0x446   :  { %2364 = vrcp.f32 %v469_v36 }
 0x449   :  { %v472_v37 = vpop.xlane.xlu1 %471  ;;  %v632_v42 = vpop.permute.xlu0 %631 }
 0x44a   :  { %2366 = vrcp.f32 %v472_v37 }
 0x44d   :  { %v710_v43 = vpop.permute.xlu1 %709 }
 0x450   :  { %v2365_v38 = vpop.eup %2364 }
 0x451   :  { %v475_v39 = vmul.f32 %v2365_v38, %v2361_v30 }
 0x453   :  { %2181 = vmatmul.mubr.msk.f32.vlgmr.msra.gmra.mrb[0].mxu0 %vm303_vm2, %v475_v39 }
 0x454   :  { %v2367_v40 = vpop.eup %2366  ;;  %2189 = vmatpush3.xpose.msk.msra.mxu0 %vm303_vm2, %v634_v34  ;;  %2190 = vmatprep.mubr.msk.f32.mxu0 %vm2740_vm1, %v2739_v8 }
 0x455   :  { %v476_v41 = vmul.f32 %v2367_v40, %v2363_v32  ;;  %2198 = vmatprep.subr.mxu0 %v2739_v8 }
 0x457   :  { %2186 = vmatmul.mubr.msk.f32.vlgmr.msra.gmra.mrb[6].mxu1 %vm303_vm2, %v476_v41  ;;  %2191 = vmatmul.mubr.msk.f32.vlgmr.msra.gmra.mrb[2].mxu0 %vm303_vm2, %v632_v42 }
 0x458   :  { %2194 = vmatpush3.xpose.msk.msra.mxu1 %vm303_vm2, %v712_v35  ;;  %2195 = vmatprep.mubr.msk.f32.mxu1 %vm2740_vm1, %v2739_v8 }
 0x459   :  { %2203 = vmatprep.subr.mxu1 %v2739_v8  ;;  %2200 = vmatprep.mubr.msk.f32.mxu0 %vm2740_vm1, %v2739_v8 }
 0x45b   :  { %2196 = vmatmul.mubr.msk.f32.vlgmr.msra.gmra.mrb[8].mxu1 %vm303_vm2, %v710_v43 }
 0x45c   :  { %2205 = vmatprep.mubr.msk.f32.mxu1 %vm2740_vm1, %v2739_v8 }
 0x526   :  { %v549_v44 = vpop.f32.mrb[0].mxu0 }
 0x527   :  { %629 = vst.msk [vmem:[#allocation2] sm:$0xff] %vm303_vm2, %v549_v44  ;;  %v2182_v45 = vpop.f32.mrb[1].mxu0 }
 0x52a   :  { %v625_v46 = vpop.f32.mrb[6].mxu1  ;;  %v705_v47 = vpop.f32.mrb[2].mxu0 }
 0x52b   :  { %630 = vst.msk [vmem:[#allocation2 + $0x8] sm:$0xff] %vm303_vm2, %v625_v46  ;;  %v2187_v48 = vpop.f32.mrb[7].mxu1  ;;  %v2192_v49 = vpop.f32.mrb[3].mxu0  ;;  %v787_v50 = vsel %vm303_vm2, %v705_v47, -inf }
 0x52c   :  { %788 = vmax.xlane.f32.xlu1 %v787_v50 }
 0x52e   :  { %v783_v51 = vpop.f32.mrb[8].mxu1 }
 0x52f   :  { %v2197_v52 = vpop.f32.mrb[9].mxu1  ;;  %v790_v53 = vsel %vm303_vm2, %v783_v51, -inf }
 0x530   :  { %791 = vmax.xlane.f32.xlu0 %v790_v53 }
 0x53d   :  { %809 = vrot.lane.b32.xlu1 %v3024_v12, %s2745_s15 }
 0x541   :  { %974 = vrot.lane.b32.xlu1 %v3024_v12, %s2746_s9 }
 0x545   :  { %1052 = vrot.lane.b32.xlu1 %v3027_v13, %s2746_s9 }
 0x546   :  { %885 = vrot.lane.b32.xlu0 %v3027_v13, %s2745_s15 }
 0x54a   :  { %972 = vrot.lane.b32.xlu0 %v3024_v12, %s2747_s29 }
 0x5b9   :  { %v789_v54 = vpop.xlane.xlu1 %788 }
 0x5ba   :  { %v793_v55 = vsub.f32 %v705_v47, %v789_v54 }
 0x5bc   :  { %v795_v56 = vmul.f32 1.442695, %v793_v55 }
 0x5bd   :  { %v810_v57 = vpop.permute.xlu1 %809  ;;  %v792_v58 = vpop.xlane.xlu0 %791 }
 0x5be   :  { %2368 = vpow2.f32 %v795_v56  ;;  %v794_v59 = vsub.f32 %v783_v51, %v792_v58  ;;  %2199 = vmatpush3.msra.mxu0 %v810_v57 }
 0x5bf   :  { %2208 = vmatprep.subr.mxu0 %v2739_v8 }
 0x5c0   :  { %v797_v60 = vmul.f32 1.442695, %v794_v59 }
 0x5c1   :  { %v886_v61 = vpop.permute.xlu0 %885  ;;  %v975_v2 = vpop.permute.xlu1 %974 }
 0x5c2   :  { %2370 = vpow2.f32 %v797_v60  ;;  %2204 = vmatpush3.msra.mxu1 %v886_v61 }
 0x5c3   :  { %2213 = vmatprep.subr.mxu1 %v2739_v8 }
 0x5c5   :  { %v1053_v3 = vpop.permute.xlu1 %1052  ;;  %v973_v15 = vpop.permute.xlu0 %972 }
 0x5c8   :  { %v2369_v62 = vpop.eup %2368 }
 0x5c9   :  { %v799_v63 = vsel %vm303_vm2, %v2369_v62, 0.0 }
 0x5ca   :  { %800 = vadd.xlane.f32.xlu1 %v799_v63 }
 0x5cc   :  { %v2371_v0 = vpop.eup %2370 }
 0x5cd   :  { %v802_v1 = vsel %vm303_vm2, %v2371_v0, 0.0 }
 0x5ce   :  { %803 = vadd.xlane.f32.xlu1 %v802_v1 }
 0x5df   :  { %1050 = vrot.lane.b32.xlu1 %v3027_v13, %s2747_s29 }
 0x657   :  { %v801_v4 = vpop.xlane.xlu1 %800 }
 0x658   :  { %2372 = vrcp.f32 %v801_v4 }
 0x65b   :  { %v804_v6 = vpop.xlane.xlu1 %803 }
 0x65c   :  { %2374 = vrcp.f32 %v804_v6 }
 0x65f   :  { %v1051_v16 = vpop.permute.xlu1 %1050 }
 0x662   :  { %v2373_v9 = vpop.eup %2372 }
 0x663   :  { %v807_v10 = vmul.f32 %v2373_v9, %v2369_v62 }
 0x665   :  { %2201 = vmatmul.mubr.msk.f32.vlgmr.msra.gmra.mrb[4].mxu0 %vm303_vm2, %v807_v10 }
 0x666   :  { %v2375_v11 = vpop.eup %2374  ;;  %2209 = vmatpush3.xpose.msk.msra.mxu0 %vm303_vm2, %v975_v2  ;;  %2210 = vmatprep.mubr.msk.f32.mxu0 %vm2740_vm1, %v2739_v8 }
 0x667   :  { %v808_v14 = vmul.f32 %v2375_v11, %v2371_v0  ;;  %2218 = vmatprep.subr.mxu0 %v2739_v8 }
 0x669   :  { %2206 = vmatmul.mubr.msk.f32.vlgmr.msra.gmra.mrb[10].mxu1 %vm303_vm2, %v808_v14  ;;  %2211 = vmatmul.mubr.msk.f32.vlgmr.msra.gmra.mrb[6].mxu0 %vm303_vm2, %v973_v15 }
 0x66a   :  { %2214 = vmatpush3.xpose.msk.msra.mxu1 %vm303_vm2, %v1053_v3  ;;  %2215 = vmatprep.mubr.msk.f32.mxu1 %vm2740_vm1, %v2739_v8 }
 0x66b   :  { %2223 = vmatprep.subr.mxu1 %v2739_v8  ;;  %2220 = vmatprep.mubr.msk.f32.mxu0 %vm2740_vm1, %v2739_v8 }
 0x66d   :  { %2216 = vmatmul.mubr.msk.f32.vlgmr.msra.gmra.mrb[12].mxu1 %vm303_vm2, %v1051_v16 }
 0x66e   :  { %2225 = vmatprep.mubr.msk.f32.mxu1 %vm2740_vm1, %v2739_v8 }
 0x738   :  { %v3100_v17 = vpop.f32.mrb[4].mxu0 }
 0x739   :  { %v2202_v18 = vpop.f32.mrb[5].mxu0 }
 0x73c   :  { %v3102_v19 = vpop.f32.mrb[10].mxu1  ;;  %v1046_v20 = vpop.f32.mrb[6].mxu0 }
 0x73d   :  { %v2207_v21 = vpop.f32.mrb[11].mxu1  ;;  %v2212_v22 = vpop.f32.mrb[7].mxu0  ;;  %v1128_v23 = vsel %vm303_vm2, %v1046_v20, -inf }
 0x73e   :  { %1129 = vmax.xlane.f32.xlu0 %v1128_v23  ;;  %v1658_v22 = vld [vmem:[#allocation9 + $0x10] sm:$0xff]  ;;  %v1659_v23 = vld [vmem:[#allocation9 + $0x18] sm:$0xff] }
 0x740   :  { %v1124_v24 = vpop.f32.mrb[12].mxu1 }
 0x741   :  { %v2217_v25 = vpop.f32.mrb[13].mxu1  ;;  %v1131_v26 = vsel %vm303_vm2, %v1124_v24, -inf }
 0x742   :  { %1132 = vmax.xlane.f32.xlu1 %v1131_v26 }
 0x753   :  { %1150 = vrot.lane.b32.xlu1 %v3024_v12, %s2748_s16 }
 0x754   :  { %1226 = vrot.lane.b32.xlu0 %v3027_v13, %s2748_s16 }
 0x757   :  { %1315 = vrot.lane.b32.xlu1 %v3024_v12, %s2749_s26 }
 0x75b   :  { %1393 = vrot.lane.b32.xlu1 %v3027_v13, %s2749_s26 }
 0x75f   :  { %1391 = vrot.lane.b32.xlu1 %v3027_v13, %s2750_s0 }
 0x7cb   :  { %v1130_v27 = vpop.xlane.xlu0 %1129 }
 0x7cc   :  { %v1134_v28 = vsub.f32 %v1046_v20, %v1130_v27  ;;  %v1656_v20 = vld [vmem:[#allocation9] sm:$0xff] }
 0x7ce   :  { %v1136_v29 = vmul.f32 1.442695, %v1134_v28 }
 0x7cf   :  { %v1133_v30 = vpop.xlane.xlu1 %1132  ;;  %v1227_v31 = vpop.permute.xlu0 %1226 }
 0x7d0   :  { %2376 = vpow2.f32 %v1136_v29  ;;  %v1135_v32 = vsub.f32 %v1124_v24, %v1133_v30  ;;  %2224 = vmatpush3.msra.mxu1 %v1227_v31  ;;  %v2301_v24 = vpack.c.bf16 %v1659_v23, %v1658_v22  ;;  %v2089_v22 = vld [vmem:[#allocation14] ss:$0 sm:$0xff] }
 0x7d1   :  { %2233 = vmatprep.subr.mxu1 %v2739_v8 }
 0x7d2   :  { %v1138_v33 = vmul.f32 1.442695, %v1135_v32 }
 0x7d3   :  { %v1151_v34 = vpop.permute.xlu1 %1150 }
 0x7d4   :  { %2378 = vpow2.f32 %v1138_v33  ;;  %2219 = vmatpush3.msra.mxu0 %v1151_v34  ;;  %v2084_v33 = vld [vmem:[#allocation11] ss:$0 sm:$0xff] }
 0x7d5   :  { %2228 = vmatprep.subr.mxu0 %v2739_v8 }
 0x7d7   :  { %v1316_v41 = vpop.permute.xlu1 %1315 }
 0x7da   :  { %v2377_v35 = vpop.eup %2376 }
 0x7db   :  { %v1140_v36 = vsel %vm303_vm2, %v2377_v35, 0.0  ;;  %v1394_v45 = vpop.permute.xlu1 %1393 }
 0x7dc   :  { %1141 = vadd.xlane.f32.xlu0 %v1140_v36 }
 0x7de   :  { %v2379_v37 = vpop.eup %2378 }
 0x7df   :  { %v1143_v38 = vsel %vm303_vm2, %v2379_v37, 0.0  ;;  %v1392_v48 = vpop.permute.xlu1 %1391 }
 0x7e0   :  { %1144 = vadd.xlane.f32.xlu0 %v1143_v38 }
 0x7f6   :  { %1313 = vrot.lane.b32.xlu0 %v3024_v12, %s2750_s0 }
 0x869   :  { %v1142_v39 = vpop.xlane.xlu0 %1141 }
 0x86a   :  { %2380 = vrcp.f32 %v1142_v39 }
 0x86d   :  { %v1145_v40 = vpop.xlane.xlu0 %1144 }
 0x86e   :  { %2382 = vrcp.f32 %v1145_v40 }
 0x871   :  { %v1314_v47 = vpop.permute.xlu0 %1313 }
 0x874   :  { %v2381_v42 = vpop.eup %2380 }
 0x875   :  { %v1148_v43 = vmul.f32 %v2381_v42, %v2377_v35 }
 0x877   :  { %2221 = vmatmul.mubr.msk.f32.vlgmr.msra.gmra.mrb[8].mxu0 %vm303_vm2, %v1148_v43 }
 0x878   :  { %v2383_v44 = vpop.eup %2382  ;;  %2229 = vmatpush3.xpose.msk.msra.mxu0 %vm303_vm2, %v1316_v41  ;;  %2230 = vmatprep.mubr.msk.f32.mxu0 %vm2740_vm1, %v2739_v8 }
 0x879   :  { %v1149_v46 = vmul.f32 %v2383_v44, %v2379_v37  ;;  %2238 = vmatprep.subr.mxu0 %v2739_v8 }
 0x87b   :  { %2226 = vmatmul.mubr.msk.f32.vlgmr.msra.gmra.mrb[14].mxu1 %vm303_vm2, %v1149_v46  ;;  %2231 = vmatmul.mubr.msk.f32.vlgmr.msra.gmra.mrb[10].mxu0 %vm303_vm2, %v1314_v47 }
 0x87c   :  { %2234 = vmatpush3.xpose.msk.msra.mxu1 %vm303_vm2, %v1394_v45  ;;  %2235 = vmatprep.mubr.msk.f32.mxu1 %vm2740_vm1, %v2739_v8 }
 0x87d   :  { %2243 = vmatprep.subr.mxu1 %v2739_v8  ;;  %2240 = vmatprep.mubr.msk.f32.mxu0 %vm2740_vm1, %v2739_v8 }
 0x87f   :  { %2236 = vmatmul.mubr.msk.f32.vlgmr.msra.gmra.mrb[16].mxu1 %vm303_vm2, %v1392_v48 }
 0x880   :  { %2245 = vmatprep.mubr.msk.f32.mxu1 %vm2740_vm1, %v2739_v8 }
 0x94a   :  { %v1222_v49 = vpop.f32.mrb[8].mxu0 }
 0x94b   :  { %v2222_v50 = vpop.f32.mrb[9].mxu0 }
 0x94e   :  { %v1298_v51 = vpop.f32.mrb[14].mxu1  ;;  %v1387_v52 = vpop.f32.mrb[10].mxu0 }
 0x94f   :  { %v2227_v53 = vpop.f32.mrb[15].mxu1  ;;  %v2232_v54 = vpop.f32.mrb[11].mxu0  ;;  %v1469_v55 = vsel %vm303_vm2, %v1387_v52, -inf }
 0x950   :  { %1470 = vmax.xlane.f32.xlu0 %v1469_v55  ;;  %v1797_v53 = vld [vmem:[#allocation12 + $0x10] sm:$0xff]  ;;  %v1798_v54 = vld [vmem:[#allocation12 + $0x18] sm:$0xff] }
 0x951   :  { %v2309_v55 = vpack.c.bf16 %v1798_v54, %v1797_v53  ;;  %v2095_v53 = vld [vmem:[#allocation21] ss:$0 sm:$0xff] }
 0x952   :  { %v1465_v56 = vpop.f32.mrb[16].mxu1 }
 0x953   :  { %v2237_v57 = vpop.f32.mrb[17].mxu1  ;;  %v1472_v58 = vsel %vm303_vm2, %v1465_v56, -inf }
 0x954   :  { %1473 = vmax.xlane.f32.xlu1 %v1472_v58  ;;  %v1890_v57 = vld [vmem:[#allocation15 + $0x8] sm:$0xff]  ;;  %v1891_v58 = vld [vmem:[#allocation15 + $0x10] sm:$0xff] }
 0x965   :  { %1491 = vrot.lane.b32.xlu1 %v3024_v12, %s2751_s1 }
 0x969   :  { %963 = vrot.lane.b32.xlu1 %v3100_v17, %s2727_s21 }
 0x96d   :  { %965 = vrot.lane.b32.xlu1 %v3102_v19, %s2727_s21 }
 0x971   :  { %1306 = vrot.lane.b32.xlu1 %v1298_v51, %s2752_s7  ;;  %v1796_v51 = vld [vmem:[#allocation12 + $0x8] sm:$0xff] }
 0x9dd   :  { %v1471_v8 = vpop.xlane.xlu0 %1470 }
 0x9de   :  { %v1475_v59 = vsub.f32 %v1387_v52, %v1471_v8 }
 0x9e0   :  { %v1477_v60 = vmul.f32 1.442695, %v1475_v59  ;;  %v1892_v59 = vld [vmem:[#allocation15 + $0x18] sm:$0xff] }
 0x9e1   :  { %v1474_v61 = vpop.xlane.xlu1 %1473 }
 0x9e2   :  { %2384 = vpow2.f32 %v1477_v60  ;;  %v1476_v62 = vsub.f32 %v1465_v56, %v1474_v61  ;;  %v1889_v56 = vld [vmem:[#allocation15] sm:$0xff]  ;;  %v2317_v60 = vpack.c.bf16 %v1892_v59, %v1891_v58 }
 0x9e3   :  { %v2313_v8 = vpack.c.bf16 %v1890_v57, %v1889_v56  ;;  %v1893_v61 = vld [vmem:[#allocation15 + $0x20] sm:$0xff]  ;;  %v2096_v57 = vld [vmem:[#allocation23] ss:$0 sm:$0xff] }
 0x9e4   :  { %v1479_v63 = vmul.f32 1.442695, %v1476_v62  ;;  %v1894_v62 = vld [vmem:[#allocation15 + $0x28] sm:$0xff] }
 0x9e5   :  { %v1492_v0 = vpop.permute.xlu1 %1491 }
 0x9e6   :  { %2386 = vpow2.f32 %v1479_v63  ;;  %2239 = vmatpush3.msra.mxu0 %v1492_v0  ;;  %v2321_v63 = vpack.c.bf16 %v1894_v62, %v1893_v61 }
 0x9e9   :  { %v964_v12 = vpop.permute.xlu1 %963 }
 0x9ea   :  { %970 = vst.msk [vmem:[#allocation2] sm:$0xff] %vm969_vm3, %v964_v12 }
 0x9ec   :  { %v2385_v1 = vpop.eup %2384 }
 0x9ed   :  { %v966_v2 = vpop.permute.xlu1 %965  ;;  %v1481_v3 = vsel %vm303_vm2, %v2385_v1, 0.0 }
 0x9ee   :  { %971 = vst.msk [vmem:[#allocation2 + $0x8] sm:$0xff] %vm969_vm3, %v966_v2  ;;  %1482 = vadd.xlane.f32.xlu0 %v1481_v3 }
 0x9f0   :  { %v2387_v4 = vpop.eup %2386 }
 0x9f1   :  { %v1307_v6 = vpop.permute.xlu1 %1306  ;;  %v1484_v9 = vsel %vm303_vm2, %v2387_v4, 0.0 }
 0x9f2   :  { %1312 = vst.msk [vmem:[#allocation2 + $0x8] sm:$0xff] %vm1310_vm4, %v1307_v6  ;;  %1485 = vadd.xlane.f32.xlu0 %v1484_v9  ;;  %v2087_v9 = vld [vmem:[#allocation18] ss:$0 sm:$0xff] }
 0xa08   :  { %1567 = vrot.lane.b32.xlu0 %v3027_v13, %s2751_s1  ;;  %v1657_v13 = vld [vmem:[#allocation9 + $0x8] sm:$0xff] }
 0xa09   :  { %v2297_v21 = vpack.c.bf16 %v1657_v13, %v1656_v20  ;;  %v1895_v20 = vld [vmem:[#allocation15 + $0x30] sm:$0xff]  ;;  %v1896_v13 = vld [vmem:[#allocation15 + $0x38] sm:$0xff] }
 0xa0b   :  { %2298 = vmatprep.subr.bf16.mxu0 %v2297_v21 }
 0xa0c   :  { %1304 = vrot.lane.b32.xlu0 %v1222_v49, %s2752_s7 }
 0xa7b   :  { %v1483_v10 = vpop.xlane.xlu0 %1482 }
 0xa7c   :  { %2388 = vrcp.f32 %v1483_v10 }
 0xa7f   :  { %v1486_v11 = vpop.xlane.xlu0 %1485 }
 0xa80   :  { %2390 = vrcp.f32 %v1486_v11  ;;  %v2088_v11 = vld [vmem:[#allocation20] ss:$0 sm:$0xff] }
 0xa83   :  { %v1568_v14 = vpop.permute.xlu0 %1567 }
 0xa84   :  { %2244 = vmatpush3.msra.mxu1 %v1568_v14 }
 0xa86   :  { %v2389_v15 = vpop.eup %2388 }
 0xa87   :  { %v1489_v16 = vmul.f32 %v2389_v15, %v2385_v1  ;;  %v1305_v17 = vpop.permute.xlu0 %1304 }
 0xa88   :  { %1311 = vst.msk [vmem:[#allocation2] sm:$0xff] %vm1310_vm4, %v1305_v17 }
 0xa89   :  { %2241 = vmatmul.mubr.msk.f32.vlgmr.msra.gmra.mrb[12].mxu0 %vm303_vm2, %v1489_v16 }
 0xa8a   :  { %v2391_v18 = vpop.eup %2390  ;;  %2300 = vmatpush3.bf16.msra.mxu0 %v2297_v21  ;;  %v2325_v21 = vpack.c.bf16 %v1896_v13, %v1895_v20 }
 0xa8b   :  { %v1490_v19 = vmul.f32 %v2391_v18, %v2387_v4  ;;  %2302 = vmatprep.subr.bf16.mxu0 %v2301_v24 }
 0xa8d   :  { %2246 = vmatmul.mubr.msk.f32.vlgmr.msra.gmra.mrb[18].mxu1 %vm303_vm2, %v1490_v19 }
 0xa8e   :  { %2304 = vmatpush3.bf16.msra.mxu0 %v2301_v24 }
 0xa8f   :  { %2314 = vmatprep.subr.bf16.mxu0 %v2313_v8 }
 0xb5c   :  { %v1563_v25 = vpop.f32.mrb[12].mxu0 }
 0xb5d   :  { %1645 = vrot.lane.b32.xlu0 %v1563_v25, %s2753_s4  ;;  %v2242_v26 = vpop.f32.mrb[13].mxu0 }
 0xb60   :  { %v1639_v27 = vpop.f32.mrb[18].mxu1 }
 0xb61   :  { %1647 = vrot.lane.b32.xlu1 %v1639_v27, %s2753_s4  ;;  %v2247_v28 = vpop.f32.mrb[19].mxu1 }
 0xbcf   :  { %v1646_v29 = vpop.permute.xlu0 %1645 }
 0xbd0   :  { %1652 = vst.msk [vmem:[#allocation2] sm:$0xff] %vm1651_vm5, %v1646_v29  ;;  %v2092_v29 = vld [vmem:[#allocation17] ss:$0 sm:$0xff] }
 0xbd3   :  { %v1648_v30 = vpop.permute.xlu1 %1647 }
 0xbd4   :  { %1653 = vst.msk [vmem:[#allocation2 + $0x8] sm:$0xff] %vm1651_vm5, %v1648_v30 }
 0xbd7   :  { %v1654_v31 = vld [vmem:[#allocation2] sm:$0xff] }
 0xbd8   :  { %2256 = vmatprep.mubr.msk.f32.mxu0 %vm218_vm0, %v1654_v31 }
 0xbdb   :  { %v1655_v32 = vld [vmem:[#allocation2 + $0x8] sm:$0xff] }
 0xbdc   :  { %2257 = vmatmul.mubr.msk.f32.vlgmr.msra.gmra.mrb[14].mxu0 %vm218_vm0, %v1655_v32 }
 0xbdd   :  { %2316 = vmatpush3.bf16.msra.mxu0 %v2313_v8 }
 0xbde   :  { %2318 = vmatprep.subr.bf16.mxu0 %v2317_v60 }
 0xbe1   :  { %2320 = vmatpush3.bf16.msra.mxu0 %v2317_v60 }
 0xbe2   :  { %2322 = vmatprep.subr.bf16.mxu0 %v2321_v63 }
 0xbe5   :  { %2324 = vmatpush3.bf16.msra.mxu0 %v2321_v63 }
 0xbe6   :  { %2326 = vmatprep.subr.bf16.mxu0 %v2325_v21 }
 0xbe9   :  { %2328 = vmatpush3.bf16.msra.mxu0 %v2325_v21 }
 0xcaf   :  { %v2258_v34 = vpop.f32.mrb[14].mxu0 }
 0xcb0   :  { %v1745_v35 = vadd.f32 %v2258_v34, %v2084_v33  ;;  %v1739_v36 = vpop.f32.mrb[15].mxu0 }
 0xcb1   :  { %v1740_v37 = vadd.f32 %v2084_v33, %v1739_v36 }
 0xcb2   :  { %v1749_v38 = vadd.f32 %v1745_v35, %v3014_v7 }
 0xcb3   :  { %v1748_v39 = vadd.f32 %v1740_v37, %v3010_v5  ;;  %v1795_v5 = vld [vmem:[#allocation12] sm:$0xff] }
 0xcb4   :  { %v1755_v40 = vsel %vm218_vm0, %v1749_v38, 0.0  ;;  %v2305_v52 = vpack.c.bf16 %v1796_v51, %v1795_v5 }
 0xcb5   :  { %1756 = vadd.xlane.f32.xlu1 %v1755_v40  ;;  %v1752_v41 = vsel %vm218_vm0, %v1748_v39, 0.0 }
 0xcb6   :  { %1753 = vadd.xlane.f32.xlu0 %v1752_v41  ;;  %2306 = vmatprep.subr.bf16.mxu1 %v2305_v52 }
 0xcb7   :  { %2308 = vmatpush3.bf16.msra.mxu1 %v2305_v52 }
 0xcb8   :  { %2310 = vmatprep.subr.bf16.mxu1 %v2309_v55 }
 0xcbb   :  { %2312 = vmatpush3.bf16.msra.mxu1 %v2309_v55 }
 0xd42   :  { %v1757_v42 = vpop.xlane.xlu1 %1756 }
 0xd43   :  { %v1760_v43 = vmul.f32 0.03125, %v1757_v42  ;;  %v1754_v44 = vpop.xlane.xlu0 %1753 }
 0xd44   :  { %v1759_v45 = vmul.f32 0.03125, %v1754_v44 }
 0xd45   :  { %v1762_v46 = vsub.f32 %v1749_v38, %v1760_v43 }
 0xd46   :  { %v1761_v47 = vsub.f32 %v1748_v39, %v1759_v45 }
 0xd47   :  { %v1764_v50 = vmul.f32 %v1762_v46, %v1762_v46 }
 0xd48   :  { %v1763_v48 = vmul.f32 %v1761_v47, %v1761_v47 }
 0xd49   :  { %v1768_v7 = vsel %vm218_vm0, %v1764_v50, 0.0 }
 0xd4a   :  { %v1765_v49 = vsel %vm218_vm0, %v1763_v48, 0.0 }
 0xd4b   :  { %1766 = vadd.xlane.f32.xlu0 %v1765_v49 }
 0xd4f   :  { %1769 = vadd.xlane.f32.xlu0 %v1768_v7 }
 0xdd8   :  { %v1767_v0 = vpop.xlane.xlu0 %1766 }
 0xdd9   :  { %v1771_v12 = vmul.f32 0.03125, %v1767_v0 }
 0xddb   :  { %v1773_v1 = vadd.f32 1e-05, %v1771_v12 }
 0xddc   :  { %v1770_v2 = vpop.xlane.xlu0 %1769 }
 0xddd   :  { %2392 = vrsqrt.f32 %v1773_v1  ;;  %v1772_v3 = vmul.f32 0.03125, %v1770_v2 }
 0xddf   :  { %v1774_v4 = vadd.f32 1e-05, %v1772_v3 }
 0xde1   :  { %2394 = vrsqrt.f32 %v1774_v4 }
 0xde7   :  { %v2393_v6 = vpop.eup %2392 }
 0xde8   :  { %v1777_v10 = vmul.f32 %v2393_v6, %v1761_v47 }
 0xdea   :  { %v1785_v14 = vmul.f32 %v2087_v9, %v1777_v10 }
 0xdeb   :  { %v2395_v15 = vpop.eup %2394 }
 0xdec   :  { %v1778_v16 = vmul.f32 %v2395_v15, %v1762_v46  ;;  %v1793_v17 = vadd.f32 %v2088_v11, %v1785_v14 }
 0xdee   :  { %v1786_v18 = vmul.f32 %v2087_v9, %v1778_v16  ;;  %2267 = vmatprep.mubr.msk.f32.mxu1 %vm218_vm0, %v1793_v17 }
 0xdf0   :  { %v1794_v19 = vadd.f32 %v2088_v11, %v1786_v18 }
 0xdf2   :  { %2268 = vmatmul.mubr.msk.f32.vlgmr.msra.gmra.mrb[20].mxu1 %vm218_vm0, %v1794_v19 }
 0xec5   :  { %v2269_v23 = vpop.f32.mrb[20].mxu1 }
 0xec6   :  { %v1884_v24 = vadd.f32 %v2269_v23, %v2089_v22  ;;  %v1878_v25 = vpop.f32.mrb[21].mxu1 }
 0xec7   :  { %v1879_v26 = vadd.f32 %v2089_v22, %v1878_v25 }
 0xec8   :  { %v1888_v28 = vmax.f32 %v1884_v24, 0.0 }
 0xec9   :  { %v1887_v27 = vmax.f32 %v1879_v26, 0.0 }
 0xecb   :  { %2286 = vmatprep.mubr.msk.f32.mxu0 %vm1904_vm6, %v1887_v27 }
 0xecc   :  { %2287 = vmatmul.mubr.msk.f32.vlgmr.msra.gmra.mrb[16].mxu0 %vm1904_vm6, %v1888_v28 }
 0xf9f   :  { %v2288_v30 = vpop.f32.mrb[16].mxu0 }
 0xfa0   :  { %v1983_v31 = vadd.f32 %v2288_v30, %v2092_v29  ;;  %v1977_v32 = vpop.f32.mrb[17].mxu0 }
 0xfa1   :  { %v1978_v33 = vadd.f32 %v2092_v29, %v1977_v32 }
 0xfa2   :  { %v1987_v34 = vadd.f32 %v1983_v31, %v1794_v19 }
 0xfa3   :  { %v1986_v35 = vadd.f32 %v1978_v33, %v1793_v17 }
 0xfa4   :  { %v1993_v36 = vsel %vm218_vm0, %v1987_v34, 0.0 }
 0xfa5   :  { %1994 = vadd.xlane.f32.xlu0 %v1993_v36  ;;  %v1990_v37 = vsel %vm218_vm0, %v1986_v35, 0.0 }
 0xfa6   :  { %1991 = vadd.xlane.f32.xlu1 %v1990_v37 }
0x1032   :  { %v1995_v38 = vpop.xlane.xlu0 %1994 }
0x1033   :  { %v1997_v39 = vmul.f32 0.03125, %v1995_v38  ;;  %v1992_v40 = vpop.xlane.xlu1 %1991 }
0x1034   :  { %v1996_v41 = vmul.f32 0.03125, %v1992_v40 }
0x1035   :  { %v1999_v42 = vsub.f32 %v1987_v34, %v1997_v39 }
0x1036   :  { %v1998_v43 = vsub.f32 %v1986_v35, %v1996_v41 }
0x1037   :  { %v2001_v44 = vmul.f32 %v1999_v42, %v1999_v42 }
0x1038   :  { %v2000_v45 = vmul.f32 %v1998_v43, %v1998_v43 }
0x1039   :  { %v2005_v46 = vsel %vm218_vm0, %v2001_v44, 0.0 }
0x103a   :  { %2006 = vadd.xlane.f32.xlu0 %v2005_v46  ;;  %v2002_v47 = vsel %vm218_vm0, %v2000_v45, 0.0 }
0x103b   :  { %2003 = vadd.xlane.f32.xlu1 %v2002_v47 }
0x10c7   :  { %v2007_v48 = vpop.xlane.xlu0 %2006 }
0x10c8   :  { %v2009_v49 = vmul.f32 0.03125, %v2007_v48  ;;  %v2004_v50 = vpop.xlane.xlu1 %2003 }
0x10c9   :  { %v2008_v7 = vmul.f32 0.03125, %v2004_v50 }
0x10ca   :  { %v2011_v5 = vadd.f32 1e-05, %v2009_v49 }
0x10cb   :  { %v2010_v51 = vadd.f32 1e-05, %v2008_v7 }
0x10cc   :  { %2396 = vrsqrt.f32 %v2011_v5 }
0x10cd   :  { %2398 = vrsqrt.f32 %v2010_v51 }
0x10d6   :  { %v2397_v52 = vpop.eup %2396 }
0x10d7   :  { %v2399_v54 = vpop.eup %2398  ;;  %v2015_v55 = vmul.f32 %v2397_v52, %v1999_v42 }
0x10d8   :  { %v2014_v56 = vmul.f32 %v2399_v54, %v1998_v43 }
0x10d9   :  { %v2023_v58 = vmul.f32 %v2095_v53, %v2015_v55 }
0x10da   :  { %v2022_v8 = vmul.f32 %v2095_v53, %v2014_v56 }
0x10db   :  { %v2031_v59 = vadd.f32 %v2096_v57, %v2023_v58 }
0x10dc   :  { %v2030_v60 = vadd.f32 %v2096_v57, %v2022_v8 }
0x10dd   :  { %2033 = vst.msk [vmem:[#allocation24 + $0x8] sm:$0xff] %vm218_vm0, %v2031_v59 }
0x10de   :  { %2032 = vst.msk [vmem:[#allocation24] sm:$0xff] %vm218_vm0, %v2030_v60 }
0x10df   :  { %2697 = shalt.err (!%p2694_p10)
}
0x10e0   :  { %s2698_s11 = scalar_lea.hbm %s3190_s13, 256 }
0x10e1   :  { %p2699_p11 = scmp.ne.s32.totalorder %s3190_s13, %s2698_s11  ;;  %p2702_p12 = scmp.lt.u32.totalorder %s2698_s11, %s3190_s13 }
0x10e3   :  { %p2704_p13 = pnand %p2702_p12, %p2699_p11 }
0x10e5   :  { %2707 = shalt.err (!%p2704_p13)
}
0x10e6   :  { %2045 = dma.vmem_to_hbm [thread:$0]  %s2040_s22, 256, %s3190_s13, [#allocation5], %s2726_s20, %s2726_s20, %s2727_s21  }
0x10e7   :  { %2722 = dma.done.wait [#allocation5], 256  }
0x10e8   :  { %2723 = vsyncadd [#allocation5], 4294967040 }
0x10e9   :  { %2049 = vsyncpa [#allocation4], 1 }
0x10ea   :  { %2050 = vsyncpa [#allocation7], 1 }
0x10eb   :  { %2051 = vsyncpa [#allocation10], 1 }
0x10ec   :  { %2052 = vsyncpa [#allocation13], 1 }
0x10ed   :  { %2053 = vsyncpa [#allocation16], 1 }
0x10ee   :  { %2054 = vsyncpa [#allocation19], 1 }
0x10ef   :  { %2055 = vsyncpa [#allocation22], 1 }
0x10f0   :  { %2056 = vsyncpa [#allocation5], 1 }

</bundles_post_ra>
